<compile_context>
chip_gen: v7x
topology: tpu7x:2x2x1
jax: 0.10.0
libtpu: 0.0.40
codegen_flags: <defaults>
</compile_context>

<pallas_src>
import functools
import math

import numpy as np

import jax
import jax.numpy as jnp
from jax.experimental import pallas as pl
from jax.experimental.pallas import tpu as pltpu

LN_EPS = 1e-12                       # BERT layer_norm_eps
MASK_PAD = -1e9                      # additive-mask value for padded key columns
_WEIGHT_KEYS = ("wq", "wk", "wv", "wo", "w1", "w2")


# ------------------------------- small helpers --------------------------------
def _round_up(n, m):
    return ((n + m - 1) // m) * m


def _vmem_limit_bytes():
    # Generation-dependent budget: ~75% of physical VMEM (v5e/v6e -> ~96 MiB,
    # v7x -> ~48 MiB), capped at 112 MiB.  Falls back to 48 MiB if the query fails.
    try:
        cap = int(pltpu.get_tpu_info().vmem_capacity_bytes)
        return min((cap * 3) // 4, 112 * 1024 * 1024)
    except Exception:
        return 48 * 1024 * 1024


def _layernorm(x, g, b):
    mu = jnp.mean(x, axis=-1, keepdims=True)
    var = jnp.mean((x - mu) ** 2, axis=-1, keepdims=True)
    return (x - mu) * jax.lax.rsqrt(var + LN_EPS) * g + b


def _gelu(x):
    # exact erf gelu (matches the torch reference, not the tanh approximation)
    return x * 0.5 * (1.0 + jax.lax.erf(x / math.sqrt(2.0)))


# ------------------------------ fused Pallas kernel ---------------------------
def _lxrtx_kernel(x_ref, ctx_ref, cmask_ref, smask_ref,
                  cwq, cbq, cwk, cbk, cwv, cbv, cwo, cbo, cg, cb,
                  swq, sbq, swk, sbk, swv, sbv, swo, sbo, sg, sb,
                  w1, b1, w2, b2, fg, fb,
                  out_ref, lsc_ref, vsc_ref,
                  attn_ref,
                  *, num_heads, head_dim, heads_per_group):
    """One batch element of LXRTXLayer.forward.

    x_ref:     (Sq_p, H)  concat(state, vision) — queries of the cross attention
    ctx_ref:   (Sk_p, H)  language context (keys/values of the cross attention)
    cmask_ref: (1, Sk_p)  additive cross-attention mask (f32)
    smask_ref: (1, Sq_p)  additive self-attention mask (f32)
    out_ref:   (Sq_p, H)  layer output
    lsc_ref:   (nh, Sk_p) cross-attention scores of query row 0 (f32)
    vsc_ref:   (nh, Sq_p) self-attention scores of query row 0 (f32)
    attn_ref:  (Sq_p, H)  f32 VMEM scratch holding the per-head context slab
    """
    cdt = x_ref.dtype                                   # matmul operand dtype

    def mha(x, ctx, mask, wq, bq, wk, bk, wv, bv, wo, bo, g, beta, sc_ref):
        # x: (Sq_p, H) queries + residual; ctx: (Skk, H) keys/values; mask: (1, Skk)
        # 1/sqrt(head_dim) is pre-folded into wq/bq in the wrapper (in f32).
        q = (jnp.dot(x, wq[...], preferred_element_type=jnp.float32)
             + bq[...]).astype(cdt)
        k = (jnp.dot(ctx, wk[...], preferred_element_type=jnp.float32)
             + bk[...]).astype(cdt)
        v = (jnp.dot(ctx, wv[...], preferred_element_type=jnp.float32)
             + bv[...]).astype(cdt)
        sq, skk = q.shape[0], k.shape[0]
        mask_b = jnp.broadcast_to(mask, (sq, skk))      # hoisted: broadcast once
        row0 = []
        # TODO(synk): for full MXU depth at real sizes, use a block-diagonal grouped
        # contraction (2 heads on v5e, 4 on v6e/v7x) instead of per-head dh dots.
        for g0 in range(0, num_heads, heads_per_group):
            ctxs = []
            for h in range(g0, g0 + heads_per_group):   # static unroll over heads
                sl = slice(h * head_dim, (h + 1) * head_dim)
                # contract on the last dims -> no explicit transpose of K
                s = jax.lax.dot_general(q[:, sl], k[:, sl],
                                        dimension_numbers=(((1,), (1,)), ((), ())),
                                        preferred_element_type=jnp.float32)
                s = s + mask_b                          # (sq, skk) f32
                row0.append(s[0:1, :])                  # only row 0 is consumed
                # softmax in f32 (reciprocal on the EUP slot)
                s_max = jnp.max(s, axis=-1, keepdims=True)
                p = jnp.exp(s - s_max)
                p = p * pl.reciprocal(jnp.sum(p, axis=-1, keepdims=True), approx=True)
                ctxs.append(jnp.dot(p.astype(cdt), v[:, sl],
                                    preferred_element_type=jnp.float32))
            gsl = slice(g0 * head_dim, (g0 + heads_per_group) * head_dim)
            # one >=128-lane store per head group (when group*head_dim >= 128)
            attn_ref[:, gsl] = (ctxs[0] if len(ctxs) == 1
                                else jnp.concatenate(ctxs, axis=1))
        # all heads' row-0 scores in a single lane-dense store
        sc_ref[...] = jnp.concatenate(row0, axis=0)
        proj = (jnp.dot(attn_ref[...].astype(cdt), wo[...],
                        preferred_element_type=jnp.float32) + bo[...])
        # BertSelfOutput: dense + residual + LayerNorm (f32)
        return _layernorm(proj + x.astype(jnp.float32), g[...], beta[...])

    # --- cross attention: (state, vision) queries attend to language ---
    x1 = mha(x_ref[...], ctx_ref[...], cmask_ref[...],
             cwq, cbq, cwk, cbk, cwv, cbv, cwo, cbo, cg, cb, lsc_ref)
    x1c = x1.astype(cdt)
    # --- self attention over (state, vision) ---
    x2 = mha(x1c, x1c, smask_ref[...],
             swq, sbq, swk, sbk, swv, sbv, swo, sbo, sg, sb, vsc_ref)
    x2c = x2.astype(cdt)
    # --- feed forward: BertIntermediate(gelu) + BertOutput + residual + LN ---
    h = _gelu(jnp.dot(x2c, w1[...], preferred_element_type=jnp.float32) + b1[...])
    y = jnp.dot(h.astype(cdt), w2[...], preferred_element_type=jnp.float32) + b2[...]
    out_ref[...] = _layernorm(y + x2, fg[...], fb[...]).astype(out_ref.dtype)


# ------------------------------ parameter prep --------------------------------
def _prep_attn_params(p, dtype, head_dim):
    """Fold 1/sqrt(dh) into wq/bq in f32, then cast matmul weights to `dtype`."""
    scale = 1.0 / math.sqrt(head_dim)
    out = dict(p)
    out["wq"] = p["wq"] * scale
    out["bq"] = p["bq"] * scale
    for k in _WEIGHT_KEYS:
        if k in out:
            out[k] = out[k].astype(dtype)
    return out


def _prep_ffn_params(p, dtype):
    # TODO(synk): on v7x, store w1/w2 as fp8 with per-output-channel scales
    # (dequant folded into the f32 accumulate) for ~2x GEMM throughput.
    out = dict(p)
    for k in _WEIGHT_KEYS:
        if k in out:
            out[k] = out[k].astype(dtype)
    return out


# ------------------------------ LXRTXLayer forward ----------------------------
def lxrtx_layer_forward(params, lang_feats, lang_attention_mask,
                        visn_feats, visn_attention_mask, tdx, *,
                        num_heads, compute_dtype=jnp.float32):
    """compute_dtype=jnp.bfloat16 is valid on v5e, v6e and v7x (accumulation,
    softmax and LayerNorm stay in f32)."""
    del tdx                                   # unused by the torch forward as well
    cdt = compute_dtype
    is_bf16 = np.dtype(compute_dtype) == np.dtype(jnp.bfloat16)

    B, Ll, H = lang_feats.shape
    Lv = visn_feats.shape[1]
    head_dim = H // num_heads

    p_cross = _prep_attn_params(params["cross_att"], cdt, head_dim)
    p_self = _prep_attn_params(params["visn_self_att"], cdt, head_dim)
    p_ffn = _prep_ffn_params(params["visn_ffn"], cdt)

    lang_c = lang_feats.astype(cdt)
    visn_c = visn_feats.astype(cdt)

    # --- glue (concat / slice) in plain JAX ---
    x = jnp.concatenate([lang_c[:, 0:1, :], visn_c], axis=1)            # (B, Sq, H)
    ctx = lang_c[:, 1:, :]                                              # (B, Sk, H)
    cross_mask = lang_attention_mask[:, 0, :, 1:].astype(jnp.float32)   # (B, 1, Sk)
    self_mask = jnp.concatenate(
        [lang_attention_mask[:, :, :, 0:1], visn_attention_mask],
        axis=-1)[:, 0, :, :].astype(jnp.float32)                        # (B, 1, Sq)

    Sq, Sk = x.shape[1], ctx.shape[1]
    sub = 16 if is_bf16 else 8                 # bf16 packs two rows per sublane
    Sq_p = _round_up(Sq, sub)
    Sk_p = _round_up(Sk, 128)                  # lane-dense keys / score stores

    x_p = jnp.pad(x, ((0, 0), (0, Sq_p - Sq), (0, 0)))
    ctx_p = jnp.pad(ctx, ((0, 0), (0, Sk_p - Sk), (0, 0)))
    cross_mask_p = jnp.pad(cross_mask, ((0, 0), (0, 0), (0, Sk_p - Sk)),
                           constant_values=MASK_PAD)
    self_mask_p = jnp.pad(self_mask, ((0, 0), (0, 0), (0, Sq_p - Sq)),
                          constant_values=MASK_PAD)

    # head grouping so every scratch-slab store is >=128 lanes wide when possible
    heads_per_group = min(num_heads, max(1, 128 // head_dim))
    while num_heads % heads_per_group:
        heads_per_group -= 1

    kernel = functools.partial(_lxrtx_kernel, num_heads=num_heads,
                               head_dim=head_dim, heads_per_group=heads_per_group)

    def rep(shape):
        # grid-invariant operand (weights / biases / LN params)
        # TODO(synk): once pipeline_mode=pl.Buffered(1) is reliably supported for
        # the classic grid pipeline, use it here to drop the redundant 2nd buffer.
        return pl.BlockSpec(shape, lambda b: (0,) * len(shape))

    def attn_specs():
        return [rep((H, H)), rep((1, H)),      # wq, bq
                rep((H, H)), rep((1, H)),      # wk, bk
                rep((H, H)), rep((1, H)),      # wv, bv
                rep((H, H)), rep((1, H)),      # wo, bo
                rep((1, H)), rep((1, H))]      # ln gamma, beta

    I = p_ffn["w1"].shape[1]
    in_specs = (
        [pl.BlockSpec((None, Sq_p, H), lambda b: (b, 0, 0)),     # x (queries)
         pl.BlockSpec((None, Sk_p, H), lambda b: (b, 0, 0)),     # language ctx
         pl.BlockSpec((None, 1, Sk_p), lambda b: (b, 0, 0)),     # cross mask
         pl.BlockSpec((None, 1, Sq_p), lambda b: (b, 0, 0))]     # self mask
        + attn_specs() + attn_specs()
        + [rep((H, I)), rep((1, I)), rep((I, H)), rep((1, H)),   # w1, b1, w2, b2
           rep((1, H)), rep((1, H))])                            # ffn ln gamma, beta

    out_specs = [
        pl.BlockSpec((None, Sq_p, H), lambda b: (b, 0, 0)),
        pl.BlockSpec((None, num_heads, Sk_p), lambda b: (b, 0, 0)),
        pl.BlockSpec((None, num_heads, Sq_p), lambda b: (b, 0, 0)),
    ]
    out_shape = [
        jax.ShapeDtypeStruct((B, Sq_p, H), cdt),
        jax.ShapeDtypeStruct((B, num_heads, Sk_p), jnp.float32),
        jax.ShapeDtypeStruct((B, num_heads, Sq_p), jnp.float32),
    ]

    def attn_args(p):
        return [p["wq"], p["bq"], p["wk"], p["bk"], p["wv"], p["bv"],
                p["wo"], p["bo"], p["ln_g"], p["ln_b"]]

    out_p, lsc_p, vsc_p = pl.pallas_call(
        kernel,
        grid=(B,),
        in_specs=in_specs,
        out_specs=out_specs,
        out_shape=out_shape,
        scratch_shapes=[pltpu.VMEM((Sq_p, H), jnp.float32)],
        compiler_params=pltpu.CompilerParams(
            dimension_semantics=("parallel",),       # batch shards across TCs (v7x)
            vmem_limit_bytes=_vmem_limit_bytes()),
    )(x_p, ctx_p, cross_mask_p, self_mask_p,
      *attn_args(p_cross), *attn_args(p_self),
      p_ffn["w1"], p_ffn["b1"], p_ffn["w2"], p_ffn["b2"],
      p_ffn["ln_g"], p_ffn["ln_b"])

    state_visn_output = out_p[:, :Sq, :].astype(jnp.float32)
    language_attention_scores = lsc_p[:, :, :Sk]                 # (B, nh, Ll-1)
    visual_attention_scores = vsc_p[:, :, 1:Sq]                  # (B, nh, Lv)

    visn_att_out = state_visn_output[:, 1:, :]
    lang_att_out = jnp.concatenate(
        [state_visn_output[:, 0:1, :], lang_feats[:, 1:, :]], axis=1)
    return lang_att_out, visn_att_out, language_attention_scores, visual_attention_scores


# ------------------------------ pure-JAX reference ----------------------------
def _ref_attention(x, ctx, mask, p, num_heads):
    """mask: (B, 1, Sk) additive."""
    B, Sq, H = x.shape
    dh = H // num_heads
    q = x @ p["wq"] + p["bq"]
    k = ctx @ p["wk"] + p["bk"]
    v = ctx @ p["wv"] + p["bv"]

    def split(t):
        return t.reshape(B, -1, num_heads, dh).transpose(0, 2, 1, 3)

    qh, kh, vh = split(q), split(k), split(v)
    s = jnp.einsum("bhqd,bhkd->bhqk", qh, kh) / math.sqrt(dh)
    s = s + mask[:, None, :, :]
    prob = jax.nn.softmax(s, axis=-1)
    c = jnp.einsum("bhqk,bhkd->bhqd", prob, vh).transpose(0, 2, 1, 3).reshape(B, Sq, H)
    out = _layernorm(c @ p["wo"] + p["bo"] + x, p["ln_g"], p["ln_b"])
    return out, s


def _ref_ffn(x, p):
    h = _gelu(x @ p["w1"] + p["b1"])
    return _layernorm(h @ p["w2"] + p["b2"] + x, p["ln_g"], p["ln_b"])


def lxrtx_layer_reference(params, lang_feats, lang_mask, visn_feats, visn_mask, num_heads):
    visn_in = jnp.concatenate([lang_feats[:, 0:1, :], visn_feats], axis=1)
    sv_mask = jnp.concatenate([lang_mask[:, :, :, 0:1], visn_mask], axis=-1)
    cross_mask = lang_mask[:, 0, :, 1:]                  # (B, 1, Ll-1)
    x_out, x_sc = _ref_attention(visn_in, lang_feats[:, 1:, :], cross_mask,
                                 params["cross_att"], num_heads)
    lang_sc = x_sc[:, :, 0, :]
    s_out, s_sc = _ref_attention(x_out, x_out, sv_mask[:, 0, :, :],
                                 params["visn_self_att"], num_heads)
    fc = _ref_ffn(s_out, params["visn_ffn"])
    lang_att = jnp.concatenate([fc[:, 0:1, :], lang_feats[:, 1:, :]], axis=1)
    return lang_att, fc[:, 1:, :], lang_sc, s_sc[:, :, 0, 1:]


# ------------------------------ parameter init --------------------------------
def init_params(key, hidden, intermediate):
    keys = jax.random.split(key, 16)
    ki = iter(keys)

    def lin(k, fan_in, fan_out):
        return 0.02 * jax.random.normal(k, (fan_in, fan_out), jnp.float32)

    def attn_params():
        return {
            "wq": lin(next(ki), hidden, hidden), "bq": jnp.zeros((1, hidden), jnp.float32),
            "wk": lin(next(ki), hidden, hidden), "bk": jnp.zeros((1, hidden), jnp.float32),
            "wv": lin(next(ki), hidden, hidden), "bv": jnp.zeros((1, hidden), jnp.float32),
            "wo": lin(next(ki), hidden, hidden), "bo": jnp.zeros((1, hidden), jnp.float32),
            "ln_g": jnp.ones((1, hidden), jnp.float32),
            "ln_b": jnp.zeros((1, hidden), jnp.float32),
        }

    ffn = {
        "w1": lin(next(ki), hidden, intermediate), "b1": jnp.zeros((1, intermediate), jnp.float32),
        "w2": lin(next(ki), intermediate, hidden), "b2": jnp.zeros((1, hidden), jnp.float32),
        "ln_g": jnp.ones((1, hidden), jnp.float32),
        "ln_b": jnp.zeros((1, hidden), jnp.float32),
    }
    return {"cross_att": attn_params(), "visn_self_att": attn_params(), "visn_ffn": ffn}


# ----------------------------------- main --------------------------------------
if __name__ == "__main__":
    B, L_LANG, L_VIS, HIDDEN, INTER, NUM_HEADS = 2, 8, 8, 32, 64, 4

    key = jax.random.PRNGKey(0)
    k_params, k_lang, k_visn = jax.random.split(key, 3)

    params = init_params(k_params, HIDDEN, INTER)
    lang_feats = jax.random.normal(k_lang, (B, L_LANG, HIDDEN), jnp.float32)
    visn_feats = jax.random.normal(k_visn, (B, L_VIS, HIDDEN), jnp.float32)
    # additive BERT masks (0 = attend, -10000 = masked); shapes (B, 1, 1, L)
    lang_mask = jnp.zeros((B, 1, 1, L_LANG), jnp.float32)
    visn_mask = jnp.zeros((B, 1, 1, L_VIS), jnp.float32)
    lang_mask = lang_mask.at[1, :, :, L_LANG - 1].set(-10000.0)
    visn_mask = visn_mask.at[1, :, :, L_VIS - 1].set(-10000.0)

    # --- f32 run + correctness check against the pure-JAX reference ---
    fwd_f32 = jax.jit(functools.partial(
        lxrtx_layer_forward, num_heads=NUM_HEADS, compute_dtype=jnp.float32))
    outs = jax.block_until_ready(
        fwd_f32(params, lang_feats, lang_mask, visn_feats, visn_mask, 0))
    lang_out, visn_out, lang_scores, vis_scores = outs

    assert lang_out.shape == (B, L_LANG, HIDDEN)
    assert visn_out.shape == (B, L_VIS, HIDDEN)
    assert lang_scores.shape == (B, NUM_HEADS, L_LANG - 1)
    assert vis_scores.shape == (B, NUM_HEADS, L_VIS)

    ref = lxrtx_layer_reference(params, lang_feats, lang_mask, visn_feats, visn_mask,
                                NUM_HEADS)
    for name, got, exp in zip(("lang_out", "visn_out", "lang_scores", "vis_scores"),
                              outs, ref):
        assert jnp.allclose(got, exp, atol=2e-3, rtol=2e-3), f"f32 mismatch: {name}"

    # --- bf16-operand run (valid on v5e/v6e/v7x); looser tolerance vs f32 ref ---
    fwd_bf16 = jax.jit(functools.partial(
        lxrtx_layer_forward, num_heads=NUM_HEADS, compute_dtype=jnp.bfloat16))
    outs_bf16 = jax.block_until_ready(
        fwd_bf16(params, lang_feats, lang_mask, visn_feats, visn_mask, 0))
    for name, got, exp in zip(("lang_out", "visn_out", "lang_scores", "vis_scores"),
                              outs_bf16, ref):
        got32 = jnp.asarray(got, jnp.float32)
        assert jnp.allclose(got32, exp, atol=8e-2, rtol=8e-2), f"bf16 mismatch: {name}"

    print("KERNEL_OK")
</pallas_src>

<mosaic_0001>
module attributes {stable_mosaic.version = 11 : i64} {
  func.func @_lxrtx_kernel(%arg0: i32, %arg1: memref<1x16x32xf32, #tpu.memory_space<vmem>>, %arg2: memref<1x128x32xf32, #tpu.memory_space<vmem>>, %arg3: memref<1x1x128xf32, #tpu.memory_space<vmem>>, %arg4: memref<1x1x16xf32, #tpu.memory_space<vmem>>, %arg5: memref<32x32xf32, #tpu.memory_space<vmem>>, %arg6: memref<1x32xf32, #tpu.memory_space<vmem>>, %arg7: memref<32x32xf32, #tpu.memory_space<vmem>>, %arg8: memref<1x32xf32, #tpu.memory_space<vmem>>, %arg9: memref<32x32xf32, #tpu.memory_space<vmem>>, %arg10: memref<1x32xf32, #tpu.memory_space<vmem>>, %arg11: memref<32x32xf32, #tpu.memory_space<vmem>>, %arg12: memref<1x32xf32, #tpu.memory_space<vmem>>, %arg13: memref<1x32xf32, #tpu.memory_space<vmem>>, %arg14: memref<1x32xf32, #tpu.memory_space<vmem>>, %arg15: memref<32x32xf32, #tpu.memory_space<vmem>>, %arg16: memref<1x32xf32, #tpu.memory_space<vmem>>, %arg17: memref<32x32xf32, #tpu.memory_space<vmem>>, %arg18: memref<1x32xf32, #tpu.memory_space<vmem>>, %arg19: memref<32x32xf32, #tpu.memory_space<vmem>>, %arg20: memref<1x32xf32, #tpu.memory_space<vmem>>, %arg21: memref<32x32xf32, #tpu.memory_space<vmem>>, %arg22: memref<1x32xf32, #tpu.memory_space<vmem>>, %arg23: memref<1x32xf32, #tpu.memory_space<vmem>>, %arg24: memref<1x32xf32, #tpu.memory_space<vmem>>, %arg25: memref<32x64xf32, #tpu.memory_space<vmem>>, %arg26: memref<1x64xf32, #tpu.memory_space<vmem>>, %arg27: memref<64x32xf32, #tpu.memory_space<vmem>>, %arg28: memref<1x32xf32, #tpu.memory_space<vmem>>, %arg29: memref<1x32xf32, #tpu.memory_space<vmem>>, %arg30: memref<1x32xf32, #tpu.memory_space<vmem>>, %arg31: memref<1x16x32xf32, #tpu.memory_space<vmem>>, %arg32: memref<1x4x128xf32, #tpu.memory_space<vmem>>, %arg33: memref<1x4x16xf32, #tpu.memory_space<vmem>>, %arg34: memref<16x32xf32, #tpu.memory_space<vmem>>) attributes {dimension_semantics = [#tpu.dimension_semantics<parallel>], iteration_bounds = array<i64: 2>, scalar_prefetch = 0 : i64, scratch_operands = 1 : i64, tpu.core_type = #tpu.core_type<tc>, window_params = [{transform_indices = @transform_0, window_bounds = array<i64: 1, 16, 32>}, {transform_indices = @transform_1, window_bounds = array<i64: 1, 128, 32>}, {transform_indices = @transform_2, window_bounds = array<i64: 1, 1, 128>}, {transform_indices = @transform_3, window_bounds = array<i64: 1, 1, 16>}, {pipeline_mode = #tpu.pipeline_mode<synchronous>, transform_indices = @transform_4, window_bounds = array<i64: 32, 32>}, {pipeline_mode = #tpu.pipeline_mode<synchronous>, transform_indices = @transform_5, window_bounds = array<i64: 1, 32>}, {pipeline_mode = #tpu.pipeline_mode<synchronous>, transform_indices = @transform_6, window_bounds = array<i64: 32, 32>}, {pipeline_mode = #tpu.pipeline_mode<synchronous>, transform_indices = @transform_7, window_bounds = array<i64: 1, 32>}, {pipeline_mode = #tpu.pipeline_mode<synchronous>, transform_indices = @transform_8, window_bounds = array<i64: 32, 32>}, {pipeline_mode = #tpu.pipeline_mode<synchronous>, transform_indices = @transform_9, window_bounds = array<i64: 1, 32>}, {pipeline_mode = #tpu.pipeline_mode<synchronous>, transform_indices = @transform_10, window_bounds = array<i64: 32, 32>}, {pipeline_mode = #tpu.pipeline_mode<synchronous>, transform_indices = @transform_11, window_bounds = array<i64: 1, 32>}, {pipeline_mode = #tpu.pipeline_mode<synchronous>, transform_indices = @transform_12, window_bounds = array<i64: 1, 32>}, {pipeline_mode = #tpu.pipeline_mode<synchronous>, transform_indices = @transform_13, window_bounds = array<i64: 1, 32>}, {pipeline_mode = #tpu.pipeline_mode<synchronous>, transform_indices = @transform_14, window_bounds = array<i64: 32, 32>}, {pipeline_mode = #tpu.pipeline_mode<synchronous>, transform_indices = @transform_15, window_bounds = array<i64: 1, 32>}, {pipeline_mode = #tpu.pipeline_mode<synchronous>, transform_indices = @transform_16, window_bounds = array<i64: 32, 32>}, {pipeline_mode = #tpu.pipeline_mode<synchronous>, transform_indices = @transform_17, window_bounds = array<i64: 1, 32>}, {pipeline_mode = #tpu.pipeline_mode<synchronous>, transform_indices = @transform_18, window_bounds = array<i64: 32, 32>}, {pipeline_mode = #tpu.pipeline_mode<synchronous>, transform_indices = @transform_19, window_bounds = array<i64: 1, 32>}, {pipeline_mode = #tpu.pipeline_mode<synchronous>, transform_indices = @transform_20, window_bounds = array<i64: 32, 32>}, {pipeline_mode = #tpu.pipeline_mode<synchronous>, transform_indices = @transform_21, window_bounds = array<i64: 1, 32>}, {pipeline_mode = #tpu.pipeline_mode<synchronous>, transform_indices = @transform_22, window_bounds = array<i64: 1, 32>}, {pipeline_mode = #tpu.pipeline_mode<synchronous>, transform_indices = @transform_23, window_bounds = array<i64: 1, 32>}, {pipeline_mode = #tpu.pipeline_mode<synchronous>, transform_indices = @transform_24, window_bounds = array<i64: 32, 64>}, {pipeline_mode = #tpu.pipeline_mode<synchronous>, transform_indices = @transform_25, window_bounds = array<i64: 1, 64>}, {pipeline_mode = #tpu.pipeline_mode<synchronous>, transform_indices = @transform_26, window_bounds = array<i64: 64, 32>}, {pipeline_mode = #tpu.pipeline_mode<synchronous>, transform_indices = @transform_27, window_bounds = array<i64: 1, 32>}, {pipeline_mode = #tpu.pipeline_mode<synchronous>, transform_indices = @transform_28, window_bounds = array<i64: 1, 32>}, {pipeline_mode = #tpu.pipeline_mode<synchronous>, transform_indices = @transform_29, window_bounds = array<i64: 1, 32>}, {transform_indices = @transform_30, window_bounds = array<i64: 1, 16, 32>}, {transform_indices = @transform_31, window_bounds = array<i64: 1, 4, 128>}, {transform_indices = @transform_32, window_bounds = array<i64: 1, 4, 16>}]} {
    %c0 = arith.constant 0 : index
    %c0_0 = arith.constant 0 : index
    %c0_1 = arith.constant 0 : index
    %0 = vector.load %arg1[%c0, %c0_0, %c0_1] : memref<1x16x32xf32, #tpu.memory_space<vmem>>, vector<1x16x32xf32>
    %1 = vector.shape_cast %0 : vector<1x16x32xf32> to vector<16x32xf32>
    %c0_2 = arith.constant 0 : index
    %c0_3 = arith.constant 0 : index
    %c0_4 = arith.constant 0 : index
    %2 = vector.load %arg2[%c0_2, %c0_3, %c0_4] : memref<1x128x32xf32, #tpu.memory_space<vmem>>, vector<1x128x32xf32>
    %3 = vector.shape_cast %2 : vector<1x128x32xf32> to vector<128x32xf32>
    %c0_5 = arith.constant 0 : index
    %c0_6 = arith.constant 0 : index
    %c0_7 = arith.constant 0 : index
    %4 = vector.load %arg3[%c0_5, %c0_6, %c0_7] : memref<1x1x128xf32, #tpu.memory_space<vmem>>, vector<1x1x128xf32>
    %5 = vector.shape_cast %4 : vector<1x1x128xf32> to vector<1x128xf32>
    %c0_8 = arith.constant 0 : index
    %c0_9 = arith.constant 0 : index
    %6 = vector.load %arg5[%c0_8, %c0_9] : memref<32x32xf32, #tpu.memory_space<vmem>>, vector<32x32xf32>
    %cst = arith.constant dense<0.000000e+00> : vector<16x32xf32>
    %7 = tpu.matmul %1, %6, %cst {dimension_numbers = #tpu.dot_dimension_numbers<[1], [0], [0], [1], [0, 0, 1, 1], [], []>} : vector<16x32xf32>, vector<32x32xf32>, vector<16x32xf32> -> vector<16x32xf32>
    %c0_10 = arith.constant 0 : index
    %c0_11 = arith.constant 0 : index
    %8 = vector.load %arg6[%c0_10, %c0_11] : memref<1x32xf32, #tpu.memory_space<vmem>>, vector<1x32xf32>
    %9 = vector.broadcast %8 : vector<1x32xf32> to vector<16x32xf32>
    %10 = arith.addf %7, %9 : vector<16x32xf32>
    %c0_12 = arith.constant 0 : index
    %c0_13 = arith.constant 0 : index
    %11 = vector.load %arg7[%c0_12, %c0_13] : memref<32x32xf32, #tpu.memory_space<vmem>>, vector<32x32xf32>
    %cst_14 = arith.constant dense<0.000000e+00> : vector<128x32xf32>
    %12 = tpu.matmul %3, %11, %cst_14 {dimension_numbers = #tpu.dot_dimension_numbers<[1], [0], [0], [1], [0, 0, 1, 1], [], []>} : vector<128x32xf32>, vector<32x32xf32>, vector<128x32xf32> -> vector<128x32xf32>
    %c0_15 = arith.constant 0 : index
    %c0_16 = arith.constant 0 : index
    %13 = vector.load %arg8[%c0_15, %c0_16] : memref<1x32xf32, #tpu.memory_space<vmem>>, vector<1x32xf32>
    %14 = vector.broadcast %13 : vector<1x32xf32> to vector<128x32xf32>
    %15 = arith.addf %12, %14 : vector<128x32xf32>
    %c0_17 = arith.constant 0 : index
    %c0_18 = arith.constant 0 : index
    %16 = vector.load %arg9[%c0_17, %c0_18] : memref<32x32xf32, #tpu.memory_space<vmem>>, vector<32x32xf32>
    %cst_19 = arith.constant dense<0.000000e+00> : vector<128x32xf32>
    %17 = tpu.matmul %3, %16, %cst_19 {dimension_numbers = #tpu.dot_dimension_numbers<[1], [0], [0], [1], [0, 0, 1, 1], [], []>} : vector<128x32xf32>, vector<32x32xf32>, vector<128x32xf32> -> vector<128x32xf32>
    %c0_20 = arith.constant 0 : index
    %c0_21 = arith.constant 0 : index
    %18 = vector.load %arg10[%c0_20, %c0_21] : memref<1x32xf32, #tpu.memory_space<vmem>>, vector<1x32xf32>
    %19 = vector.broadcast %18 : vector<1x32xf32> to vector<128x32xf32>
    %20 = arith.addf %17, %19 : vector<128x32xf32>
    %21 = vector.shape_cast %5 : vector<1x128xf32> to vector<1x128xf32>
    %22 = vector.broadcast %21 : vector<1x128xf32> to vector<16x128xf32>
    %23 = vector.extract_strided_slice %10 {offsets = [0, 0], sizes = [16, 8], strides = [1, 1]} : vector<16x32xf32> to vector<16x8xf32>
    %24 = vector.extract_strided_slice %15 {offsets = [0, 0], sizes = [128, 8], strides = [1, 1]} : vector<128x32xf32> to vector<128x8xf32>
    %cst_22 = arith.constant dense<0.000000e+00> : vector<16x128xf32>
    %25 = tpu.matmul %23, %24, %cst_22 {dimension_numbers = #tpu.dot_dimension_numbers<[1], [1], [0], [0], [0, 0, 1, 0], [], []>} : vector<16x8xf32>, vector<128x8xf32>, vector<16x128xf32> -> vector<16x128xf32>
    %26 = arith.addf %25, %22 : vector<16x128xf32>
    %27 = vector.extract_strided_slice %26 {offsets = [0, 0], sizes = [1, 128], strides = [1, 1]} : vector<16x128xf32> to vector<1x128xf32>
    %cst_23 = arith.constant dense<0xFF800000> : vector<16xf32>
    %28 = vector.multi_reduction <maximumf>, %26, %cst_23 [1] : vector<16x128xf32> to vector<16xf32>
    %29 = vector.shape_cast %28 : vector<16xf32> to vector<16x1xf32>
    %30 = vector.broadcast %29 : vector<16x1xf32> to vector<16x128xf32>
    %31 = arith.subf %26, %30 : vector<16x128xf32>
    %32 = math.exp %31 : vector<16x128xf32>
    %cst_24 = arith.constant dense<0.000000e+00> : vector<16xf32>
    %33 = vector.multi_reduction <add>, %32, %cst_24 [1] : vector<16x128xf32> to vector<16xf32>
    %34 = vector.shape_cast %33 : vector<16xf32> to vector<16x1xf32>
    %35 = tpu.reciprocal %34 {approx = true} : vector<16x1xf32> -> vector<16x1xf32>
    %36 = vector.broadcast %35 : vector<16x1xf32> to vector<16x128xf32>
    %37 = arith.mulf %32, %36 : vector<16x128xf32>
    %38 = vector.extract_strided_slice %20 {offsets = [0, 0], sizes = [128, 8], strides = [1, 1]} : vector<128x32xf32> to vector<128x8xf32>
    %cst_25 = arith.constant dense<0.000000e+00> : vector<16x8xf32>
    %39 = tpu.matmul %37, %38, %cst_25 {dimension_numbers = #tpu.dot_dimension_numbers<[1], [0], [0], [1], [0, 0, 1, 1], [], []>} : vector<16x128xf32>, vector<128x8xf32>, vector<16x8xf32> -> vector<16x8xf32>
    %40 = vector.extract_strided_slice %10 {offsets = [0, 8], sizes = [16, 8], strides = [1, 1]} : vector<16x32xf32> to vector<16x8xf32>
    %41 = vector.extract_strided_slice %15 {offsets = [0, 8], sizes = [128, 8], strides = [1, 1]} : vector<128x32xf32> to vector<128x8xf32>
    %cst_26 = arith.constant dense<0.000000e+00> : vector<16x128xf32>
    %42 = tpu.matmul %40, %41, %cst_26 {dimension_numbers = #tpu.dot_dimension_numbers<[1], [1], [0], [0], [0, 0, 1, 0], [], []>} : vector<16x8xf32>, vector<128x8xf32>, vector<16x128xf32> -> vector<16x128xf32>
    %43 = arith.addf %42, %22 : vector<16x128xf32>
    %44 = vector.extract_strided_slice %43 {offsets = [0, 0], sizes = [1, 128], strides = [1, 1]} : vector<16x128xf32> to vector<1x128xf32>
    %cst_27 = arith.constant dense<0xFF800000> : vector<16xf32>
    %45 = vector.multi_reduction <maximumf>, %43, %cst_27 [1] : vector<16x128xf32> to vector<16xf32>
    %46 = vector.shape_cast %45 : vector<16xf32> to vector<16x1xf32>
    %47 = vector.broadcast %46 : vector<16x1xf32> to vector<16x128xf32>
    %48 = arith.subf %43, %47 : vector<16x128xf32>
    %49 = math.exp %48 : vector<16x128xf32>
    %cst_28 = arith.constant dense<0.000000e+00> : vector<16xf32>
    %50 = vector.multi_reduction <add>, %49, %cst_28 [1] : vector<16x128xf32> to vector<16xf32>
    %51 = vector.shape_cast %50 : vector<16xf32> to vector<16x1xf32>
    %52 = tpu.reciprocal %51 {approx = true} : vector<16x1xf32> -> vector<16x1xf32>
    %53 = vector.broadcast %52 : vector<16x1xf32> to vector<16x128xf32>
    %54 = arith.mulf %49, %53 : vector<16x128xf32>
    %55 = vector.extract_strided_slice %20 {offsets = [0, 8], sizes = [128, 8], strides = [1, 1]} : vector<128x32xf32> to vector<128x8xf32>
    %cst_29 = arith.constant dense<0.000000e+00> : vector<16x8xf32>
    %56 = tpu.matmul %54, %55, %cst_29 {dimension_numbers = #tpu.dot_dimension_numbers<[1], [0], [0], [1], [0, 0, 1, 1], [], []>} : vector<16x128xf32>, vector<128x8xf32>, vector<16x8xf32> -> vector<16x8xf32>
    %57 = vector.extract_strided_slice %10 {offsets = [0, 16], sizes = [16, 8], strides = [1, 1]} : vector<16x32xf32> to vector<16x8xf32>
    %58 = vector.extract_strided_slice %15 {offsets = [0, 16], sizes = [128, 8], strides = [1, 1]} : vector<128x32xf32> to vector<128x8xf32>
    %cst_30 = arith.constant dense<0.000000e+00> : vector<16x128xf32>
    %59 = tpu.matmul %57, %58, %cst_30 {dimension_numbers = #tpu.dot_dimension_numbers<[1], [1], [0], [0], [0, 0, 1, 0], [], []>} : vector<16x8xf32>, vector<128x8xf32>, vector<16x128xf32> -> vector<16x128xf32>
    %60 = arith.addf %59, %22 : vector<16x128xf32>
    %61 = vector.extract_strided_slice %60 {offsets = [0, 0], sizes = [1, 128], strides = [1, 1]} : vector<16x128xf32> to vector<1x128xf32>
    %cst_31 = arith.constant dense<0xFF800000> : vector<16xf32>
    %62 = vector.multi_reduction <maximumf>, %60, %cst_31 [1] : vector<16x128xf32> to vector<16xf32>
    %63 = vector.shape_cast %62 : vector<16xf32> to vector<16x1xf32>
    %64 = vector.broadcast %63 : vector<16x1xf32> to vector<16x128xf32>
    %65 = arith.subf %60, %64 : vector<16x128xf32>
    %66 = math.exp %65 : vector<16x128xf32>
    %cst_32 = arith.constant dense<0.000000e+00> : vector<16xf32>
    %67 = vector.multi_reduction <add>, %66, %cst_32 [1] : vector<16x128xf32> to vector<16xf32>
    %68 = vector.shape_cast %67 : vector<16xf32> to vector<16x1xf32>
    %69 = tpu.reciprocal %68 {approx = true} : vector<16x1xf32> -> vector<16x1xf32>
    %70 = vector.broadcast %69 : vector<16x1xf32> to vector<16x128xf32>
    %71 = arith.mulf %66, %70 : vector<16x128xf32>
    %72 = vector.extract_strided_slice %20 {offsets = [0, 16], sizes = [128, 8], strides = [1, 1]} : vector<128x32xf32> to vector<128x8xf32>
    %cst_33 = arith.constant dense<0.000000e+00> : vector<16x8xf32>
    %73 = tpu.matmul %71, %72, %cst_33 {dimension_numbers = #tpu.dot_dimension_numbers<[1], [0], [0], [1], [0, 0, 1, 1], [], []>} : vector<16x128xf32>, vector<128x8xf32>, vector<16x8xf32> -> vector<16x8xf32>
    %74 = vector.extract_strided_slice %10 {offsets = [0, 24], sizes = [16, 8], strides = [1, 1]} : vector<16x32xf32> to vector<16x8xf32>
    %75 = vector.extract_strided_slice %15 {offsets = [0, 24], sizes = [128, 8], strides = [1, 1]} : vector<128x32xf32> to vector<128x8xf32>
    %cst_34 = arith.constant dense<0.000000e+00> : vector<16x128xf32>
    %76 = tpu.matmul %74, %75, %cst_34 {dimension_numbers = #tpu.dot_dimension_numbers<[1], [1], [0], [0], [0, 0, 1, 0], [], []>} : vector<16x8xf32>, vector<128x8xf32>, vector<16x128xf32> -> vector<16x128xf32>
    %77 = arith.addf %76, %22 : vector<16x128xf32>
    %78 = vector.extract_strided_slice %77 {offsets = [0, 0], sizes = [1, 128], strides = [1, 1]} : vector<16x128xf32> to vector<1x128xf32>
    %cst_35 = arith.constant dense<0xFF800000> : vector<16xf32>
    %79 = vector.multi_reduction <maximumf>, %77, %cst_35 [1] : vector<16x128xf32> to vector<16xf32>
    %80 = vector.shape_cast %79 : vector<16xf32> to vector<16x1xf32>
    %81 = vector.broadcast %80 : vector<16x1xf32> to vector<16x128xf32>
    %82 = arith.subf %77, %81 : vector<16x128xf32>
    %83 = math.exp %82 : vector<16x128xf32>
    %cst_36 = arith.constant dense<0.000000e+00> : vector<16xf32>
    %84 = vector.multi_reduction <add>, %83, %cst_36 [1] : vector<16x128xf32> to vector<16xf32>
    %85 = vector.shape_cast %84 : vector<16xf32> to vector<16x1xf32>
    %86 = tpu.reciprocal %85 {approx = true} : vector<16x1xf32> -> vector<16x1xf32>
    %87 = vector.broadcast %86 : vector<16x1xf32> to vector<16x128xf32>
    %88 = arith.mulf %83, %87 : vector<16x128xf32>
    %89 = vector.extract_strided_slice %20 {offsets = [0, 24], sizes = [128, 8], strides = [1, 1]} : vector<128x32xf32> to vector<128x8xf32>
    %cst_37 = arith.constant dense<0.000000e+00> : vector<16x8xf32>
    %90 = tpu.matmul %88, %89, %cst_37 {dimension_numbers = #tpu.dot_dimension_numbers<[1], [0], [0], [1], [0, 0, 1, 1], [], []>} : vector<16x128xf32>, vector<128x8xf32>, vector<16x8xf32> -> vector<16x8xf32>
    %91 = tpu.concatenate %39, %56, %73, %90 in 1 : vector<16x8xf32>, vector<16x8xf32>, vector<16x8xf32>, vector<16x8xf32> -> vector<16x32xf32>
    %c0_38 = arith.constant 0 : index
    %c0_39 = arith.constant 0 : index
    %92 = vector.load %arg34[%c0_38, %c0_39] : memref<16x32xf32, #tpu.memory_space<vmem>>, vector<16x32xf32>
    tpu.vector_store %arg34[%c0_38, %c0_39], %91 {strides = array<i32>} : memref<16x32xf32, #tpu.memory_space<vmem>>, vector<16x32xf32>,
    %93 = tpu.concatenate %27, %44, %61, %78 in 0 : vector<1x128xf32>, vector<1x128xf32>, vector<1x128xf32>, vector<1x128xf32> -> vector<4x128xf32>
    %c0_40 = arith.constant 0 : index
    %c0_41 = arith.constant 0 : index
    %c0_42 = arith.constant 0 : index
    %94 = vector.load %arg32[%c0_40, %c0_41, %c0_42] : memref<1x4x128xf32, #tpu.memory_space<vmem>>, vector<1x4x128xf32>
    %95 = vector.shape_cast %94 : vector<1x4x128xf32> to vector<4x128xf32>
    %96 = vector.shape_cast %93 : vector<4x128xf32> to vector<1x4x128xf32>
    tpu.vector_store %arg32[%c0_40, %c0_41, %c0_42], %96 {strides = array<i32>} : memref<1x4x128xf32, #tpu.memory_space<vmem>>, vector<1x4x128xf32>,
    %c0_43 = arith.constant 0 : index
    %c0_44 = arith.constant 0 : index
    %97 = vector.load %arg34[%c0_43, %c0_44] : memref<16x32xf32, #tpu.memory_space<vmem>>, vector<16x32xf32>
    %c0_45 = arith.constant 0 : index
    %c0_46 = arith.constant 0 : index
    %98 = vector.load %arg11[%c0_45, %c0_46] : memref<32x32xf32, #tpu.memory_space<vmem>>, vector<32x32xf32>
    %cst_47 = arith.constant dense<0.000000e+00> : vector<16x32xf32>
    %99 = tpu.matmul %97, %98, %cst_47 {dimension_numbers = #tpu.dot_dimension_numbers<[1], [0], [0], [1], [0, 0, 1, 1], [], []>} : vector<16x32xf32>, vector<32x32xf32>, vector<16x32xf32> -> vector<16x32xf32>
    %c0_48 = arith.constant 0 : index
    %c0_49 = arith.constant 0 : index
    %100 = vector.load %arg12[%c0_48, %c0_49] : memref<1x32xf32, #tpu.memory_space<vmem>>, vector<1x32xf32>
    %101 = vector.broadcast %100 : vector<1x32xf32> to vector<16x32xf32>
    %102 = arith.addf %99, %101 : vector<16x32xf32>
    %103 = arith.addf %102, %1 : vector<16x32xf32>
    %c0_50 = arith.constant 0 : index
    %c0_51 = arith.constant 0 : index
    %104 = vector.load %arg13[%c0_50, %c0_51] : memref<1x32xf32, #tpu.memory_space<vmem>>, vector<1x32xf32>
    %c0_52 = arith.constant 0 : index
    %c0_53 = arith.constant 0 : index
    %105 = vector.load %arg14[%c0_52, %c0_53] : memref<1x32xf32, #tpu.memory_space<vmem>>, vector<1x32xf32>
    %cst_54 = arith.constant dense<0.000000e+00> : vector<16xf32>
    %106 = vector.multi_reduction <add>, %103, %cst_54 [1] : vector<16x32xf32> to vector<16xf32>
    %107 = vector.shape_cast %106 : vector<16xf32> to vector<16x1xf32>
    %cst_55 = arith.constant 3.200000e+01 : f32
    %108 = vector.broadcast %cst_55 : f32 to vector<16x1xf32>
    %109 = arith.divf %107, %108 : vector<16x1xf32>
    %110 = vector.broadcast %109 : vector<16x1xf32> to vector<16x32xf32>
    %111 = arith.subf %103, %110 : vector<16x32xf32>
    %112 = arith.mulf %111, %111 : vector<16x32xf32>
    %cst_56 = arith.constant dense<0.000000e+00> : vector<16xf32>
    %113 = vector.multi_reduction <add>, %112, %cst_56 [1] : vector<16x32xf32> to vector<16xf32>
    %114 = vector.shape_cast %113 : vector<16xf32> to vector<16x1xf32>
    %cst_57 = arith.constant 3.200000e+01 : f32
    %115 = vector.broadcast %cst_57 : f32 to vector<16x1xf32>
    %116 = arith.divf %114, %115 : vector<16x1xf32>
    %117 = vector.broadcast %109 : vector<16x1xf32> to vector<16x32xf32>
    %118 = arith.subf %103, %117 : vector<16x32xf32>
    %cst_58 = arith.constant 9.99999996E-13 : f32
    %119 = vector.broadcast %cst_58 : f32 to vector<16x1xf32>
    %120 = arith.addf %116, %119 : vector<16x1xf32>
    %121 = math.rsqrt %120 : vector<16x1xf32>
    %122 = vector.broadcast %121 : vector<16x1xf32> to vector<16x32xf32>
    %123 = arith.mulf %118, %122 : vector<16x32xf32>
    %124 = vector.broadcast %104 : vector<1x32xf32> to vector<16x32xf32>
    %125 = arith.mulf %123, %124 : vector<16x32xf32>
    %126 = vector.broadcast %105 : vector<1x32xf32> to vector<16x32xf32>
    %127 = arith.addf %125, %126 : vector<16x32xf32>
    %c0_59 = arith.constant 0 : index
    %c0_60 = arith.constant 0 : index
    %c0_61 = arith.constant 0 : index
    %128 = vector.load %arg4[%c0_59, %c0_60, %c0_61] : memref<1x1x16xf32, #tpu.memory_space<vmem>>, vector<1x1x16xf32>
    %129 = vector.shape_cast %128 : vector<1x1x16xf32> to vector<1x16xf32>
    %c0_62 = arith.constant 0 : index
    %c0_63 = arith.constant 0 : index
    %130 = vector.load %arg15[%c0_62, %c0_63] : memref<32x32xf32, #tpu.memory_space<vmem>>, vector<32x32xf32>
    %cst_64 = arith.constant dense<0.000000e+00> : vector<16x32xf32>
    %131 = tpu.matmul %127, %130, %cst_64 {dimension_numbers = #tpu.dot_dimension_numbers<[1], [0], [0], [1], [0, 0, 1, 1], [], []>} : vector<16x32xf32>, vector<32x32xf32>, vector<16x32xf32> -> vector<16x32xf32>
    %c0_65 = arith.constant 0 : index
    %c0_66 = arith.constant 0 : index
    %132 = vector.load %arg16[%c0_65, %c0_66] : memref<1x32xf32, #tpu.memory_space<vmem>>, vector<1x32xf32>
    %133 = vector.broadcast %132 : vector<1x32xf32> to vector<16x32xf32>
    %134 = arith.addf %131, %133 : vector<16x32xf32>
    %c0_67 = arith.constant 0 : index
    %c0_68 = arith.constant 0 : index
    %135 = vector.load %arg17[%c0_67, %c0_68] : memref<32x32xf32, #tpu.memory_space<vmem>>, vector<32x32xf32>
    %cst_69 = arith.constant dense<0.000000e+00> : vector<16x32xf32>
    %136 = tpu.matmul %127, %135, %cst_69 {dimension_numbers = #tpu.dot_dimension_numbers<[1], [0], [0], [1], [0, 0, 1, 1], [], []>} : vector<16x32xf32>, vector<32x32xf32>, vector<16x32xf32> -> vector<16x32xf32>
    %c0_70 = arith.constant 0 : index
    %c0_71 = arith.constant 0 : index
    %137 = vector.load %arg18[%c0_70, %c0_71] : memref<1x32xf32, #tpu.memory_space<vmem>>, vector<1x32xf32>
    %138 = vector.broadcast %137 : vector<1x32xf32> to vector<16x32xf32>
    %139 = arith.addf %136, %138 : vector<16x32xf32>
    %c0_72 = arith.constant 0 : index
    %c0_73 = arith.constant 0 : index
    %140 = vector.load %arg19[%c0_72, %c0_73] : memref<32x32xf32, #tpu.memory_space<vmem>>, vector<32x32xf32>
    %cst_74 = arith.constant dense<0.000000e+00> : vector<16x32xf32>
    %141 = tpu.matmul %127, %140, %cst_74 {dimension_numbers = #tpu.dot_dimension_numbers<[1], [0], [0], [1], [0, 0, 1, 1], [], []>} : vector<16x32xf32>, vector<32x32xf32>, vector<16x32xf32> -> vector<16x32xf32>
    %c0_75 = arith.constant 0 : index
    %c0_76 = arith.constant 0 : index
    %142 = vector.load %arg20[%c0_75, %c0_76] : memref<1x32xf32, #tpu.memory_space<vmem>>, vector<1x32xf32>
    %143 = vector.broadcast %142 : vector<1x32xf32> to vector<16x32xf32>
    %144 = arith.addf %141, %143 : vector<16x32xf32>
    %145 = vector.shape_cast %129 : vector<1x16xf32> to vector<1x16xf32>
    %146 = vector.broadcast %145 : vector<1x16xf32> to vector<16x16xf32>
    %147 = vector.extract_strided_slice %134 {offsets = [0, 0], sizes = [16, 8], strides = [1, 1]} : vector<16x32xf32> to vector<16x8xf32>
    %148 = vector.extract_strided_slice %139 {offsets = [0, 0], sizes = [16, 8], strides = [1, 1]} : vector<16x32xf32> to vector<16x8xf32>
    %cst_77 = arith.constant dense<0.000000e+00> : vector<16x16xf32>
    %149 = tpu.matmul %147, %148, %cst_77 {dimension_numbers = #tpu.dot_dimension_numbers<[1], [1], [0], [0], [0, 0, 1, 0], [], []>} : vector<16x8xf32>, vector<16x8xf32>, vector<16x16xf32> -> vector<16x16xf32>
    %150 = arith.addf %149, %146 : vector<16x16xf32>
    %151 = vector.extract_strided_slice %150 {offsets = [0, 0], sizes = [1, 16], strides = [1, 1]} : vector<16x16xf32> to vector<1x16xf32>
    %cst_78 = arith.constant dense<0xFF800000> : vector<16xf32>
    %152 = vector.multi_reduction <maximumf>, %150, %cst_78 [1] : vector<16x16xf32> to vector<16xf32>
    %153 = vector.shape_cast %152 : vector<16xf32> to vector<16x1xf32>
    %154 = vector.broadcast %153 : vector<16x1xf32> to vector<16x16xf32>
    %155 = arith.subf %150, %154 : vector<16x16xf32>
    %156 = math.exp %155 : vector<16x16xf32>
    %cst_79 = arith.constant dense<0.000000e+00> : vector<16xf32>
    %157 = vector.multi_reduction <add>, %156, %cst_79 [1] : vector<16x16xf32> to vector<16xf32>
    %158 = vector.shape_cast %157 : vector<16xf32> to vector<16x1xf32>
    %159 = tpu.reciprocal %158 {approx = true} : vector<16x1xf32> -> vector<16x1xf32>
    %160 = vector.broadcast %159 : vector<16x1xf32> to vector<16x16xf32>
    %161 = arith.mulf %156, %160 : vector<16x16xf32>
    %162 = vector.extract_strided_slice %144 {offsets = [0, 0], sizes = [16, 8], strides = [1, 1]} : vector<16x32xf32> to vector<16x8xf32>
    %cst_80 = arith.constant dense<0.000000e+00> : vector<16x8xf32>
    %163 = tpu.matmul %161, %162, %cst_80 {dimension_numbers = #tpu.dot_dimension_numbers<[1], [0], [0], [1], [0, 0, 1, 1], [], []>} : vector<16x16xf32>, vector<16x8xf32>, vector<16x8xf32> -> vector<16x8xf32>
    %164 = vector.extract_strided_slice %134 {offsets = [0, 8], sizes = [16, 8], strides = [1, 1]} : vector<16x32xf32> to vector<16x8xf32>
    %165 = vector.extract_strided_slice %139 {offsets = [0, 8], sizes = [16, 8], strides = [1, 1]} : vector<16x32xf32> to vector<16x8xf32>
    %cst_81 = arith.constant dense<0.000000e+00> : vector<16x16xf32>
    %166 = tpu.matmul %164, %165, %cst_81 {dimension_numbers = #tpu.dot_dimension_numbers<[1], [1], [0], [0], [0, 0, 1, 0], [], []>} : vector<16x8xf32>, vector<16x8xf32>, vector<16x16xf32> -> vector<16x16xf32>
    %167 = arith.addf %166, %146 : vector<16x16xf32>
    %168 = vector.extract_strided_slice %167 {offsets = [0, 0], sizes = [1, 16], strides = [1, 1]} : vector<16x16xf32> to vector<1x16xf32>
    %cst_82 = arith.constant dense<0xFF800000> : vector<16xf32>
    %169 = vector.multi_reduction <maximumf>, %167, %cst_82 [1] : vector<16x16xf32> to vector<16xf32>
    %170 = vector.shape_cast %169 : vector<16xf32> to vector<16x1xf32>
    %171 = vector.broadcast %170 : vector<16x1xf32> to vector<16x16xf32>
    %172 = arith.subf %167, %171 : vector<16x16xf32>
    %173 = math.exp %172 : vector<16x16xf32>
    %cst_83 = arith.constant dense<0.000000e+00> : vector<16xf32>
    %174 = vector.multi_reduction <add>, %173, %cst_83 [1] : vector<16x16xf32> to vector<16xf32>
    %175 = vector.shape_cast %174 : vector<16xf32> to vector<16x1xf32>
    %176 = tpu.reciprocal %175 {approx = true} : vector<16x1xf32> -> vector<16x1xf32>
    %177 = vector.broadcast %176 : vector<16x1xf32> to vector<16x16xf32>
    %178 = arith.mulf %173, %177 : vector<16x16xf32>
    %179 = vector.extract_strided_slice %144 {offsets = [0, 8], sizes = [16, 8], strides = [1, 1]} : vector<16x32xf32> to vector<16x8xf32>
    %cst_84 = arith.constant dense<0.000000e+00> : vector<16x8xf32>
    %180 = tpu.matmul %178, %179, %cst_84 {dimension_numbers = #tpu.dot_dimension_numbers<[1], [0], [0], [1], [0, 0, 1, 1], [], []>} : vector<16x16xf32>, vector<16x8xf32>, vector<16x8xf32> -> vector<16x8xf32>
    %181 = vector.extract_strided_slice %134 {offsets = [0, 16], sizes = [16, 8], strides = [1, 1]} : vector<16x32xf32> to vector<16x8xf32>
    %182 = vector.extract_strided_slice %139 {offsets = [0, 16], sizes = [16, 8], strides = [1, 1]} : vector<16x32xf32> to vector<16x8xf32>
    %cst_85 = arith.constant dense<0.000000e+00> : vector<16x16xf32>
    %183 = tpu.matmul %181, %182, %cst_85 {dimension_numbers = #tpu.dot_dimension_numbers<[1], [1], [0], [0], [0, 0, 1, 0], [], []>} : vector<16x8xf32>, vector<16x8xf32>, vector<16x16xf32> -> vector<16x16xf32>
    %184 = arith.addf %183, %146 : vector<16x16xf32>
    %185 = vector.extract_strided_slice %184 {offsets = [0, 0], sizes = [1, 16], strides = [1, 1]} : vector<16x16xf32> to vector<1x16xf32>
    %cst_86 = arith.constant dense<0xFF800000> : vector<16xf32>
    %186 = vector.multi_reduction <maximumf>, %184, %cst_86 [1] : vector<16x16xf32> to vector<16xf32>
    %187 = vector.shape_cast %186 : vector<16xf32> to vector<16x1xf32>
    %188 = vector.broadcast %187 : vector<16x1xf32> to vector<16x16xf32>
    %189 = arith.subf %184, %188 : vector<16x16xf32>
    %190 = math.exp %189 : vector<16x16xf32>
    %cst_87 = arith.constant dense<0.000000e+00> : vector<16xf32>
    %191 = vector.multi_reduction <add>, %190, %cst_87 [1] : vector<16x16xf32> to vector<16xf32>
    %192 = vector.shape_cast %191 : vector<16xf32> to vector<16x1xf32>
    %193 = tpu.reciprocal %192 {approx = true} : vector<16x1xf32> -> vector<16x1xf32>
    %194 = vector.broadcast %193 : vector<16x1xf32> to vector<16x16xf32>
    %195 = arith.mulf %190, %194 : vector<16x16xf32>
    %196 = vector.extract_strided_slice %144 {offsets = [0, 16], sizes = [16, 8], strides = [1, 1]} : vector<16x32xf32> to vector<16x8xf32>
    %cst_88 = arith.constant dense<0.000000e+00> : vector<16x8xf32>
    %197 = tpu.matmul %195, %196, %cst_88 {dimension_numbers = #tpu.dot_dimension_numbers<[1], [0], [0], [1], [0, 0, 1, 1], [], []>} : vector<16x16xf32>, vector<16x8xf32>, vector<16x8xf32> -> vector<16x8xf32>
    %198 = vector.extract_strided_slice %134 {offsets = [0, 24], sizes = [16, 8], strides = [1, 1]} : vector<16x32xf32> to vector<16x8xf32>
    %199 = vector.extract_strided_slice %139 {offsets = [0, 24], sizes = [16, 8], strides = [1, 1]} : vector<16x32xf32> to vector<16x8xf32>
    %cst_89 = arith.constant dense<0.000000e+00> : vector<16x16xf32>
    %200 = tpu.matmul %198, %199, %cst_89 {dimension_numbers = #tpu.dot_dimension_numbers<[1], [1], [0], [0], [0, 0, 1, 0], [], []>} : vector<16x8xf32>, vector<16x8xf32>, vector<16x16xf32> -> vector<16x16xf32>
    %201 = arith.addf %200, %146 : vector<16x16xf32>
    %202 = vector.extract_strided_slice %201 {offsets = [0, 0], sizes = [1, 16], strides = [1, 1]} : vector<16x16xf32> to vector<1x16xf32>
    %cst_90 = arith.constant dense<0xFF800000> : vector<16xf32>
    %203 = vector.multi_reduction <maximumf>, %201, %cst_90 [1] : vector<16x16xf32> to vector<16xf32>
    %204 = vector.shape_cast %203 : vector<16xf32> to vector<16x1xf32>
    %205 = vector.broadcast %204 : vector<16x1xf32> to vector<16x16xf32>
    %206 = arith.subf %201, %205 : vector<16x16xf32>
    %207 = math.exp %206 : vector<16x16xf32>
    %cst_91 = arith.constant dense<0.000000e+00> : vector<16xf32>
    %208 = vector.multi_reduction <add>, %207, %cst_91 [1] : vector<16x16xf32> to vector<16xf32>
    %209 = vector.shape_cast %208 : vector<16xf32> to vector<16x1xf32>
    %210 = tpu.reciprocal %209 {approx = true} : vector<16x1xf32> -> vector<16x1xf32>
    %211 = vector.broadcast %210 : vector<16x1xf32> to vector<16x16xf32>
    %212 = arith.mulf %207, %211 : vector<16x16xf32>
    %213 = vector.extract_strided_slice %144 {offsets = [0, 24], sizes = [16, 8], strides = [1, 1]} : vector<16x32xf32> to vector<16x8xf32>
    %cst_92 = arith.constant dense<0.000000e+00> : vector<16x8xf32>
    %214 = tpu.matmul %212, %213, %cst_92 {dimension_numbers = #tpu.dot_dimension_numbers<[1], [0], [0], [1], [0, 0, 1, 1], [], []>} : vector<16x16xf32>, vector<16x8xf32>, vector<16x8xf32> -> vector<16x8xf32>
    %215 = tpu.concatenate %163, %180, %197, %214 in 1 : vector<16x8xf32>, vector<16x8xf32>, vector<16x8xf32>, vector<16x8xf32> -> vector<16x32xf32>
    %c0_93 = arith.constant 0 : index
    %c0_94 = arith.constant 0 : index
    %216 = vector.load %arg34[%c0_93, %c0_94] : memref<16x32xf32, #tpu.memory_space<vmem>>, vector<16x32xf32>
    tpu.vector_store %arg34[%c0_93, %c0_94], %215 {strides = array<i32>} : memref<16x32xf32, #tpu.memory_space<vmem>>, vector<16x32xf32>,
    %217 = tpu.concatenate %151, %168, %185, %202 in 0 : vector<1x16xf32>, vector<1x16xf32>, vector<1x16xf32>, vector<1x16xf32> -> vector<4x16xf32>
    %c0_95 = arith.constant 0 : index
    %c0_96 = arith.constant 0 : index
    %c0_97 = arith.constant 0 : index
    %218 = vector.load %arg33[%c0_95, %c0_96, %c0_97] : memref<1x4x16xf32, #tpu.memory_space<vmem>>, vector<1x4x16xf32>
    %219 = vector.shape_cast %218 : vector<1x4x16xf32> to vector<4x16xf32>
    %220 = vector.shape_cast %217 : vector<4x16xf32> to vector<1x4x16xf32>
    tpu.vector_store %arg33[%c0_95, %c0_96, %c0_97], %220 {strides = array<i32>} : memref<1x4x16xf32, #tpu.memory_space<vmem>>, vector<1x4x16xf32>,
    %c0_98 = arith.constant 0 : index
    %c0_99 = arith.constant 0 : index
    %221 = vector.load %arg34[%c0_98, %c0_99] : memref<16x32xf32, #tpu.memory_space<vmem>>, vector<16x32xf32>
    %c0_100 = arith.constant 0 : index
    %c0_101 = arith.constant 0 : index
    %222 = vector.load %arg21[%c0_100, %c0_101] : memref<32x32xf32, #tpu.memory_space<vmem>>, vector<32x32xf32>
    %cst_102 = arith.constant dense<0.000000e+00> : vector<16x32xf32>
    %223 = tpu.matmul %221, %222, %cst_102 {dimension_numbers = #tpu.dot_dimension_numbers<[1], [0], [0], [1], [0, 0, 1, 1], [], []>} : vector<16x32xf32>, vector<32x32xf32>, vector<16x32xf32> -> vector<16x32xf32>
    %c0_103 = arith.constant 0 : index
    %c0_104 = arith.constant 0 : index
    %224 = vector.load %arg22[%c0_103, %c0_104] : memref<1x32xf32, #tpu.memory_space<vmem>>, vector<1x32xf32>
    %225 = vector.broadcast %224 : vector<1x32xf32> to vector<16x32xf32>
    %226 = arith.addf %223, %225 : vector<16x32xf32>
    %227 = arith.addf %226, %127 : vector<16x32xf32>
    %c0_105 = arith.constant 0 : index
    %c0_106 = arith.constant 0 : index
    %228 = vector.load %arg23[%c0_105, %c0_106] : memref<1x32xf32, #tpu.memory_space<vmem>>, vector<1x32xf32>
    %c0_107 = arith.constant 0 : index
    %c0_108 = arith.constant 0 : index
    %229 = vector.load %arg24[%c0_107, %c0_108] : memref<1x32xf32, #tpu.memory_space<vmem>>, vector<1x32xf32>
    %cst_109 = arith.constant dense<0.000000e+00> : vector<16xf32>
    %230 = vector.multi_reduction <add>, %227, %cst_109 [1] : vector<16x32xf32> to vector<16xf32>
    %231 = vector.shape_cast %230 : vector<16xf32> to vector<16x1xf32>
    %cst_110 = arith.constant 3.200000e+01 : f32
    %232 = vector.broadcast %cst_110 : f32 to vector<16x1xf32>
    %233 = arith.divf %231, %232 : vector<16x1xf32>
    %234 = vector.broadcast %233 : vector<16x1xf32> to vector<16x32xf32>
    %235 = arith.subf %227, %234 : vector<16x32xf32>
    %236 = arith.mulf %235, %235 : vector<16x32xf32>
    %cst_111 = arith.constant dense<0.000000e+00> : vector<16xf32>
    %237 = vector.multi_reduction <add>, %236, %cst_111 [1] : vector<16x32xf32> to vector<16xf32>
    %238 = vector.shape_cast %237 : vector<16xf32> to vector<16x1xf32>
    %cst_112 = arith.constant 3.200000e+01 : f32
    %239 = vector.broadcast %cst_112 : f32 to vector<16x1xf32>
    %240 = arith.divf %238, %239 : vector<16x1xf32>
    %241 = vector.broadcast %233 : vector<16x1xf32> to vector<16x32xf32>
    %242 = arith.subf %227, %241 : vector<16x32xf32>
    %cst_113 = arith.constant 9.99999996E-13 : f32
    %243 = vector.broadcast %cst_113 : f32 to vector<16x1xf32>
    %244 = arith.addf %240, %243 : vector<16x1xf32>
    %245 = math.rsqrt %244 : vector<16x1xf32>
    %246 = vector.broadcast %245 : vector<16x1xf32> to vector<16x32xf32>
    %247 = arith.mulf %242, %246 : vector<16x32xf32>
    %248 = vector.broadcast %228 : vector<1x32xf32> to vector<16x32xf32>
    %249 = arith.mulf %247, %248 : vector<16x32xf32>
    %250 = vector.broadcast %229 : vector<1x32xf32> to vector<16x32xf32>
    %251 = arith.addf %249, %250 : vector<16x32xf32>
    %c0_114 = arith.constant 0 : index
    %c0_115 = arith.constant 0 : index
    %252 = vector.load %arg25[%c0_114, %c0_115] : memref<32x64xf32, #tpu.memory_space<vmem>>, vector<32x64xf32>
    %cst_116 = arith.constant dense<0.000000e+00> : vector<16x64xf32>
    %253 = tpu.matmul %251, %252, %cst_116 {dimension_numbers = #tpu.dot_dimension_numbers<[1], [0], [0], [1], [0, 0, 1, 1], [], []>} : vector<16x32xf32>, vector<32x64xf32>, vector<16x64xf32> -> vector<16x64xf32>
    %c0_117 = arith.constant 0 : index
    %c0_118 = arith.constant 0 : index
    %254 = vector.load %arg26[%c0_117, %c0_118] : memref<1x64xf32, #tpu.memory_space<vmem>>, vector<1x64xf32>
    %255 = vector.broadcast %254 : vector<1x64xf32> to vector<16x64xf32>
    %256 = arith.addf %253, %255 : vector<16x64xf32>
    %cst_119 = arith.constant 5.000000e-01 : f32
    %257 = vector.broadcast %cst_119 : f32 to vector<16x64xf32>
    %258 = arith.mulf %256, %257 : vector<16x64xf32>
    %cst_120 = arith.constant 1.41421354 : f32
    %259 = vector.broadcast %cst_120 : f32 to vector<16x64xf32>
    %260 = arith.divf %256, %259 : vector<16x64xf32>
    %261 = math.erf %260 : vector<16x64xf32>
    %cst_121 = arith.constant 1.000000e+00 : f32
    %262 = vector.broadcast %cst_121 : f32 to vector<16x64xf32>
    %263 = arith.addf %262, %261 : vector<16x64xf32>
    %264 = arith.mulf %258, %263 : vector<16x64xf32>
    %c0_122 = arith.constant 0 : index
    %c0_123 = arith.constant 0 : index
    %265 = vector.load %arg27[%c0_122, %c0_123] : memref<64x32xf32, #tpu.memory_space<vmem>>, vector<64x32xf32>
    %cst_124 = arith.constant dense<0.000000e+00> : vector<16x32xf32>
    %266 = tpu.matmul %264, %265, %cst_124 {dimension_numbers = #tpu.dot_dimension_numbers<[1], [0], [0], [1], [0, 0, 1, 1], [], []>} : vector<16x64xf32>, vector<64x32xf32>, vector<16x32xf32> -> vector<16x32xf32>
    %c0_125 = arith.constant 0 : index
    %c0_126 = arith.constant 0 : index
    %267 = vector.load %arg28[%c0_125, %c0_126] : memref<1x32xf32, #tpu.memory_space<vmem>>, vector<1x32xf32>
    %268 = vector.broadcast %267 : vector<1x32xf32> to vector<16x32xf32>
    %269 = arith.addf %266, %268 : vector<16x32xf32>
    %270 = arith.addf %269, %251 : vector<16x32xf32>
    %c0_127 = arith.constant 0 : index
    %c0_128 = arith.constant 0 : index
    %271 = vector.load %arg29[%c0_127, %c0_128] : memref<1x32xf32, #tpu.memory_space<vmem>>, vector<1x32xf32>
    %c0_129 = arith.constant 0 : index
    %c0_130 = arith.constant 0 : index
    %272 = vector.load %arg30[%c0_129, %c0_130] : memref<1x32xf32, #tpu.memory_space<vmem>>, vector<1x32xf32>
    %cst_131 = arith.constant dense<0.000000e+00> : vector<16xf32>
    %273 = vector.multi_reduction <add>, %270, %cst_131 [1] : vector<16x32xf32> to vector<16xf32>
    %274 = vector.shape_cast %273 : vector<16xf32> to vector<16x1xf32>
    %cst_132 = arith.constant 3.200000e+01 : f32
    %275 = vector.broadcast %cst_132 : f32 to vector<16x1xf32>
    %276 = arith.divf %274, %275 : vector<16x1xf32>
    %277 = vector.broadcast %276 : vector<16x1xf32> to vector<16x32xf32>
    %278 = arith.subf %270, %277 : vector<16x32xf32>
    %279 = arith.mulf %278, %278 : vector<16x32xf32>
    %cst_133 = arith.constant dense<0.000000e+00> : vector<16xf32>
    %280 = vector.multi_reduction <add>, %279, %cst_133 [1] : vector<16x32xf32> to vector<16xf32>
    %281 = vector.shape_cast %280 : vector<16xf32> to vector<16x1xf32>
    %cst_134 = arith.constant 3.200000e+01 : f32
    %282 = vector.broadcast %cst_134 : f32 to vector<16x1xf32>
    %283 = arith.divf %281, %282 : vector<16x1xf32>
    %284 = vector.broadcast %276 : vector<16x1xf32> to vector<16x32xf32>
    %285 = arith.subf %270, %284 : vector<16x32xf32>
    %cst_135 = arith.constant 9.99999996E-13 : f32
    %286 = vector.broadcast %cst_135 : f32 to vector<16x1xf32>
    %287 = arith.addf %283, %286 : vector<16x1xf32>
    %288 = math.rsqrt %287 : vector<16x1xf32>
    %289 = vector.broadcast %288 : vector<16x1xf32> to vector<16x32xf32>
    %290 = arith.mulf %285, %289 : vector<16x32xf32>
    %291 = vector.broadcast %271 : vector<1x32xf32> to vector<16x32xf32>
    %292 = arith.mulf %290, %291 : vector<16x32xf32>
    %293 = vector.broadcast %272 : vector<1x32xf32> to vector<16x32xf32>
    %294 = arith.addf %292, %293 : vector<16x32xf32>
    %c0_136 = arith.constant 0 : index
    %c0_137 = arith.constant 0 : index
    %c0_138 = arith.constant 0 : index
    %295 = vector.load %arg31[%c0_136, %c0_137, %c0_138] : memref<1x16x32xf32, #tpu.memory_space<vmem>>, vector<1x16x32xf32>
    %296 = vector.shape_cast %295 : vector<1x16x32xf32> to vector<16x32xf32>
    %297 = vector.shape_cast %294 : vector<16x32xf32> to vector<1x16x32xf32>
    tpu.vector_store %arg31[%c0_136, %c0_137, %c0_138], %297 {strides = array<i32>} : memref<1x16x32xf32, #tpu.memory_space<vmem>>, vector<1x16x32xf32>,
    return
  }
  func.func @transform_0(%arg0: i32) -> (i32, i32, i32) {
    %c0_i32 = arith.constant 0 : i32
    %c0_i32_0 = arith.constant 0 : i32
    %c0_i32_1 = arith.constant 0 : i32
    return %arg0, %c0_i32, %c0_i32_0 : i32, i32, i32
  }
  func.func @transform_1(%arg0: i32) -> (i32, i32, i32) {
    %c0_i32 = arith.constant 0 : i32
    %c0_i32_0 = arith.constant 0 : i32
    %c0_i32_1 = arith.constant 0 : i32
    return %arg0, %c0_i32, %c0_i32_0 : i32, i32, i32
  }
  func.func @transform_2(%arg0: i32) -> (i32, i32, i32) {
    %c0_i32 = arith.constant 0 : i32
    %c0_i32_0 = arith.constant 0 : i32
    %c0_i32_1 = arith.constant 0 : i32
    return %arg0, %c0_i32, %c0_i32_0 : i32, i32, i32
  }
  func.func @transform_3(%arg0: i32) -> (i32, i32, i32) {
    %c0_i32 = arith.constant 0 : i32
    %c0_i32_0 = arith.constant 0 : i32
    %c0_i32_1 = arith.constant 0 : i32
    return %arg0, %c0_i32, %c0_i32_0 : i32, i32, i32
  }
  func.func @transform_4(%arg0: i32) -> (i32, i32) {
    %c0_i32 = arith.constant 0 : i32
    %c0_i32_0 = arith.constant 0 : i32
    %c0_i32_1 = arith.constant 0 : i32
    return %c0_i32, %c0_i32_0 : i32, i32
  }
  func.func @transform_5(%arg0: i32) -> (i32, i32) {
    %c0_i32 = arith.constant 0 : i32
    %c0_i32_0 = arith.constant 0 : i32
    %c0_i32_1 = arith.constant 0 : i32
    return %c0_i32, %c0_i32_0 : i32, i32
  }
  func.func @transform_6(%arg0: i32) -> (i32, i32) {
    %c0_i32 = arith.constant 0 : i32
    %c0_i32_0 = arith.constant 0 : i32
    %c0_i32_1 = arith.constant 0 : i32
    return %c0_i32, %c0_i32_0 : i32, i32
  }
  func.func @transform_7(%arg0: i32) -> (i32, i32) {
    %c0_i32 = arith.constant 0 : i32
    %c0_i32_0 = arith.constant 0 : i32
    %c0_i32_1 = arith.constant 0 : i32
    return %c0_i32, %c0_i32_0 : i32, i32
  }
  func.func @transform_8(%arg0: i32) -> (i32, i32) {
    %c0_i32 = arith.constant 0 : i32
    %c0_i32_0 = arith.constant 0 : i32
    %c0_i32_1 = arith.constant 0 : i32
    return %c0_i32, %c0_i32_0 : i32, i32
  }
  func.func @transform_9(%arg0: i32) -> (i32, i32) {
    %c0_i32 = arith.constant 0 : i32
    %c0_i32_0 = arith.constant 0 : i32
    %c0_i32_1 = arith.constant 0 : i32
    return %c0_i32, %c0_i32_0 : i32, i32
  }
  func.func @transform_10(%arg0: i32) -> (i32, i32) {
    %c0_i32 = arith.constant 0 : i32
    %c0_i32_0 = arith.constant 0 : i32
    %c0_i32_1 = arith.constant 0 : i32
    return %c0_i32, %c0_i32_0 : i32, i32
  }
  func.func @transform_11(%arg0: i32) -> (i32, i32) {
    %c0_i32 = arith.constant 0 : i32
    %c0_i32_0 = arith.constant 0 : i32
    %c0_i32_1 = arith.constant 0 : i32
    return %c0_i32, %c0_i32_0 : i32, i32
  }
  func.func @transform_12(%arg0: i32) -> (i32, i32) {
    %c0_i32 = arith.constant 0 : i32
    %c0_i32_0 = arith.constant 0 : i32
    %c0_i32_1 = arith.constant 0 : i32
    return %c0_i32, %c0_i32_0 : i32, i32
  }
  func.func @transform_13(%arg0: i32) -> (i32, i32) {
    %c0_i32 = arith.constant 0 : i32
    %c0_i32_0 = arith.constant 0 : i32
    %c0_i32_1 = arith.constant 0 : i32
    return %c0_i32, %c0_i32_0 : i32, i32
  }
  func.func @transform_14(%arg0: i32) -> (i32, i32) {
    %c0_i32 = arith.constant 0 : i32
    %c0_i32_0 = arith.constant 0 : i32
    %c0_i32_1 = arith.constant 0 : i32
    return %c0_i32, %c0_i32_0 : i32, i32
  }
  func.func @transform_15(%arg0: i32) -> (i32, i32) {
    %c0_i32 = arith.constant 0 : i32
    %c0_i32_0 = arith.constant 0 : i32
    %c0_i32_1 = arith.constant 0 : i32
    return %c0_i32, %c0_i32_0 : i32, i32
  }
  func.func @transform_16(%arg0: i32) -> (i32, i32) {
    %c0_i32 = arith.constant 0 : i32
    %c0_i32_0 = arith.constant 0 : i32
    %c0_i32_1 = arith.constant 0 : i32
    return %c0_i32, %c0_i32_0 : i32, i32
  }
  func.func @transform_17(%arg0: i32) -> (i32, i32) {
    %c0_i32 = arith.constant 0 : i32
    %c0_i32_0 = arith.constant 0 : i32
    %c0_i32_1 = arith.constant 0 : i32
    return %c0_i32, %c0_i32_0 : i32, i32
  }
  func.func @transform_18(%arg0: i32) -> (i32, i32) {
    %c0_i32 = arith.constant 0 : i32
    %c0_i32_0 = arith.constant 0 : i32
    %c0_i32_1 = arith.constant 0 : i32
    return %c0_i32, %c0_i32_0 : i32, i32
  }
  func.func @transform_19(%arg0: i32) -> (i32, i32) {
    %c0_i32 = arith.constant 0 : i32
    %c0_i32_0 = arith.constant 0 : i32
    %c0_i32_1 = arith.constant 0 : i32
    return %c0_i32, %c0_i32_0 : i32, i32
  }
  func.func @transform_20(%arg0: i32) -> (i32, i32) {
    %c0_i32 = arith.constant 0 : i32
    %c0_i32_0 = arith.constant 0 : i32
    %c0_i32_1 = arith.constant 0 : i32
    return %c0_i32, %c0_i32_0 : i32, i32
  }
  func.func @transform_21(%arg0: i32) -> (i32, i32) {
    %c0_i32 = arith.constant 0 : i32
    %c0_i32_0 = arith.constant 0 : i32
    %c0_i32_1 = arith.constant 0 : i32
    return %c0_i32, %c0_i32_0 : i32, i32
  }
  func.func @transform_22(%arg0: i32) -> (i32, i32) {
    %c0_i32 = arith.constant 0 : i32
    %c0_i32_0 = arith.constant 0 : i32
    %c0_i32_1 = arith.constant 0 : i32
    return %c0_i32, %c0_i32_0 : i32, i32
  }
  func.func @transform_23(%arg0: i32) -> (i32, i32) {
    %c0_i32 = arith.constant 0 : i32
    %c0_i32_0 = arith.constant 0 : i32
    %c0_i32_1 = arith.constant 0 : i32
    return %c0_i32, %c0_i32_0 : i32, i32
  }
  func.func @transform_24(%arg0: i32) -> (i32, i32) {
    %c0_i32 = arith.constant 0 : i32
    %c0_i32_0 = arith.constant 0 : i32
    %c0_i32_1 = arith.constant 0 : i32
    return %c0_i32, %c0_i32_0 : i32, i32
  }
  func.func @transform_25(%arg0: i32) -> (i32, i32) {
    %c0_i32 = arith.constant 0 : i32
    %c0_i32_0 = arith.constant 0 : i32
    %c0_i32_1 = arith.constant 0 : i32
    return %c0_i32, %c0_i32_0 : i32, i32
  }
  func.func @transform_26(%arg0: i32) -> (i32, i32) {
    %c0_i32 = arith.constant 0 : i32
    %c0_i32_0 = arith.constant 0 : i32
    %c0_i32_1 = arith.constant 0 : i32
    return %c0_i32, %c0_i32_0 : i32, i32
  }
  func.func @transform_27(%arg0: i32) -> (i32, i32) {
    %c0_i32 = arith.constant 0 : i32
    %c0_i32_0 = arith.constant 0 : i32
    %c0_i32_1 = arith.constant 0 : i32
    return %c0_i32, %c0_i32_0 : i32, i32
  }
  func.func @transform_28(%arg0: i32) -> (i32, i32) {
    %c0_i32 = arith.constant 0 : i32
    %c0_i32_0 = arith.constant 0 : i32
    %c0_i32_1 = arith.constant 0 : i32
    return %c0_i32, %c0_i32_0 : i32, i32
  }
  func.func @transform_29(%arg0: i32) -> (i32, i32) {
    %c0_i32 = arith.constant 0 : i32
    %c0_i32_0 = arith.constant 0 : i32
    %c0_i32_1 = arith.constant 0 : i32
    return %c0_i32, %c0_i32_0 : i32, i32
  }
  func.func @transform_30(%arg0: i32) -> (i32, i32, i32) {
    %c0_i32 = arith.constant 0 : i32
    %c0_i32_0 = arith.constant 0 : i32
    %c0_i32_1 = arith.constant 0 : i32
    return %arg0, %c0_i32, %c0_i32_0 : i32, i32, i32
  }
  func.func @transform_31(%arg0: i32) -> (i32, i32, i32) {
    %c0_i32 = arith.constant 0 : i32
    %c0_i32_0 = arith.constant 0 : i32
    %c0_i32_1 = arith.constant 0 : i32
    return %arg0, %c0_i32, %c0_i32_0 : i32, i32, i32
  }
  func.func @transform_32(%arg0: i32) -> (i32, i32, i32) {
    %c0_i32 = arith.constant 0 : i32
    %c0_i32_0 = arith.constant 0 : i32
    %c0_i32_1 = arith.constant 0 : i32
    return %arg0, %c0_i32, %c0_i32_0 : i32, i32, i32
  }
}

</mosaic_0001>

<bundles_post_ra>
// kernel: lxrtx_layer_forward.1
= control target key start
LH: loop header
LB: loop body
LE: loop exit
PB: predicated region body
PF: predicated region fallthrough
CT: control target
= control target key end

     0   :  { %s6410_s6 = smov 1   ;;  %s6411_s10 = smov 2   ;;  %s7436_s0 = inlined_call_operand.smem [shape: u32[33], index: -1, kind: input, shape index: {}] }
   0x1   :  { %s6457_s5 = sld [smem:[%s7436_s0]]   ;;  %s6412_s14 = smov 3  }
   0x2   :  { %s6462_s9 = sld [smem:[%s7436_s0 + %s6410_s6]]   ;;  %s6413_s18 = smov 4  }
   0x3   :  { %s6467_s13 = sld [smem:[%s7436_s0 + %s6411_s10]]   ;;  %s6414_s22 = smov 5  }
   0x4   :  { %s6472_s17 = sld [smem:[%s7436_s0 + %s6412_s14]]   ;;  %s6415_s26 = smov 6  }
   0x5   :  { %s6477_s21 = sld [smem:[%s7436_s0 + %s6413_s18]]   ;;  %s6416_s30 = smov 7  }
   0x6   :  { %s6482_s25 = sld [smem:[%s7436_s0 + %s6414_s22]]   ;;  %s6417_s4 = smov 8  }
   0x7   :  { %7460 = sst [smem:[#allocation6_spill]] %s6457_s5  ;;  %s6418_s10 = smov 9  }
   0x8   :  { %7461 = sst [smem:[#allocation7_spill]] %s6462_s9  ;;  %s6419_s15 = smov 10  }
   0x9   :  { %7462 = sst [smem:[#allocation8_spill]] %s6467_s13  ;;  %s6420_s20 = smov 11  }
   0xa   :  { %7463 = sst [smem:[#allocation9_spill]] %s6472_s17  ;;  %s6422_s1 = smov 13  }
   0xb   :  { %7464 = sst [smem:[#allocation10_spill]] %s6477_s21  ;;  %s6423_s7 = smov 14  }
   0xc   :  { %s6487_s29 = sld [smem:[%s7436_s0 + %s6415_s26]]   ;;  %s6421_s26 = smov 12  }
   0xd   :  { %s6492_s3 = sld [smem:[%s7436_s0 + %s6416_s30]]   ;;  %s6425_s22 = smov 16  }
   0xe   :  { %s6497_s8 = sld [smem:[%s7436_s0 + %s6417_s4]]   ;;  %s6426_s28 = smov 17  }
   0xf   :  { %s6502_s14 = sld [smem:[%s7436_s0 + %s6418_s10]]  }
  0x10   :  { %s6507_s19 = sld [smem:[%s7436_s0 + %s6419_s15]]   ;;  %s6424_s15 = smov 15  }
  0x11   :  { %s6512_s24 = sld [smem:[%s7436_s0 + %s6420_s20]]  }
  0x12   :  { %s6517_s30 = sld [smem:[%s7436_s0 + %s6421_s26]]  }
  0x13   :  { %7465 = sst [smem:[#allocation11_spill]] %s6492_s3 }
  0x14   :  { %7466 = sst [smem:[#allocation12_spill]] %s6497_s8 }
  0x15   :  { %7467 = sst [smem:[#allocation13_spill]] %s6502_s14 }
  0x16   :  { %s6522_s6 = sld [smem:[%s7436_s0 + %s6422_s1]]  }
  0x17   :  { %s6527_s12 = sld [smem:[%s7436_s0 + %s6423_s7]]   ;;  %s6427_s7 = smov 18  }
  0x18   :  { %7468 = sst [smem:[#allocation14_spill]] %s6517_s30 }
  0x19   :  { %s6532_s20 = sld [smem:[%s7436_s0 + %s6424_s15]]   ;;  %s6428_s15 = smov 19  }
  0x1a   :  { %s6537_s27 = sld [smem:[%s7436_s0 + %s6425_s22]]   ;;  %s6429_s22 = smov 20  }
  0x1b   :  { %s6542_s4 = sld [smem:[%s7436_s0 + %s6426_s28]]   ;;  %s6430_s28 = smov 21  }
  0x1c   :  { %7469 = sst [smem:[#allocation15_spill]] %s6522_s6 }
  0x1d   :  { %7470 = sst [smem:[#allocation16_spill]] %s6527_s12 }
  0x1e   :  { %s6547_s17 = sld [smem:[%s7436_s0 + %s6427_s7]]   ;;  %s6431_s7 = smov 22  }
  0x1f   :  { %7471 = sst [smem:[#allocation17_spill]] %s6532_s20 }
  0x20   :  { %s6552_s20 = sld [smem:[%s7436_s0 + %s6428_s15]]   ;;  %s6432_s15 = smov 23  }
  0x21   :  { %7472 = sst [smem:[#allocation18_spill]] %s6542_s4 }
  0x22   :  { %s6557_s6 = sld [smem:[%s7436_s0 + %s6429_s22]]   ;;  %s6433_s22 = smov 24  }
  0x23   :  { %s6562_s4 = sld [smem:[%s7436_s0 + %s6430_s28]]   ;;  %s6434_s28 = smov 25  }
  0x24   :  { %s6567_s30 = sld [smem:[%s7436_s0 + %s6431_s7]]   ;;  %s6435_s7 = smov 26  }
  0x26   :  { %7473 = sst [smem:[#allocation19_spill]] %s6552_s20 }
  0x27   :  { %s6572_s20 = sld [smem:[%s7436_s0 + %s6432_s15]]   ;;  %s6436_s15 = smov 27  }
  0x28   :  { %7474 = sst [smem:[#allocation20_spill]] %s6557_s6 }
  0x29   :  { %7475 = sst [smem:[#allocation21_spill]] %s6562_s4 }
  0x2a   :  { %7476 = sst [smem:[#allocation22_spill]] %s6567_s30 }
  0x2b   :  { %s6577_s6 = sld [smem:[%s7436_s0 + %s6433_s22]]   ;;  %s6437_s22 = smov 28  }
  0x2c   :  { %s6582_s4 = sld [smem:[%s7436_s0 + %s6434_s28]]   ;;  %s6438_s28 = smov 29  }
  0x2d   :  { %7477 = sst [smem:[#allocation23_spill]] %s6572_s20 }
  0x2e   :  { %s6587_s30 = sld [smem:[%s7436_s0 + %s6435_s7]]   ;;  %s6439_s7 = smov 30  }
  0x2f   :  { %s6592_s20 = sld [smem:[%s7436_s0 + %s6436_s15]]   ;;  %s6440_s15 = smov 31  }
  0x31   :  { %7478 = sst [smem:[#allocation24_spill]] %s6577_s6 }
  0x32   :  { %7479 = sst [smem:[#allocation25_spill]] %s6582_s4 }
  0x33   :  { %s6597_s6 = sld [smem:[%s7436_s0 + %s6437_s22]]   ;;  %s6441_s22 = smov 32  }
  0x34   :  { %7480 = sst [smem:[#allocation26_spill]] %s6587_s30 }
  0x35   :  { %7481 = sst [smem:[#allocation27_spill]] %s6592_s20 }
  0x36   :  { %s6602_s4 = sld [smem:[%s7436_s0 + %s6438_s28]]  }
  0x37   :  { %s6607_s30 = sld [smem:[%s7436_s0 + %s6439_s7]]  }
  0x38   :  { %s6612_s20 = sld [smem:[%s7436_s0 + %s6440_s15]]  }
  0x39   :  { %7482 = sst [smem:[#allocation28_spill]] %s6597_s6 }
  0x3a   :  { %s6617_s6 = sld [smem:[%s7436_s0 + %s6441_s22]]  }
  0x40   :  { %7483 = sst [smem:[#allocation29_spill]] %s6617_s6 }
  0x41   :  { %71 = vsyncpa [#allocation4], 0 }
  0x42   :  { %73 = vsyncpa [#allocation4 + $0x1], 0  ;;  %s6619_s28 = smov 0   ;;  %s6621_s1 = smov 0  }
  0x43   :  { %s6623_s2 = smov 0   ;;  %s6625_s7 = smov 0  }
  0x44 LB: > { %s7484_s12 = sld [smem:[#allocation16_spill]]  ;;  %s7485_s8 = sld [smem:[#allocation12_spill]]  ;;  %s6404_s2 = sphi %s6623_s2, %s7523_s2   ;;  %s6400_s1 = sphi %s6621_s1, %s7522_s1   ;;  %s6396_s28 = sphi %s6619_s28, %s7521_s28   ;;  %s6408_s7 = sphi %s6625_s7, %s7524_s7  }
  0x45   : > { %s7486_s21 = sld [smem:[#allocation10_spill]]  ;;  %s6640_s0 = sadd.s32 4294967295, %s6408_s7  }
  0x46   : > { %s4524_s10 = sadd.s32 4294967294, %s6408_s7   ;;  %s6644_s11 = sadd.s32 1, %s6408_s7  }
  0x47   : > { %s762_s15 = sadd.s32 1, %s6404_s2  ;;  %s759_s16 = ssub.s32 %s6408_s7, %s6644_s11 }
  0x48   : > { %p772_p0 = scmp.ne.s32.totalorder %s6404_s2, %s6400_s1  ;;  %p760_p1 = scmp.eq.s32.totalorder %s759_s16, 0 }
  0x49   : > { %p773_p2 = scmp.eq.s32.totalorder %s6640_s0, 1  ;;  %p778_p3 = scmp.ne.s32.totalorder %s6400_s1, %s6396_s28 }
  0x4a   : > { %p779_p4 = scmp.eq.s32.totalorder %s4524_s10, 1  ;;  %p4527_p7 = scmp.ge.s32.totalorder %s6408_s7, 1 }
  0x4b   : > { %s6655_s18 = scalar_select %p760_p1, %s6404_s2, %s762_s15  }
  0x4c   : > { %p6657_p5 = por %p773_p2, %p772_p0  ;;  %p6661_p6 = por %p779_p4, %p778_p3 }
  0x4d   : > { %p929_p8 = scmp.lt.s32.totalorder %s6408_s7, 3 }
  0x4f   : > { %p930_p9 = pnand %p4527_p7, %p929_p8 }
  0x50   : > { %v1075_v0 = vld [vmem:[%s7486_s21] sm:$0xff] (!%p930_p9)  ;;  %s7489_s5 = sld [smem:[#allocation6_spill]] (!%p930_p9)  ;;  %v1076_v1 = vld [vmem:[%s7486_s21 + $0x8] sm:$0xff] (!%p930_p9)  ;;  %s7490_s9 = sld [smem:[#allocation7_spill]] (!%p930_p9)  ;;  %v1077_v2 = vld [vmem:[%s7486_s21 + $0x10] sm:$0xff] (!%p930_p9)  ;;  %vm1086_vm0 = vcmask (!%p930_p9), 261120  }
  0x51   : > { %933 = sbr.rel (%p930_p9) target bundleno = 7164 (0x1bfc), region = 140  ;;  %p1031_p10 = scmp.lt.s32.totalorder (!%p930_p9), %s6640_s0, 1  ;;  %v5469_v3 = vpack.c.bf16 (!%p930_p9), %v1076_v1, %v1075_v0  ;;  %v1078_v4 = vld [vmem:[%s7486_s21 + $0x18] sm:$0xff] (!%p930_p9)  ;;  %v1168_v6 = vld [vmem:[%s6487_s29] sm:$0xff] (!%p930_p9)  ;;  %v1169_v7 = vld [vmem:[%s6487_s29 + $0x8] sm:$0xff] (!%p930_p9)  ;;  %vm1534_vm1 = vcmask (!%p930_p9), 64512  }
  0x52   : > { %v5473_v5 = vpack.c.bf16 (!%p930_p9), %v1078_v4, %v1077_v2  ;;  %v5477_v8 = vpack.c.bf16 (!%p930_p9), %v1169_v7, %v1168_v6  ;;  %v1170_v9 = vld [vmem:[%s6487_s29 + $0x10] sm:$0xff] (!%p930_p9)  ;;  %v1171_v11 = vld [vmem:[%s6487_s29 + $0x18] sm:$0xff] (!%p930_p9)  ;;  %v1372_v30 = vld [vmem:[%s7485_s8] sm:$0xff] (!%p930_p9)  ;;  %s7491_s3 = sld [smem:[#allocation11_spill]] (!%p930_p9)  ;;  %s7494_s14 = sld [smem:[#allocation13_spill]] (!%p930_p9)  ;;  %vm2680_vm3 = vcmask (!%p930_p9), 1040384  }
  0x53   : > { %5470 = vmatprep.subr.bf16.mxu1 (!%p930_p9), %v5469_v3  ;;  %v5481_v14 = vpack.c.bf16 (!%p930_p9), %v1171_v11, %v1170_v9  ;;  %v1373_v31 = vld [vmem:[%s7485_s8 + $0x8] sm:$0xff] (!%p930_p9)  ;;  %v1374_v32 = vld [vmem:[%s7485_s8 + $0x10] sm:$0xff] (!%p930_p9)  ;;  %v1375_v34 = vld [vmem:[%s7485_s8 + $0x18] sm:$0xff] (!%p930_p9)  ;;  %s7495_s13 = sld [smem:[#allocation8_spill]] (!%p930_p9)  ;;  %vm2682_vm4 = vcmask (!%p930_p9), 1041408   ;;  %vm2684_vm5 = vcmask (!%p930_p9), 1042432  }
  0x54   : > { %5472 = vmatpush3.bf16.msra.mxu1 (!%p930_p9), %v5469_v3  ;;  %v5485_v33 = vpack.c.bf16 (!%p930_p9), %v1373_v31, %v1372_v30  ;;  %v5489_v35 = vpack.c.bf16 (!%p930_p9), %v1375_v34, %v1374_v32  ;;  %v4536_v36 = vld [vmem:[%s6482_s25] ss:$0 sm:$0xff] (!%p930_p9)  ;;  %vm6755_vm2 = vmpackc.low (!%p930_p9), %vm1534_vm1, %vm1534_vm1  ;;  %vm2663_vm6 = vcmask (!%p930_p9), 130048   ;;  %vm2666_vm7 = vcmask (!%p930_p9), 195584   ;;  %s7505_s6 = sld [smem:[#allocation29_spill]] (!%p930_p9)  ;;  %s7518_s8 = sand.u32 (!%p930_p9), 1, %s6400_s1  }
  0x55   : > { %5474 = vmatprep.subr.bf16.mxu1 (!%p930_p9), %v5473_v5  ;;  %vm3935_vm8 = vcmask (!%p930_p9), 125952   ;;  %vm4195_vm9 = vcmask (!%p930_p9), 523264  }
  0x56   : > { %5486 = vmatprep.subr.bf16.mxu0 (!%p930_p9), %v5485_v33 }
  0x57   : > { %5488 = vmatpush3.bf16.msra.mxu0 (!%p930_p9), %v5485_v33 }
  0x58   : > { %s6673_s26 = scalar_select %p1031_p10, %s6640_s0, 1  ;;  %5476 = vmatpush3.bf16.msra.mxu1 %v5473_v5  ;;  %5490 = vmatprep.subr.bf16.mxu0 %v5489_v35  ;;  %v4539_v41 = vld [vmem:[%s7491_s3] ss:$0 sm:$0xff] }
  0x59   : > { %5478 = vmatprep.subr.bf16.mxu1 %v5477_v8  ;;  %s7450_s3 = smov 16  }
  0x5a   : > { %s7441_s10 = sshll.u32 %s6673_s26, 4  ;;  %s4703_s15 = sshll.u32 %s6673_s26, 7 }
  0x5b   : > { %s6682_s16 = scalar_lea.vmem %s7489_s5, %s7441_s10  ;;  %s6685_s21 = scalar_lea.vmem %s7490_s9, %s4703_s15  ;;  %5492 = vmatpush3.bf16.msra.mxu0 %v5489_v35 }
  0x5c   : > { %v1056_v10 = vld [vmem:[%s6682_s16] sm:$0xff]  ;;  %v1057_v13 = vld [vmem:[%s6682_s16 + $0x8] sm:$0xff]  ;;  %v1060_v16 = vld [vmem:[%s6685_s21 + $0x10] sm:$0xff]  ;;  %s7444_s15 = smov 120   ;;  %s7446_s10 = smov 104  }
  0x5d   : > { %v1058_v12 = vld [vmem:[%s6685_s21] sm:$0xff]  ;;  %4981 = vmatprep.mubr.msk.f32.mxu1 %vm1086_vm0, %v1056_v10  ;;  %v1059_v15 = vld [vmem:[%s6685_s21 + $0x8] sm:$0xff]  ;;  %v1061_v17 = vld [vmem:[%s6685_s21 + $0x18] sm:$0xff]  ;;  %s7500_s5 = sld [smem:[#allocation17_spill]]  ;;  %s4331_s9 = scalar_lea.sflag [#allocation4], %s7518_s8 }
  0x5e   : > { %5024 = vmatprep.mubr.msk.f32.mxu0 %vm1086_vm0, %v1058_v12  ;;  %4982 = vmatmul.mubr.msk.f32.vlgmr.msra.gmra.mrb[0].mxu1 %vm1086_vm0, %v1057_v13  ;;  %v1062_v18 = vld [vmem:[%s6685_s21 + $0x20] sm:$0xff]  ;;  %v1063_v19 = vld [vmem:[%s6685_s21 + $0x28] sm:$0xff]  ;;  %v1064_v20 = vld [vmem:[%s6685_s21 + $0x30] sm:$0xff] }
  0x5f   : > { %5480 = vmatpush3.bf16.msra.mxu1 %v5477_v8  ;;  %4992 = vmatprep.mubr.msk.f32.mxu1 %vm1086_vm0, %v1058_v12  ;;  %v1065_v21 = vld [vmem:[%s6685_s21 + $0x38] sm:$0xff]  ;;  %v1066_v22 = vld [vmem:[%s6685_s21 + $0x40] sm:$0xff]  ;;  %v1067_v23 = vld [vmem:[%s6685_s21 + $0x48] sm:$0xff] }
  0x60   : > { %5482 = vmatprep.subr.bf16.mxu1 %v5481_v14  ;;  %v1068_v24 = vld [vmem:[%s6685_s21 + $0x50] sm:$0xff]  ;;  %v1069_v25 = vld [vmem:[%s6685_s21 + $0x58] sm:$0xff]  ;;  %v1070_v26 = vld [vmem:[%s6685_s21 + $0x60] sm:$0xff]  ;;  %5025 = vmatmul.mubr.msk.f32.vlgmr.msra.gmra.mrb[0].mxu0 %vm1086_vm0, %v1059_v15 }
  0x61   : > { %v1071_v27 = vld [vmem:[%s6685_s21 + $0x68] sm:$0xff]  ;;  %v1072_v28 = vld [vmem:[%s6685_s21 + $0x70] sm:$0xff]  ;;  %v1073_v29 = vld [vmem:[%s6685_s21 + $0x78] sm:$0xff]  ;;  %5027 = vmatprep.mubr.msk.f32.mxu0 %vm1086_vm0, %v1060_v16  ;;  %s1043_s21 = scalar_lea.vmem %s7495_s13, %s6673_s26 }
  0x63   : > { %5484 = vmatpush3.bf16.msra.mxu1 %v5481_v14 }
  0x64   : > { %5028 = vmatmul.mubr.msk.f32.gmra.mrb[2].mxu0 %vm1086_vm0, %v1061_v17 }
  0x65   : > { %5030 = vmatprep.mubr.msk.f32.mxu0 %vm1086_vm0, %v1062_v18 }
  0x66   : > { %4993 = vmatmul.mubr.msk.f32.vlgmr.msra.gmra.mrb[2].mxu1 %vm1086_vm0, %v1059_v15 }
  0x67   : > { %4995 = vmatprep.mubr.msk.f32.mxu1 %vm1086_vm0, %v1060_v16 }
  0x68   : > { %5031 = vmatmul.mubr.msk.f32.gmra.mrb[4].mxu0 %vm1086_vm0, %v1063_v19 }
  0x69   : > { %5033 = vmatprep.mubr.msk.f32.mxu0 %vm1086_vm0, %v1064_v20 }
  0x6a   : > { %4996 = vmatmul.mubr.msk.f32.gmra.mrb[4].mxu1 %vm1086_vm0, %v1061_v17 }
  0x6b   : > { %4998 = vmatprep.mubr.msk.f32.mxu1 %vm1086_vm0, %v1062_v18 }
  0x6c   : > { %5034 = vmatmul.mubr.msk.f32.gmra.mrb[6].mxu0 %vm1086_vm0, %v1065_v21 }
  0x6d   : > { %5036 = vmatprep.mubr.msk.f32.mxu0 %vm1086_vm0, %v1066_v22 }
  0x6e   : > { %4999 = vmatmul.mubr.msk.f32.gmra.mrb[6].mxu1 %vm1086_vm0, %v1063_v19 }
  0x6f   : > { %5001 = vmatprep.mubr.msk.f32.mxu1 %vm1086_vm0, %v1064_v20 }
  0x70   : > { %5037 = vmatmul.mubr.msk.f32.gmra.mrb[8].mxu0 %vm1086_vm0, %v1067_v23 }
  0x71   : > { %5039 = vmatprep.mubr.msk.f32.mxu0 %vm1086_vm0, %v1068_v24 }
  0x72   : > { %5002 = vmatmul.mubr.msk.f32.gmra.mrb[8].mxu1 %vm1086_vm0, %v1065_v21 }
  0x73   : > { %5004 = vmatprep.mubr.msk.f32.mxu1 %vm1086_vm0, %v1066_v22 }
  0x74   : > { %5040 = vmatmul.mubr.msk.f32.gmra.mrb[10].mxu0 %vm1086_vm0, %v1069_v25 }
  0x75   : > { %5042 = vmatprep.mubr.msk.f32.mxu0 %vm1086_vm0, %v1070_v26 }
  0x76   : > { %5005 = vmatmul.mubr.msk.f32.gmra.mrb[10].mxu1 %vm1086_vm0, %v1067_v23 }
  0x77   : > { %5007 = vmatprep.mubr.msk.f32.mxu1 %vm1086_vm0, %v1068_v24 }
  0x78   : > { %5043 = vmatmul.mubr.msk.f32.gmra.mrb[12].mxu0 %vm1086_vm0, %v1071_v27 }
  0x79   : > { %5045 = vmatprep.mubr.msk.f32.mxu0 %vm1086_vm0, %v1072_v28 }
  0x7a   : > { %5008 = vmatmul.mubr.msk.f32.gmra.mrb[12].mxu1 %vm1086_vm0, %v1069_v25 }
  0x7b   : > { %5010 = vmatprep.mubr.msk.f32.mxu1 %vm1086_vm0, %v1070_v26 }
  0x7c   : > { %5046 = vmatmul.mubr.msk.f32.gmra.mrb[14].mxu0 %vm1086_vm0, %v1073_v29 }
  0x7e   : > { %5011 = vmatmul.mubr.msk.f32.gmra.mrb[14].mxu1 %vm1086_vm0, %v1071_v27 }
  0x7f   : > { %5013 = vmatprep.mubr.msk.f32.mxu1 %vm1086_vm0, %v1072_v28  ;;  %v4556_v28 = vld [vmem:[%s7494_s14] ss:$0 sm:$0xff] }
  0x82   : > { %5014 = vmatmul.mubr.msk.f32.gmra.mrb[16].mxu1 %vm1086_vm0, %v1073_v29 }
 0x131   : > { %v4983_v37 = vpop.f32.mrb[0].mxu1 }
 0x132   : > { %v6746_v38 = vadd.f32 %v4983_v37, %v4536_v36  ;;  %v1159_v39 = vpop.f32.mrb[1].mxu1 }
 0x133   : > { %v6748_v40 = vadd.f32 %v4536_v36, %v1159_v39  ;;  %v5026_v27 = vpop.f32.mrb[0].mxu0 }
 0x134   : > { %v6810_v29 = vadd.f32 %v5026_v27, %v4556_v28  ;;  %v1449_v30 = vpop.f32.mrb[1].mxu0 }
 0x135   : > { %5080 = vmatprep.mubr.msk.f32.mxu1 %vm1534_vm1, %v6748_v40  ;;  %v6812_v31 = vadd.f32 %v4556_v28, %v1449_v30 }
 0x137   : > { %v5029_v32 = vpop.f32.mrb[2].mxu0  ;;  %v5541_v36 = vpack.c.bf16 %v6810_v29, %v6812_v31 }
 0x138   : > { %v6814_v33 = vadd.f32 %v5029_v32, %v4556_v28  ;;  %v1459_v34 = vpop.f32.mrb[3].mxu0 }
 0x139   : > { %v4994_v42 = vpop.f32.mrb[2].mxu1  ;;  %v6816_v35 = vadd.f32 %v4556_v28, %v1459_v34  ;;  %5542 = vmatprep.subr.bf16.mxu0 %v5541_v36 }
 0x13a   : > { %v1299_v43 = vadd.f32 %v4994_v42, %v4539_v41  ;;  %v1293_v44 = vpop.f32.mrb[3].mxu1  ;;  %5544 = vmatpush3.bf16.msra.mxu0 %v5541_v36 }
 0x13b   : > { %v1294_v45 = vadd.f32 %v4539_v41, %v1293_v44  ;;  %v5032_v37 = vpop.f32.mrb[4].mxu0 }
 0x13c   : > { %v6820_v39 = vadd.f32 %v5032_v37, %v4556_v28 }
 0x13d   : > { %v5493_v47 = vpack.c.bf16 %v1299_v43, %v1294_v45  ;;  %v4997_v48 = vpop.f32.mrb[4].mxu1  ;;  %v6759_v49 = vpack.i.bf16 %v1299_v43, %v1294_v45  ;;  %v5545_v43 = vpack.c.bf16 %v6814_v33, %v6816_v35 }
 0x13e   : > { %v1309_v50 = vadd.f32 %v4997_v48, %v4539_v41  ;;  %v1303_v51 = vpop.f32.mrb[5].mxu1 }
 0x13f   : > { %5495 = vmatprep.subr.msk.bf16.mxu1 %vm6755_vm2, %v5493_v47  ;;  %v1304_v52 = vadd.f32 %v4539_v41, %v1303_v51  ;;  %5546 = vmatprep.subr.bf16.mxu0 %v5545_v43 }
 0x140   : > { %5498 = vmatpush3.bf16.xpose.msk.msra.mxu1 %vm6755_vm2, %v5493_v47  ;;  %5548 = vmatpush3.bf16.msra.mxu0 %v5545_v43 }
 0x141   : > { %v5499_v53 = vpack.c.bf16 %v1309_v50, %v1304_v52  ;;  %v5000_v54 = vpop.f32.mrb[6].mxu1  ;;  %v6765_v55 = vpack.i.bf16 %v1309_v50, %v1304_v52 }
 0x142   : > { %v1319_v56 = vadd.f32 %v5000_v54, %v4539_v41  ;;  %v1313_v57 = vpop.f32.mrb[7].mxu1 }
 0x143   : > { %5501 = vmatprep.subr.msk.bf16.mxu1 %vm6755_vm2, %v5499_v53  ;;  %v1314_v58 = vadd.f32 %v4539_v41, %v1313_v57 }
 0x145   : > { %v5505_v59 = vpack.c.bf16 %v1319_v56, %v1314_v58  ;;  %v5003_v60 = vpop.f32.mrb[8].mxu1  ;;  %v6769_v61 = vpack.i.bf16 %v1319_v56, %v1314_v58 }
 0x146   : > { %v1329_v62 = vadd.f32 %v5003_v60, %v4539_v41  ;;  %v1323_v63 = vpop.f32.mrb[9].mxu1  ;;  %v6842_v60 = vld [vmem:[%s1043_s21] ss:$0 sm:$0xff]  ;;  %s7442_s21 = smov 112  }
 0x147   : > { %v1324_v0 = vadd.f32 %v4539_v41, %v1323_v63 }
 0x148   : > { %5504 = vmatpush3.bf16.xpose.msk.msra.mxu1 %vm6755_vm2, %v5499_v53 }
 0x149   : > { %5507 = vmatprep.subr.msk.bf16.mxu1 %vm6755_vm2, %v5505_v59  ;;  %v5511_v1 = vpack.c.bf16 %v1329_v62, %v1324_v0  ;;  %v5006_v2 = vpop.f32.mrb[10].mxu1  ;;  %v6775_v3 = vpack.i.bf16 %v1329_v62, %v1324_v0 }
 0x14a   : > { %v1339_v4 = vadd.f32 %v5006_v2, %v4539_v41  ;;  %v1333_v5 = vpop.f32.mrb[11].mxu1 }
 0x14b   : > { %v1334_v6 = vadd.f32 %v4539_v41, %v1333_v5 }
 0x14d   : > { %v5517_v7 = vpack.c.bf16 %v1339_v4, %v1334_v6  ;;  %v5009_v8 = vpop.f32.mrb[12].mxu1  ;;  %v6777_v9 = vpack.i.bf16 %v1339_v4, %v1334_v6 }
 0x14e   : > { %v1349_v10 = vadd.f32 %v5009_v8, %v4539_v41  ;;  %v1343_v11 = vpop.f32.mrb[13].mxu1 }
 0x14f   : > { %v1344_v12 = vadd.f32 %v4539_v41, %v1343_v11 }
 0x150   : > { %5510 = vmatpush3.bf16.xpose.msk.msra.mxu1 %vm6755_vm2, %v5505_v59 }
 0x151   : > { %5513 = vmatprep.subr.msk.bf16.mxu1 %vm6755_vm2, %v5511_v1  ;;  %v5523_v13 = vpack.c.bf16 %v1349_v10, %v1344_v12  ;;  %v5012_v14 = vpop.f32.mrb[14].mxu1  ;;  %v6783_v15 = vpack.i.bf16 %v1349_v10, %v1344_v12 }
 0x152   : > { %v1359_v16 = vadd.f32 %v5012_v14, %v4539_v41  ;;  %v1353_v17 = vpop.f32.mrb[15].mxu1 }
 0x153   : > { %v1354_v18 = vadd.f32 %v4539_v41, %v1353_v17 }
 0x155   : > { %v5529_v19 = vpack.c.bf16 %v1359_v16, %v1354_v18  ;;  %v5015_v20 = vpop.f32.mrb[16].mxu1  ;;  %v6785_v21 = vpack.i.bf16 %v1359_v16, %v1354_v18 }
 0x156   : > { %v1369_v22 = vadd.f32 %v5015_v20, %v4539_v41  ;;  %v1363_v23 = vpop.f32.mrb[17].mxu1 }
 0x157   : > { %v1364_v24 = vadd.f32 %v4539_v41, %v1363_v23  ;;  %v1469_v41 = vpop.f32.mrb[5].mxu0 }
 0x158   : > { %5516 = vmatpush3.bf16.xpose.msk.msra.mxu1 %vm6755_vm2, %v5511_v1  ;;  %v6822_v42 = vadd.f32 %v4556_v28, %v1469_v41  ;;  %v5035_v44 = vpop.f32.mrb[6].mxu0 }
 0x159   : > { %5519 = vmatprep.subr.msk.bf16.mxu1 %vm6755_vm2, %v5517_v7  ;;  %v5535_v25 = vpack.c.bf16 %v1369_v22, %v1364_v24  ;;  %v6791_v26 = vpack.i.bf16 %v1369_v22, %v1364_v24  ;;  %v1479_v45 = vpop.f32.mrb[7].mxu0  ;;  %v6826_v47 = vadd.f32 %v5035_v44, %v4556_v28 }
 0x15a   : > { %v6828_v48 = vadd.f32 %v4556_v28, %v1479_v45  ;;  %v5549_v50 = vpack.c.bf16 %v6820_v39, %v6822_v42  ;;  %v5038_v51 = vpop.f32.mrb[8].mxu0 }
 0x15b   : > { %v1489_v52 = vpop.f32.mrb[9].mxu0  ;;  %v6832_v56 = vadd.f32 %v5038_v51, %v4556_v28 }
 0x15c   : > { %v5041_v53 = vpop.f32.mrb[10].mxu0  ;;  %5550 = vmatprep.subr.bf16.mxu0 %v5549_v50  ;;  %v6834_v57 = vadd.f32 %v4556_v28, %v1489_v52  ;;  %v5553_v58 = vpack.c.bf16 %v6826_v47, %v6828_v48 }
 0x15d   : > { %v1499_v54 = vpop.f32.mrb[11].mxu0  ;;  %5552 = vmatpush3.bf16.msra.mxu0 %v5549_v50  ;;  %v6849_v2 = vadd.f32 %v5041_v53, %v4556_v28 }
 0x15e   : > { %5554 = vmatprep.subr.bf16.mxu0 %v5553_v58  ;;  %v5557_v59 = vpack.c.bf16 %v6832_v56, %v6834_v57  ;;  %v6851_v4 = vadd.f32 %v4556_v28, %v1499_v54  ;;  %v5044_v5 = vpop.f32.mrb[12].mxu0 }
 0x15f   : > { %v6855_v8 = vadd.f32 %v5044_v5, %v4556_v28 }
 0x160   : > { %5522 = vmatpush3.bf16.xpose.msk.msra.mxu1 %vm6755_vm2, %v5517_v7  ;;  %v5561_v6 = vpack.c.bf16 %v6849_v2, %v6851_v4  ;;  %v1509_v7 = vpop.f32.mrb[13].mxu0 }
 0x161   : > { %5525 = vmatprep.subr.msk.bf16.mxu1 %vm6755_vm2, %v5523_v13  ;;  %5556 = vmatpush3.bf16.msra.mxu0 %v5553_v58  ;;  %v6857_v10 = vadd.f32 %v4556_v28, %v1509_v7  ;;  %v5047_v11 = vpop.f32.mrb[14].mxu0 }
 0x162   : > { %5558 = vmatprep.subr.bf16.mxu0 %v5557_v59  ;;  %v6861_v14 = vadd.f32 %v5047_v11, %v4556_v28 }
 0x163   : > { %v5565_v12 = vpack.c.bf16 %v6855_v8, %v6857_v10 }
 0x165   : > { %5560 = vmatpush3.bf16.msra.mxu0 %v5557_v59 }
 0x166   : > { %5562 = vmatprep.subr.bf16.mxu0 %v5561_v6 }
 0x168   : > { %5528 = vmatpush3.bf16.xpose.msk.msra.mxu1 %vm6755_vm2, %v5523_v13  ;;  %v1519_v13 = vpop.f32.mrb[15].mxu0 }
 0x169   : > { %5531 = vmatprep.subr.msk.bf16.mxu1 %vm6755_vm2, %v5529_v19  ;;  %5564 = vmatpush3.bf16.msra.mxu0 %v5561_v6  ;;  %v6863_v16 = vadd.f32 %v4556_v28, %v1519_v13 }
 0x16a   : > { %5566 = vmatprep.subr.bf16.mxu0 %v5565_v12 }
 0x16b   : > { %v5569_v17 = vpack.c.bf16 %v6861_v14, %v6863_v16 }
 0x16d   : > { %5568 = vmatpush3.bf16.msra.mxu0 %v5565_v12 }
 0x16e   : > { %5570 = vmatprep.subr.bf16.mxu0 %v5569_v17 }
 0x170   : > { %5534 = vmatpush3.bf16.xpose.msk.msra.mxu1 %vm6755_vm2, %v5529_v19 }
 0x171   : > { %5537 = vmatprep.subr.msk.bf16.mxu1 %vm6755_vm2, %v5535_v25  ;;  %5572 = vmatpush3.bf16.msra.mxu0 %v5569_v17 }
 0x178   : > { %5540 = vmatpush3.bf16.xpose.msk.msra.mxu1 %vm6755_vm2, %v5535_v25 }
 0x17f   : > { %5081 = vmatmul.mubr.msk.f32.vlgmr.msra.gmra.mrb[18].mxu1 %vm1534_vm1, %v6746_v38 }
 0x252   : > { %v5082_v62 = vpop.f32.mrb[18].mxu1 }
 0x253   : > { %v1655_v63 = vpop.f32.mrb[19].mxu1  ;;  %v1661_v1 = vadd.f32 %v5082_v62, %v6842_v60 }
 0x254   : > { %v6845_v0 = vadd.f32 %v6842_v60, %v1655_v63 }
 0x256   : > { %1664 = vmax.xlane.f32.xlu0 %v6845_v0 }
 0x25a   : > { %1666 = vmax.xlane.f32.xlu0 %v1661_v1 }
 0x270   : > { %5995 = vrot.lane.b32.xlu0 %v6759_v49, %s7444_s15 }
 0x274   : > { %6015 = vrot.lane.b32.xlu0 %v6777_v9, %s7444_s15 }
 0x278   : > { %6025 = vrot.lane.b32.xlu0 %v6785_v21, %s7444_s15 }
 0x27c   : > { %1757 = vrot.lane.b32.xlu0 %v6748_v40, %s7444_s15 }
 0x2e3   : > { %v1665_v18 = vpop.xlane.xlu0 %1664 }
 0x2e4   : > { %v1668_v20 = vsub.f32 %v6845_v0, %v1665_v18 }
 0x2e6   : > { %v1670_v25 = vmul.f32 1.442695, %v1668_v20 }
 0x2e7   : > { %v1667_v19 = vpop.xlane.xlu0 %1666 }
 0x2e8   : > { %v1669_v22 = vsub.f32 %v1661_v1, %v1667_v19 }
 0x2ea   : > { %v1672_v23 = vmul.f32 1.442695, %v1669_v22 }
 0x2eb   : > { %v5996_v24 = vpop.permute.xlu0 %5995 }
 0x2ec   : > { %6264 = vpow2.f32 %v1672_v23  ;;  %v5998_v27 = vunpack.i.h.bf16 %v5996_v24  ;;  %v5997_v28 = vunpack.i.l.bf16 %v5996_v24 }
 0x2ed   : > { %6266 = vpow2.f32 %v1670_v25 }
 0x2ee   : > { %v5573_v30 = vpack.c.bf16 %v5998_v27, %v5997_v28 }
 0x2ef   : > { %v6016_v41 = vpop.permute.xlu0 %6015 }
 0x2f0   : > { %5575 = vmatprep.subr.msk.bf16.mxu0 %vm6755_vm2, %v5573_v30  ;;  %v6018_v13 = vunpack.i.h.bf16 %v6016_v41  ;;  %v6017_v17 = vunpack.i.l.bf16 %v6016_v41 }
 0x2f2   : > { %v5597_v18 = vpack.c.bf16 %v6018_v13, %v6017_v17 }
 0x2f3   : > { %v6026_v44 = vpop.permute.xlu0 %6025 }
 0x2f4   : > { %v6028_v24 = vunpack.i.h.bf16 %v6026_v44  ;;  %v6027_v25 = vunpack.i.l.bf16 %v6026_v44 }
 0x2f6   : > { %v6265_v32 = vpop.eup %6264  ;;  %v5609_v27 = vpack.c.bf16 %v6028_v24, %v6027_v25 }
 0x2f7   : > { %1676 = vadd.xlane.f32.xlu1 %v6265_v32  ;;  %v6267_v34 = vpop.eup %6266  ;;  %v1758_v58 = vpop.permute.xlu0 %1757 }
 0x2fb   : > { %1674 = vadd.xlane.f32.xlu1 %v6267_v34 }
 0x30c   : > { %6000 = vrot.lane.b32.xlu1 %v6765_v55, %s7444_s15 }
 0x310   : > { %6005 = vrot.lane.b32.xlu1 %v6769_v61, %s7444_s15 }
 0x314   : > { %6010 = vrot.lane.b32.xlu1 %v6775_v3, %s7444_s15 }
 0x318   : > { %6020 = vrot.lane.b32.xlu1 %v6783_v15, %s7444_s15 }
 0x31c   : > { %6030 = vrot.lane.b32.xlu1 %v6791_v26, %s7444_s15 }
 0x320   : > { %1759 = vrot.lane.b32.xlu1 %v6746_v38, %s7444_s15 }
 0x384   : > { %v1677_v36 = vpop.xlane.xlu1 %1676 }
 0x385   : > { %6268 = vrcp.f32 %v1677_v36 }
 0x388   : > { %v1675_v37 = vpop.xlane.xlu1 %1674 }
 0x389   : > { %6270 = vrcp.f32 %v1675_v37 }
 0x38c   : > { %v6001_v43 = vpop.permute.xlu1 %6000 }
 0x38d   : > { %v6003_v51 = vunpack.i.h.bf16 %v6001_v43  ;;  %v6002_v52 = vunpack.i.l.bf16 %v6001_v43 }
 0x38f   : > { %v6269_v45 = vpop.eup %6268  ;;  %v5579_v59 = vpack.c.bf16 %v6003_v51, %v6002_v52  ;;  %v6933_v51 = vpack.i.bf16 %v6814_v33, %v6816_v35  ;;  %v6939_v52 = vpack.i.bf16 %v6849_v2, %v6851_v4  ;;  %v6951_v33 = vpack.i.bf16 %v6855_v8, %v6857_v10 }
 0x390   : > { %v1681_v54 = vmul.f32 %v6269_v45, %v6265_v32  ;;  %v6006_v62 = vpop.permute.xlu1 %6005  ;;  %v6957_v35 = vpack.i.bf16 %v6820_v39, %v6822_v42  ;;  %v6975_v39 = vpack.i.bf16 %v6832_v56, %v6834_v57 }
 0x391   : > { %v6008_v63 = vunpack.i.h.bf16 %v6006_v62  ;;  %v6007_v1 = vunpack.i.l.bf16 %v6006_v62 }
 0x393   : > { %v6271_v50 = vpop.eup %6270  ;;  %v5585_v5 = vpack.c.bf16 %v6008_v63, %v6007_v1 }
 0x394   : > { %v1680_v53 = vmul.f32 %v6271_v50, %v6267_v34  ;;  %v6011_v6 = vpop.permute.xlu1 %6010 }
 0x395   : > { %v6013_v7 = vunpack.i.h.bf16 %v6011_v6  ;;  %v6012_v11 = vunpack.i.l.bf16 %v6011_v6 }
 0x396   : > { %5115 = vmatprep.mubr.f32.mxu0 %v1680_v53  ;;  %v6945_v53 = vpack.i.bf16 %v6810_v29, %v6812_v31  ;;  %v6963_v29 = vpack.i.bf16 %v6861_v14, %v6863_v16  ;;  %v6969_v31 = vpack.i.bf16 %v6826_v47, %v6828_v48 }
 0x397   : > { %5116 = vmatmul.mubr.f32.vlgmr.msra.gmra.mrb[16].mxu0 %v1681_v54  ;;  %v5591_v12 = vpack.c.bf16 %v6013_v7, %v6012_v11 }
 0x398   : > { %5578 = vmatpush3.bf16.xpose.msk.msra.mxu0 %vm6755_vm2, %v5573_v30  ;;  %5150 = vmatprep.mubr.msk.f32.mxu0 %vm1534_vm1, %v1758_v58  ;;  %v6021_v19 = vpop.permute.xlu1 %6020 }
 0x399   : > { %5581 = vmatprep.subr.msk.bf16.mxu0 %vm6755_vm2, %v5579_v59  ;;  %v6023_v20 = vunpack.i.h.bf16 %v6021_v19  ;;  %v6022_v22 = vunpack.i.l.bf16 %v6021_v19 }
 0x39b   : > { %v5603_v23 = vpack.c.bf16 %v6023_v20, %v6022_v22 }
 0x39c   : > { %v6031_v28 = vpop.permute.xlu1 %6030 }
 0x39d   : > { %v6033_v30 = vunpack.i.h.bf16 %v6031_v28  ;;  %v6032_v32 = vunpack.i.l.bf16 %v6031_v28 }
 0x39f   : > { %v5615_v34 = vpack.c.bf16 %v6033_v30, %v6032_v32 }
 0x3a0   : > { %5584 = vmatpush3.bf16.xpose.msk.msra.mxu0 %vm6755_vm2, %v5579_v59  ;;  %v1760_v36 = vpop.permute.xlu1 %1759 }
 0x3a1   : > { %5587 = vmatprep.subr.msk.bf16.mxu0 %vm6755_vm2, %v5585_v5 }
 0x3a8   : > { %5590 = vmatpush3.bf16.xpose.msk.msra.mxu0 %vm6755_vm2, %v5585_v5 }
 0x3a9   : > { %5593 = vmatprep.subr.msk.bf16.mxu0 %vm6755_vm2, %v5591_v12 }
 0x3b0   : > { %5596 = vmatpush3.bf16.xpose.msk.msra.mxu0 %vm6755_vm2, %v5591_v12 }
 0x3b1   : > { %5599 = vmatprep.subr.msk.bf16.mxu0 %vm6755_vm2, %v5597_v18 }
 0x3b8   : > { %5602 = vmatpush3.bf16.xpose.msk.msra.mxu0 %vm6755_vm2, %v5597_v18 }
 0x3b9   : > { %5605 = vmatprep.subr.msk.bf16.mxu0 %vm6755_vm2, %v5603_v23 }
 0x3c0   : > { %5608 = vmatpush3.bf16.xpose.msk.msra.mxu0 %vm6755_vm2, %v5603_v23 }
 0x3c1   : > { %5611 = vmatprep.subr.msk.bf16.mxu0 %vm6755_vm2, %v5609_v27 }
 0x3c8   : > { %5614 = vmatpush3.bf16.xpose.msk.msra.mxu0 %vm6755_vm2, %v5609_v27 }
 0x3c9   : > { %5617 = vmatprep.subr.msk.bf16.mxu0 %vm6755_vm2, %v5615_v34 }
 0x3d0   : > { %5620 = vmatpush3.bf16.xpose.msk.msra.mxu0 %vm6755_vm2, %v5615_v34 }
 0x3d7   : > { %5151 = vmatmul.mubr.msk.f32.vlgmr.msra.gmra.mrb[18].mxu0 %vm1534_vm1, %v1760_v36 }
 0x46a   : > { %v6922_v37 = vpop.f32.mrb[16].mxu0 }
 0x46b   : > { %v6924_v41 = vpop.f32.mrb[17].mxu0 }
 0x4aa   : > { %v5152_v43 = vpop.f32.mrb[18].mxu0 }
 0x4ab   : > { %v1901_v44 = vadd.f32 %v5152_v43, %v6842_v60  ;;  %v1895_v45 = vpop.f32.mrb[19].mxu0 }
 0x4ac   : > { %v6928_v50 = vadd.f32 %v6842_v60, %v1895_v45 }
 0x4ad   : > { %1906 = vmax.xlane.f32.xlu1 %v1901_v44 }
 0x4ae   : > { %1904 = vmax.xlane.f32.xlu0 %v6928_v50 }
 0x4be   : > { %6040 = vrot.lane.b32.xlu1 %v6933_v51, %s7444_s15 }
 0x4c2   : > { %6060 = vrot.lane.b32.xlu1 %v6939_v52, %s7444_s15 }
 0x4c4   : > { %6035 = vrot.lane.b32.xlu0 %v6945_v53, %s7444_s15 }
 0x4c6   : > { %6065 = vrot.lane.b32.xlu1 %v6951_v33, %s7444_s15 }
 0x4c8   : > { %6045 = vrot.lane.b32.xlu0 %v6957_v35, %s7444_s15 }
 0x4ca   : > { %6070 = vrot.lane.b32.xlu1 %v6963_v29, %s7444_s15 }
 0x4cc   : > { %6050 = vrot.lane.b32.xlu0 %v6969_v31, %s7444_s15 }
 0x4d0   : > { %6055 = vrot.lane.b32.xlu0 %v6975_v39, %s7444_s15 }
 0x53a   : > { %v1907_v42 = vpop.xlane.xlu1 %1906 }
 0x53b   : > { %v1909_v2 = vsub.f32 %v1901_v44, %v1907_v42  ;;  %v1905_v4 = vpop.xlane.xlu0 %1904 }
 0x53c   : > { %v1908_v8 = vsub.f32 %v6928_v50, %v1905_v4 }
 0x53d   : > { %v1912_v10 = vmul.f32 1.442695, %v1909_v2 }
 0x53e   : > { %v1910_v14 = vmul.f32 1.442695, %v1908_v8  ;;  %v6041_v16 = vpop.permute.xlu1 %6040 }
 0x53f   : > { %6272 = vpow2.f32 %v1912_v10  ;;  %v6043_v47 = vunpack.i.h.bf16 %v6041_v16  ;;  %v6036_v48 = vpop.permute.xlu0 %6035  ;;  %v6042_v54 = vunpack.i.l.bf16 %v6041_v16 }
 0x540   : > { %6274 = vpow2.f32 %v1910_v14  ;;  %v6038_v58 = vunpack.i.h.bf16 %v6036_v48  ;;  %v6037_v59 = vunpack.i.l.bf16 %v6036_v48 }
 0x541   : > { %v5625_v1 = vpack.c.bf16 %v6043_v47, %v6042_v54 }
 0x542   : > { %v5621_v56 = vpack.c.bf16 %v6038_v58, %v6037_v59  ;;  %v6061_v13 = vpop.permute.xlu1 %6060 }
 0x543   : > { %v6046_v57 = vpop.permute.xlu0 %6045  ;;  %v6063_v24 = vunpack.i.h.bf16 %v6061_v13  ;;  %v6062_v25 = vunpack.i.l.bf16 %v6061_v13 }
 0x544   : > { %v6048_v62 = vunpack.i.h.bf16 %v6046_v57  ;;  %v6047_v63 = vunpack.i.l.bf16 %v6046_v57  ;;  %5622 = vmatprep.subr.bf16.mxu1 %v5621_v56 }
 0x545   : > { %5624 = vmatpush3.bf16.msra.mxu1 %v5621_v56  ;;  %v5641_v32 = vpack.c.bf16 %v6063_v24, %v6062_v25 }
 0x546   : > { %5626 = vmatprep.subr.bf16.mxu1 %v5625_v1  ;;  %v5629_v11 = vpack.c.bf16 %v6048_v62, %v6047_v63  ;;  %v6066_v23 = vpop.permute.xlu1 %6065 }
 0x547   : > { %v6051_v5 = vpop.permute.xlu0 %6050  ;;  %v6068_v28 = vunpack.i.h.bf16 %v6066_v23  ;;  %v6067_v30 = vunpack.i.l.bf16 %v6066_v23 }
 0x548   : > { %v6053_v6 = vunpack.i.h.bf16 %v6051_v5  ;;  %v6052_v7 = vunpack.i.l.bf16 %v6051_v5 }
 0x549   : > { %v6273_v12 = vpop.eup %6272  ;;  %5628 = vmatpush3.bf16.msra.mxu1 %v5625_v1  ;;  %v5645_v44 = vpack.c.bf16 %v6068_v28, %v6067_v30 }
 0x54a   : > { %v6275_v17 = vpop.eup %6274  ;;  %1916 = vadd.xlane.f32.xlu0 %v6273_v12  ;;  %5630 = vmatprep.subr.bf16.mxu1 %v5629_v11  ;;  %v5633_v22 = vpack.c.bf16 %v6053_v6, %v6052_v7  ;;  %v6071_v34 = vpop.permute.xlu1 %6070 }
 0x54b   : > { %1914 = vadd.xlane.f32.xlu1 %v6275_v17  ;;  %v6056_v18 = vpop.permute.xlu0 %6055  ;;  %v6073_v36 = vunpack.i.h.bf16 %v6071_v34  ;;  %v6072_v43 = vunpack.i.l.bf16 %v6071_v34 }
 0x54c   : > { %v6058_v19 = vunpack.i.h.bf16 %v6056_v18  ;;  %v6057_v20 = vunpack.i.l.bf16 %v6056_v18 }
 0x54d   : > { %5632 = vmatpush3.bf16.msra.mxu1 %v5629_v11  ;;  %v5649_v45 = vpack.c.bf16 %v6073_v36, %v6072_v43 }
 0x54e   : > { %5634 = vmatprep.subr.bf16.mxu1 %v5633_v22  ;;  %v5637_v27 = vpack.c.bf16 %v6058_v19, %v6057_v20 }
 0x551   : > { %5636 = vmatpush3.bf16.msra.mxu1 %v5633_v22 }
 0x552   : > { %5638 = vmatprep.subr.bf16.mxu1 %v5637_v27 }
 0x555   : > { %5640 = vmatpush3.bf16.msra.mxu1 %v5637_v27 }
 0x556   : > { %5642 = vmatprep.subr.bf16.mxu1 %v5641_v32 }
 0x559   : > { %5644 = vmatpush3.bf16.msra.mxu1 %v5641_v32 }
 0x55a   : > { %5646 = vmatprep.subr.bf16.mxu1 %v5645_v44 }
 0x55c   : > { %6080 = vrot.lane.b32.xlu1 %v6765_v55, %s7442_s21 }
 0x55d   : > { %5648 = vmatpush3.bf16.msra.mxu1 %v5645_v44 }
 0x55e   : > { %5650 = vmatprep.subr.bf16.mxu1 %v5649_v45 }
 0x560   : > { %6075 = vrot.lane.b32.xlu0 %v6759_v49, %s7442_s21  ;;  %6090 = vrot.lane.b32.xlu1 %v6775_v3, %s7442_s21 }
 0x561   : > { %5652 = vmatpush3.bf16.msra.mxu1 %v5649_v45 }
 0x564   : > { %6085 = vrot.lane.b32.xlu0 %v6769_v61, %s7442_s21  ;;  %6100 = vrot.lane.b32.xlu1 %v6783_v15, %s7442_s21 }
 0x568   : > { %6095 = vrot.lane.b32.xlu0 %v6777_v9, %s7442_s21  ;;  %6110 = vrot.lane.b32.xlu1 %v6791_v26, %s7442_s21 }
 0x56c   : > { %6105 = vrot.lane.b32.xlu0 %v6785_v21, %s7442_s21  ;;  %2063 = vrot.lane.b32.xlu1 %v6746_v38, %s7442_s21 }
 0x570   : > { %2061 = vrot.lane.b32.xlu0 %v6748_v40, %s7442_s21 }
 0x5d7   : > { %v1917_v42 = vpop.xlane.xlu0 %1916 }
 0x5d8   : > { %6276 = vrcp.f32 %v1917_v42  ;;  %v1915_v2 = vpop.xlane.xlu1 %1914 }
 0x5d9   : > { %6278 = vrcp.f32 %v1915_v2 }
 0x5db   : > { %v6076_v4 = vpop.permute.xlu0 %6075 }
 0x5dc   : > { %v6078_v8 = vunpack.i.h.bf16 %v6076_v4  ;;  %v6077_v10 = vunpack.i.l.bf16 %v6076_v4  ;;  %v6081_v47 = vpop.permute.xlu1 %6080 }
 0x5dd   : > { %v6083_v58 = vunpack.i.h.bf16 %v6081_v47  ;;  %v6082_v59 = vunpack.i.l.bf16 %v6081_v47 }
 0x5de   : > { %v5653_v14 = vpack.c.bf16 %v6078_v8, %v6077_v10 }
 0x5df   : > { %v6086_v16 = vpop.permute.xlu0 %6085  ;;  %v5659_v63 = vpack.c.bf16 %v6083_v58, %v6082_v59 }
 0x5e0   : > { %5655 = vmatprep.subr.msk.bf16.mxu1 %vm6755_vm2, %v5653_v14  ;;  %v6088_v5 = vunpack.i.h.bf16 %v6086_v16  ;;  %v6087_v6 = vunpack.i.l.bf16 %v6086_v16  ;;  %v6091_v13 = vpop.permute.xlu1 %6090 }
 0x5e2   : > { %v6277_v48 = vpop.eup %6276  ;;  %v5665_v11 = vpack.c.bf16 %v6088_v5, %v6087_v6 }
 0x5e3   : > { %v6279_v54 = vpop.eup %6278  ;;  %v6096_v56 = vpop.permute.xlu0 %6095  ;;  %v1921_v62 = vmul.f32 %v6277_v48, %v6273_v12  ;;  %v6093_v12 = vunpack.i.h.bf16 %v6091_v13 }
 0x5e4   : > { %v1920_v57 = vmul.f32 %v6279_v54, %v6275_v17  ;;  %v6092_v17 = vunpack.i.l.bf16 %v6091_v13  ;;  %v6098_v19 = vunpack.i.h.bf16 %v6096_v56  ;;  %v6097_v20 = vunpack.i.l.bf16 %v6096_v56  ;;  %v6101_v23 = vpop.permute.xlu1 %6100 }
 0x5e5   : > { %v6103_v24 = vunpack.i.h.bf16 %v6101_v23  ;;  %v6102_v25 = vunpack.i.l.bf16 %v6101_v23 }
 0x5e6   : > { %5185 = vmatprep.mubr.f32.mxu1 %v1920_v57  ;;  %v5671_v18 = vpack.c.bf16 %v6093_v12, %v6092_v17  ;;  %v5677_v22 = vpack.c.bf16 %v6098_v19, %v6097_v20 }
 0x5e7   : > { %v6106_v1 = vpop.permute.xlu0 %6105  ;;  %5186 = vmatmul.mubr.f32.vlgmr.msra.gmra.mrb[20].mxu1 %v1921_v62  ;;  %v5683_v27 = vpack.c.bf16 %v6103_v24, %v6102_v25 }
 0x5e8   : > { %5658 = vmatpush3.bf16.xpose.msk.msra.mxu1 %vm6755_vm2, %v5653_v14  ;;  %v6108_v28 = vunpack.i.h.bf16 %v6106_v1  ;;  %v6107_v30 = vunpack.i.l.bf16 %v6106_v1  ;;  %v6111_v34 = vpop.permute.xlu1 %6110 }
 0x5e9   : > { %5661 = vmatprep.subr.msk.bf16.mxu1 %vm6755_vm2, %v5659_v63  ;;  %v6113_v36 = vunpack.i.h.bf16 %v6111_v34  ;;  %v6112_v43 = vunpack.i.l.bf16 %v6111_v34 }
 0x5ea   : > { %v5689_v32 = vpack.c.bf16 %v6108_v28, %v6107_v30 }
 0x5eb   : > { %v2062_v7 = vpop.permute.xlu0 %2061  ;;  %v5695_v44 = vpack.c.bf16 %v6113_v36, %v6112_v43 }
 0x5ec   : > { %5220 = vmatprep.mubr.msk.f32.mxu1 %vm1534_vm1, %v2062_v7  ;;  %v2064_v45 = vpop.permute.xlu1 %2063 }
 0x5f0   : > { %5664 = vmatpush3.bf16.xpose.msk.msra.mxu1 %vm6755_vm2, %v5659_v63 }
 0x5f1   : > { %5667 = vmatprep.subr.msk.bf16.mxu1 %vm6755_vm2, %v5665_v11 }
 0x5f8   : > { %5670 = vmatpush3.bf16.xpose.msk.msra.mxu1 %vm6755_vm2, %v5665_v11 }
 0x5f9   : > { %5673 = vmatprep.subr.msk.bf16.mxu1 %vm6755_vm2, %v5671_v18 }
 0x600   : > { %5676 = vmatpush3.bf16.xpose.msk.msra.mxu1 %vm6755_vm2, %v5671_v18 }
 0x601   : > { %5679 = vmatprep.subr.msk.bf16.mxu1 %vm6755_vm2, %v5677_v22 }
 0x608   : > { %5682 = vmatpush3.bf16.xpose.msk.msra.mxu1 %vm6755_vm2, %v5677_v22 }
 0x609   : > { %5685 = vmatprep.subr.msk.bf16.mxu1 %vm6755_vm2, %v5683_v27 }
 0x610   : > { %5688 = vmatpush3.bf16.xpose.msk.msra.mxu1 %vm6755_vm2, %v5683_v27 }
 0x611   : > { %5691 = vmatprep.subr.msk.bf16.mxu1 %vm6755_vm2, %v5689_v32 }
 0x618   : > { %5694 = vmatpush3.bf16.xpose.msk.msra.mxu1 %vm6755_vm2, %v5689_v32 }
 0x619   : > { %5697 = vmatprep.subr.msk.bf16.mxu1 %vm6755_vm2, %v5695_v44 }
 0x620   : > { %5700 = vmatpush3.bf16.xpose.msk.msra.mxu1 %vm6755_vm2, %v5695_v44 }
 0x627   : > { %5221 = vmatmul.mubr.msk.f32.vlgmr.msra.gmra.mrb[22].mxu1 %vm1534_vm1, %v2064_v45 }
 0x6ba   : > { %v7034_v42 = vpop.f32.mrb[20].mxu1 }
 0x6bb   : > { %v7036_v2 = vpop.f32.mrb[21].mxu1 }
 0x6fa   : > { %v5222_v4 = vpop.f32.mrb[22].mxu1 }
 0x6fb   : > { %v2205_v8 = vadd.f32 %v5222_v4, %v6842_v60  ;;  %v2199_v10 = vpop.f32.mrb[23].mxu1 }
 0x6fc   : > { %v7040_v14 = vadd.f32 %v6842_v60, %v2199_v10 }
 0x6fd   : > { %2210 = vmax.xlane.f32.xlu1 %v2205_v8 }
 0x6fe   : > { %2208 = vmax.xlane.f32.xlu0 %v7040_v14 }
 0x70e   : > { %6120 = vrot.lane.b32.xlu1 %v6933_v51, %s7442_s21 }
 0x712   : > { %6140 = vrot.lane.b32.xlu1 %v6939_v52, %s7442_s21 }
 0x714   : > { %6115 = vrot.lane.b32.xlu0 %v6945_v53, %s7442_s21 }
 0x716   : > { %6145 = vrot.lane.b32.xlu1 %v6951_v33, %s7442_s21 }
 0x718   : > { %6125 = vrot.lane.b32.xlu0 %v6957_v35, %s7442_s21 }
 0x71a   : > { %6150 = vrot.lane.b32.xlu1 %v6963_v29, %s7442_s21 }
 0x71c   : > { %6130 = vrot.lane.b32.xlu0 %v6969_v31, %s7442_s21 }
 0x720   : > { %6135 = vrot.lane.b32.xlu0 %v6975_v39, %s7442_s21  ;;  %s7448_s21 = sand.u32 1, %s6400_s1  }
 0x721   : > { %s7124_s15 = sshll.u32 %s7448_s21, 2  ;;  %s7496_s21 = smov 104  }
 0x78a   : > { %v2211_v16 = vpop.xlane.xlu1 %2210 }
 0x78b   : > { %v2213_v47 = vsub.f32 %v2205_v8, %v2211_v16  ;;  %v2209_v48 = vpop.xlane.xlu0 %2208 }
 0x78c   : > { %v2212_v54 = vsub.f32 %v7040_v14, %v2209_v48 }
 0x78d   : > { %v2216_v58 = vmul.f32 1.442695, %v2213_v47 }
 0x78e   : > { %v2214_v59 = vmul.f32 1.442695, %v2212_v54  ;;  %v6121_v56 = vpop.permute.xlu1 %6120 }
 0x78f   : > { %6280 = vpow2.f32 %v2216_v58  ;;  %v6123_v57 = vunpack.i.h.bf16 %v6121_v56  ;;  %v6116_v62 = vpop.permute.xlu0 %6115  ;;  %v6122_v63 = vunpack.i.l.bf16 %v6121_v56 }
 0x790   : > { %6282 = vpow2.f32 %v2214_v59  ;;  %v6118_v1 = vunpack.i.h.bf16 %v6116_v62  ;;  %v6117_v5 = vunpack.i.l.bf16 %v6116_v62 }
 0x791   : > { %v5705_v11 = vpack.c.bf16 %v6123_v57, %v6122_v63 }
 0x792   : > { %v5701_v6 = vpack.c.bf16 %v6118_v1, %v6117_v5  ;;  %v6141_v23 = vpop.permute.xlu1 %6140 }
 0x793   : > { %v6126_v7 = vpop.permute.xlu0 %6125  ;;  %v6143_v34 = vunpack.i.h.bf16 %v6141_v23  ;;  %v6142_v36 = vunpack.i.l.bf16 %v6141_v23 }
 0x794   : > { %v6128_v13 = vunpack.i.h.bf16 %v6126_v7  ;;  %v6127_v12 = vunpack.i.l.bf16 %v6126_v7  ;;  %5702 = vmatprep.subr.bf16.mxu0 %v5701_v6 }
 0x795   : > { %5704 = vmatpush3.bf16.msra.mxu0 %v5701_v6  ;;  %v5721_v44 = vpack.c.bf16 %v6143_v34, %v6142_v36 }
 0x796   : > { %5706 = vmatprep.subr.bf16.mxu0 %v5705_v11  ;;  %v5709_v18 = vpack.c.bf16 %v6128_v13, %v6127_v12  ;;  %v6146_v32 = vpop.permute.xlu1 %6145 }
 0x797   : > { %v6131_v17 = vpop.permute.xlu0 %6130  ;;  %v6148_v45 = vunpack.i.h.bf16 %v6146_v32  ;;  %v6147_v4 = vunpack.i.l.bf16 %v6146_v32 }
 0x798   : > { %v6133_v19 = vunpack.i.h.bf16 %v6131_v17  ;;  %v6132_v20 = vunpack.i.l.bf16 %v6131_v17 }
 0x799   : > { %v6281_v22 = vpop.eup %6280  ;;  %5708 = vmatpush3.bf16.msra.mxu0 %v5705_v11  ;;  %v5725_v10 = vpack.c.bf16 %v6148_v45, %v6147_v4 }
 0x79a   : > { %v6283_v24 = vpop.eup %6282  ;;  %2220 = vadd.xlane.f32.xlu0 %v6281_v22  ;;  %5710 = vmatprep.subr.bf16.mxu0 %v5709_v18  ;;  %v5713_v27 = vpack.c.bf16 %v6133_v19, %v6132_v20  ;;  %v6151_v8 = vpop.permute.xlu1 %6150 }
 0x79b   : > { %2218 = vadd.xlane.f32.xlu1 %v6283_v24  ;;  %v6136_v25 = vpop.permute.xlu0 %6135  ;;  %v6153_v16 = vunpack.i.h.bf16 %v6151_v8  ;;  %v6152_v47 = vunpack.i.l.bf16 %v6151_v8  ;;  %v2672_v8 = vrot.slane %v6928_v50, 7 }
 0x79c   : > { %v6138_v28 = vunpack.i.h.bf16 %v6136_v25  ;;  %v6137_v30 = vunpack.i.l.bf16 %v6136_v25 }
 0x79d   : > { %5712 = vmatpush3.bf16.msra.mxu0 %v5709_v18  ;;  %v5729_v48 = vpack.c.bf16 %v6153_v16, %v6152_v47  ;;  %v2675_v16 = vrot.slane %v7040_v14, 6  ;;  %v2681_v50 = vsel %vm2680_vm3, %v6845_v0, %v2672_v8 }
 0x79e   : > { %5714 = vmatprep.subr.bf16.mxu0 %v5713_v27  ;;  %v5717_v43 = vpack.c.bf16 %v6138_v28, %v6137_v30 }
 0x79f   : > { %v2683_v14 = vsel %vm2682_vm4, %v2681_v50, %v2675_v16 }
 0x7a1   : > { %5716 = vmatpush3.bf16.msra.mxu0 %v5713_v27 }
 0x7a2   : > { %5718 = vmatprep.subr.bf16.mxu0 %v5717_v43 }
 0x7a5   : > { %5720 = vmatpush3.bf16.msra.mxu0 %v5717_v43 }
 0x7a6   : > { %5722 = vmatprep.subr.bf16.mxu0 %v5721_v44 }
 0x7a9   : > { %5724 = vmatpush3.bf16.msra.mxu0 %v5721_v44 }
 0x7aa   : > { %5726 = vmatprep.subr.bf16.mxu0 %v5725_v10 }
 0x7ac   : > { %6160 = vrot.lane.b32.xlu1 %v6765_v55, %s7446_s10 }
 0x7ad   : > { %5728 = vmatpush3.bf16.msra.mxu0 %v5725_v10 }
 0x7ae   : > { %5730 = vmatprep.subr.bf16.mxu0 %v5729_v48 }
 0x7b0   : > { %6155 = vrot.lane.b32.xlu0 %v6759_v49, %s7446_s10  ;;  %6170 = vrot.lane.b32.xlu1 %v6775_v3, %s7446_s10 }
 0x7b1   : > { %5732 = vmatpush3.bf16.msra.mxu0 %v5729_v48 }
 0x7b4   : > { %6165 = vrot.lane.b32.xlu0 %v6769_v61, %s7446_s10  ;;  %6180 = vrot.lane.b32.xlu1 %v6783_v15, %s7446_s10 }
 0x7b8   : > { %6175 = vrot.lane.b32.xlu0 %v6777_v9, %s7446_s10  ;;  %6190 = vrot.lane.b32.xlu1 %v6791_v26, %s7446_s10 }
 0x7bc   : > { %6185 = vrot.lane.b32.xlu0 %v6785_v21, %s7446_s10  ;;  %2351 = vrot.lane.b32.xlu1 %v6746_v38, %s7446_s10 }
 0x7c0   : > { %2349 = vrot.lane.b32.xlu0 %v6748_v40, %s7446_s10  ;;  %s7449_s10 = scalar_lea.vmem [#allocation3], %s7124_s15 }
 0x827   : > { %v2221_v49 = vpop.xlane.xlu0 %2220 }
 0x828   : > { %6284 = vrcp.f32 %v2221_v49  ;;  %v2219_v55 = vpop.xlane.xlu1 %2218 }
 0x829   : > { %6286 = vrcp.f32 %v2219_v55 }
 0x82b   : > { %v6156_v61 = vpop.permute.xlu0 %6155 }
 0x82c   : > { %v6158_v3 = vunpack.i.h.bf16 %v6156_v61  ;;  %v6157_v15 = vunpack.i.l.bf16 %v6156_v61  ;;  %v6161_v58 = vpop.permute.xlu1 %6160 }
 0x82d   : > { %v6163_v59 = vunpack.i.h.bf16 %v6161_v58  ;;  %v6162_v38 = vunpack.i.l.bf16 %v6161_v58 }
 0x82e   : > { %v5733_v9 = vpack.c.bf16 %v6158_v3, %v6157_v15 }
 0x82f   : > { %v6166_v54 = vpop.permute.xlu0 %6165  ;;  %v5739_v62 = vpack.c.bf16 %v6163_v59, %v6162_v38 }
 0x830   : > { %5735 = vmatprep.subr.msk.bf16.mxu0 %vm6755_vm2, %v5733_v9  ;;  %v6168_v1 = vunpack.i.h.bf16 %v6166_v54  ;;  %v6167_v5 = vunpack.i.l.bf16 %v6166_v54  ;;  %v6171_v11 = vpop.permute.xlu1 %6170 }
 0x831   : > { %v6173_v13 = vunpack.i.h.bf16 %v6171_v11  ;;  %v6172_v12 = vunpack.i.l.bf16 %v6171_v11 }
 0x832   : > { %v6285_v21 = vpop.eup %6284  ;;  %v5745_v7 = vpack.c.bf16 %v6168_v1, %v6167_v5 }
 0x833   : > { %v6287_v26 = vpop.eup %6286  ;;  %v6176_v56 = vpop.permute.xlu0 %6175  ;;  %v2225_v40 = vmul.f32 %v6285_v21, %v6281_v22  ;;  %v5751_v17 = vpack.c.bf16 %v6173_v13, %v6172_v12 }
 0x834   : > { %v2224_v57 = vmul.f32 %v6287_v26, %v6283_v24  ;;  %v6178_v18 = vunpack.i.h.bf16 %v6176_v56  ;;  %v6177_v19 = vunpack.i.l.bf16 %v6176_v56  ;;  %v6181_v22 = vpop.permute.xlu1 %6180 }
 0x835   : > { %v6183_v23 = vunpack.i.h.bf16 %v6181_v22  ;;  %v6182_v24 = vunpack.i.l.bf16 %v6181_v22 }
 0x836   : > { %5255 = vmatprep.mubr.f32.mxu0 %v2224_v57  ;;  %v5757_v20 = vpack.c.bf16 %v6178_v18, %v6177_v19 }
 0x837   : > { %v6186_v63 = vpop.permute.xlu0 %6185  ;;  %5256 = vmatmul.mubr.f32.vlgmr.msra.gmra.mrb[20].mxu0 %v2225_v40  ;;  %v5763_v25 = vpack.c.bf16 %v6183_v23, %v6182_v24 }
 0x838   : > { %5738 = vmatpush3.bf16.xpose.msk.msra.mxu0 %vm6755_vm2, %v5733_v9  ;;  %v6188_v27 = vunpack.i.h.bf16 %v6186_v63  ;;  %v6187_v28 = vunpack.i.l.bf16 %v6186_v63  ;;  %v6191_v32 = vpop.permute.xlu1 %6190 }
 0x839   : > { %5741 = vmatprep.subr.msk.bf16.mxu0 %vm6755_vm2, %v5739_v62  ;;  %v6193_v34 = vunpack.i.h.bf16 %v6191_v32  ;;  %v6192_v36 = vunpack.i.l.bf16 %v6191_v32 }
 0x83a   : > { %v5769_v30 = vpack.c.bf16 %v6188_v27, %v6187_v28 }
 0x83b   : > { %v2350_v6 = vpop.permute.xlu0 %2349  ;;  %v5775_v43 = vpack.c.bf16 %v6193_v34, %v6192_v36  ;;  %v2689_v36 = vld [vmem:[%s6507_s19] sm:$0xff] }
 0x83c   : > { %5290 = vmatprep.mubr.msk.f32.mxu0 %vm1534_vm1, %v2350_v6  ;;  %v2352_v44 = vpop.permute.xlu1 %2351 }
 0x840   : > { %5744 = vmatpush3.bf16.xpose.msk.msra.mxu0 %vm6755_vm2, %v5739_v62 }
 0x841   : > { %5747 = vmatprep.subr.msk.bf16.mxu0 %vm6755_vm2, %v5745_v7 }
 0x848   : > { %5750 = vmatpush3.bf16.xpose.msk.msra.mxu0 %vm6755_vm2, %v5745_v7 }
 0x849   : > { %5753 = vmatprep.subr.msk.bf16.mxu0 %vm6755_vm2, %v5751_v17 }
 0x850   : > { %5756 = vmatpush3.bf16.xpose.msk.msra.mxu0 %vm6755_vm2, %v5751_v17 }
 0x851   : > { %5759 = vmatprep.subr.msk.bf16.mxu0 %vm6755_vm2, %v5757_v20 }
 0x858   : > { %5762 = vmatpush3.bf16.xpose.msk.msra.mxu0 %vm6755_vm2, %v5757_v20 }
 0x859   : > { %5765 = vmatprep.subr.msk.bf16.mxu0 %vm6755_vm2, %v5763_v25 }
 0x860   : > { %5768 = vmatpush3.bf16.xpose.msk.msra.mxu0 %vm6755_vm2, %v5763_v25 }
 0x861   : > { %5771 = vmatprep.subr.msk.bf16.mxu0 %vm6755_vm2, %v5769_v30 }
 0x868   : > { %5774 = vmatpush3.bf16.xpose.msk.msra.mxu0 %vm6755_vm2, %v5769_v30 }
 0x869   : > { %5777 = vmatprep.subr.msk.bf16.mxu0 %vm6755_vm2, %v5775_v43 }
 0x870   : > { %5780 = vmatpush3.bf16.xpose.msk.msra.mxu0 %vm6755_vm2, %v5775_v43  ;;  %v2690_v43 = vld [vmem:[%s6507_s19 + $0x8] sm:$0xff] }
 0x877   : > { %5291 = vmatmul.mubr.msk.f32.vlgmr.msra.gmra.mrb[22].mxu0 %vm1534_vm1, %v2352_v44  ;;  %v5813_v44 = vpack.c.bf16 %v2690_v43, %v2689_v36 }
 0x90a   : > { %v7114_v45 = vpop.f32.mrb[20].mxu0 }
 0x90b   : > { %v7116_v4 = vpop.f32.mrb[21].mxu0 }
 0x94a   : > { %v5292_v10 = vpop.f32.mrb[22].mxu0 }
 0x94b   : > { %v2493_v47 = vadd.f32 %v5292_v10, %v6842_v60  ;;  %v2487_v48 = vpop.f32.mrb[23].mxu0 }
 0x94c   : > { %v2488_v49 = vadd.f32 %v6842_v60, %v2487_v48 }
 0x94d   : > { %2498 = vmax.xlane.f32.xlu1 %v2493_v47 }
 0x94e   : > { %v2678_v55 = vrot.slane %v2488_v49, 5  ;;  %2496 = vmax.xlane.f32.xlu0 %v2488_v49 }
 0x950   : > { %v2685_v61 = vsel %vm2684_vm5, %v2683_v14, %v2678_v55 }
 0x951   : > { %2686 = vst [vmem:[%s7449_s10] sm:$0xf] %v2685_v61  ;;  %s7454_s10 = smov 8  }
 0x95e   : > { %6200 = vrot.lane.b32.xlu1 %v6933_v51, %s7496_s21 }
 0x962   : > { %6210 = vrot.lane.b32.xlu1 %v6969_v31, %s7496_s21 }
 0x964   : > { %6195 = vrot.lane.b32.xlu0 %v6945_v53, %s7496_s21 }
 0x966   : > { %6220 = vrot.lane.b32.xlu1 %v6939_v52, %s7496_s21 }
 0x968   : > { %6205 = vrot.lane.b32.xlu0 %v6957_v35, %s7496_s21 }
 0x96c   : > { %6215 = vrot.lane.b32.xlu0 %v6975_v39, %s7496_s21 }
 0x9da   : > { %v2499_v60 = vpop.xlane.xlu1 %2498 }
 0x9db   : > { %v2501_v0 = vsub.f32 %v2493_v47, %v2499_v60  ;;  %v2497_v3 = vpop.xlane.xlu0 %2496 }
 0x9dc   : > { %v2500_v15 = vsub.f32 %v2488_v49, %v2497_v3 }
 0x9dd   : > { %v2504_v51 = vmul.f32 1.442695, %v2501_v0 }
 0x9de   : > { %v2502_v9 = vmul.f32 1.442695, %v2500_v15  ;;  %v6201_v54 = vpop.permute.xlu1 %6200 }
 0x9df   : > { %6288 = vpow2.f32 %v2504_v51  ;;  %v6203_v31 = vunpack.i.h.bf16 %v6201_v54  ;;  %v6196_v58 = vpop.permute.xlu0 %6195  ;;  %v6202_v53 = vunpack.i.l.bf16 %v6201_v54 }
 0x9e0   : > { %6290 = vpow2.f32 %v2502_v9  ;;  %v6198_v21 = vunpack.i.h.bf16 %v6196_v58  ;;  %v6197_v52 = vunpack.i.l.bf16 %v6196_v58  ;;  %v4646_v9 = vld [vmem:[%s6512_s24] ss:$0 sm:$0xff] }
 0x9e1   : > { %v5785_v35 = vpack.c.bf16 %v6203_v31, %v6202_v53 }
 0x9e2   : > { %v5781_v26 = vpack.c.bf16 %v6198_v21, %v6197_v52  ;;  %v6211_v39 = vpop.permute.xlu1 %6210  ;;  %v6344_v21 = vld [vmem:[%s6682_s16 + $0x8] sm:$0xff] }
 0x9e3   : > { %v6206_v59 = vpop.permute.xlu0 %6205  ;;  %v6213_v57 = vunpack.i.h.bf16 %v6211_v39  ;;  %v6212_v40 = vunpack.i.l.bf16 %v6211_v39 }
 0x9e4   : > { %v6208_v38 = vunpack.i.h.bf16 %v6206_v59  ;;  %v6207_v56 = vunpack.i.l.bf16 %v6206_v59  ;;  %5782 = vmatprep.subr.bf16.mxu1 %v5781_v26 }
 0x9e5   : > { %5784 = vmatpush3.bf16.msra.mxu1 %v5781_v26  ;;  %v5793_v6 = vpack.c.bf16 %v6213_v57, %v6212_v40  ;;  %v6345_v26 = vld [vmem:[%s6682_s16] sm:$0xff]  ;;  %s7497_s16 = sld [smem:[#allocation14_spill]] }
 0x9e6   : > { %5786 = vmatprep.subr.bf16.mxu1 %v5785_v35  ;;  %v5789_v62 = vpack.c.bf16 %v6208_v38, %v6207_v56  ;;  %v6221_v13 = vpop.permute.xlu1 %6220 }
 0x9e7   : > { %v6216_v1 = vpop.permute.xlu0 %6215  ;;  %v6223_v12 = vunpack.i.h.bf16 %v6221_v13  ;;  %v6222_v17 = vunpack.i.l.bf16 %v6221_v13  ;;  %v2830_v13 = vld [vmem:[%s7484_s12 + $0x8] sm:$0xff] }
 0x9e8   : > { %v6218_v7 = vunpack.i.h.bf16 %v6216_v1  ;;  %v6217_v11 = vunpack.i.l.bf16 %v6216_v1 }
 0x9e9   : > { %v6289_v63 = vpop.eup %6288  ;;  %5788 = vmatpush3.bf16.msra.mxu1 %v5785_v35  ;;  %v5801_v19 = vpack.c.bf16 %v6223_v12, %v6222_v17  ;;  %v2921_v17 = vld [vmem:[%s6537_s27] sm:$0xff] }
 0x9ea   : > { %v6291_v5 = vpop.eup %6290  ;;  %2508 = vadd.xlane.f32.xlu1 %v6289_v63  ;;  %5790 = vmatprep.subr.bf16.mxu1 %v5789_v62  ;;  %v5797_v18 = vpack.c.bf16 %v6218_v7, %v6217_v11  ;;  %v2829_v11 = vld [vmem:[%s7484_s12] sm:$0xff] }
 0x9eb   : > { %2506 = vadd.xlane.f32.xlu0 %v6291_v5  ;;  %v5821_v12 = vpack.c.bf16 %v2830_v13, %v2829_v11 }
 0x9ed   : > { %5792 = vmatpush3.bf16.msra.mxu1 %v5789_v62  ;;  %5822 = vmatprep.subr.bf16.mxu0 %v5821_v12 }
 0x9ee   : > { %5794 = vmatprep.subr.bf16.mxu1 %v5793_v6  ;;  %5824 = vmatpush3.bf16.msra.mxu0 %v5821_v12 }
 0x9f1   : > { %5796 = vmatpush3.bf16.msra.mxu1 %v5793_v6 }
 0x9f2   : > { %5798 = vmatprep.subr.bf16.mxu1 %v5797_v18 }
 0x9f5   : > { %5800 = vmatpush3.bf16.msra.mxu1 %v5797_v18  ;;  %v2922_v18 = vld [vmem:[%s6537_s27 + $0x8] sm:$0xff] }
 0x9f6   : > { %5802 = vmatprep.subr.bf16.mxu1 %v5801_v19 }
 0x9f9   : > { %5804 = vmatpush3.bf16.msra.mxu1 %v5801_v19  ;;  %v5829_v19 = vpack.c.bf16 %v2922_v18, %v2921_v17 }
 0x9fb   : > { %6230 = vrot.lane.b32.xlu1 %v6963_v29, %s7496_s21 }
 0x9ff   : > { %2641 = vrot.lane.b32.xlu1 %v7034_v42, %s7454_s10 }
 0xa01   : > { %6225 = vrot.lane.b32.xlu0 %v6951_v33, %s7496_s21 }
 0xa03   : > { %2649 = vrot.lane.b32.xlu1 %v7114_v45, %s7450_s3  ;;  %v2691_v45 = vld [vmem:[%s6507_s19 + $0x10] sm:$0xff] }
 0xa05   : > { %2639 = vrot.lane.b32.xlu0 %v7036_v2, %s7454_s10  ;;  %s7499_s10 = sld [smem:[#allocation18_spill]] }
 0xa09   : > { %2647 = vrot.lane.b32.xlu0 %v7116_v4, %s7450_s3  ;;  %v2692_v4 = vld [vmem:[%s6507_s19 + $0x18] sm:$0xff]  ;;  %s7452_s3 = smov 24  }
 0xa0a   : > { %v5817_v8 = vpack.c.bf16 %v2692_v4, %v2691_v45 }
 0xa77   : > { %v2509_v20 = vpop.xlane.xlu1 %2508 }
 0xa78   : > { %v2507_v22 = vpop.xlane.xlu0 %2506 }
 0xa79   : > { %6292 = vrcp.f32 %v2507_v22  ;;  %v2832_v22 = vld [vmem:[%s7484_s12 + $0x18] sm:$0xff] }
 0xa7a   : > { %6294 = vrcp.f32 %v2509_v20  ;;  %v2831_v20 = vld [vmem:[%s7484_s12 + $0x10] sm:$0xff]  ;;  %s6448_s12 = smov [#allocation3]  }
 0xa7b   : > { %v6231_v29 = vpop.permute.xlu1 %6230  ;;  %s6350_s13 = sshll.u32 %s6448_s12, 4  ;;  %s6351_s13 = int_to_ptr.vmem [resolvable:$false] %s6350_s13 }
 0xa7c   : > { %v6226_v23 = vpop.permute.xlu0 %6225  ;;  %v6233_v42 = vunpack.i.h.bf16 %v6231_v29  ;;  %v6232_v24 = vunpack.i.l.bf16 %v6231_v29  ;;  %v5825_v29 = vpack.c.bf16 %v2832_v22, %v2831_v20  ;;  %s6352_s14 = scalar_lea.vmem %s6351_s13, 128 }
 0xa7d   : > { %v6228_v33 = vunpack.i.h.bf16 %v6226_v23  ;;  %v6227_v25 = vunpack.i.l.bf16 %v6226_v23  ;;  %v2923_v23 = vld [vmem:[%s6537_s27 + $0x10] sm:$0xff] }
 0xa7e   : > { %v5809_v28 = vpack.c.bf16 %v6233_v42, %v6232_v24  ;;  %v2924_v42 = vld [vmem:[%s6537_s27 + $0x18] sm:$0xff]  ;;  %5826 = vmatprep.subr.bf16.mxu0 %v5825_v29 }
 0xa7f   : > { %v5805_v27 = vpack.c.bf16 %v6228_v33, %v6227_v25  ;;  %v2642_v47 = vpop.permute.xlu1 %2641  ;;  %v5833_v24 = vpack.c.bf16 %v2924_v42, %v2923_v23  ;;  %5828 = vmatpush3.bf16.msra.mxu0 %v5825_v29  ;;  %v3007_v33 = vld [vmem:[%s6547_s17] sm:$0xff]  ;;  %v3008_v25 = vld [vmem:[%s6547_s17 + $0x8] sm:$0xff] }
 0xa80   : > { %v2640_v48 = vpop.permute.xlu0 %2639  ;;  %v2662_v50 = vsel %vm1534_vm1, %v6922_v37, %v2642_v47 }
 0xa81   : > { %5806 = vmatprep.subr.bf16.mxu1 %v5805_v27  ;;  %v2661_v14 = vsel %vm1534_vm1, %v6924_v41, %v2640_v48  ;;  %v3009_v48 = vld [vmem:[%s6547_s17 + $0x10] sm:$0xff] }
 0xa82   : > { %5808 = vmatpush3.bf16.msra.mxu1 %v5805_v27  ;;  %v5837_v27 = vpack.c.bf16 %v3008_v25, %v3007_v33 }
 0xa83   : > { %v6293_v2 = vpop.eup %6292  ;;  %5810 = vmatprep.subr.bf16.mxu1 %v5809_v28  ;;  %v2650_v49 = vpop.permute.xlu1 %2649 }
 0xa84   : > { %v6295_v30 = vpop.eup %6294  ;;  %v2512_v32 = vmul.f32 %v6293_v2, %v6291_v5  ;;  %v2648_v55 = vpop.permute.xlu0 %2647  ;;  %v2665_v61 = vsel %vm2663_vm6, %v2662_v50, %v2650_v49  ;;  %5838 = vmatprep.subr.bf16.mxu0 %v5837_v27  ;;  %v3010_v49 = vld [vmem:[%s6547_s17 + $0x18] sm:$0xff] }
 0xa85   : > { %v2513_v34 = vmul.f32 %v6295_v30, %v6289_v63  ;;  %v2664_v0 = vsel %vm2663_vm6, %v2661_v14, %v2648_v55  ;;  %v5841_v14 = vpack.c.bf16 %v3010_v49, %v3009_v48 }
 0xa86   : > { %5812 = vmatpush3.bf16.msra.mxu1 %v5809_v28  ;;  %5325 = vmatprep.mubr.f32.mxu1 %v2512_v32 }
 0xa87   : > { %5814 = vmatprep.subr.bf16.mxu1 %v5813_v44 }
 0xa89   : > { %5326 = vmatmul.mubr.f32.vlgmr.msra.gmra.mrb[24].mxu1 %v2513_v34 }
 0xa8a   : > { %5816 = vmatpush3.bf16.msra.mxu1 %v5813_v44  ;;  %v4649_v44 = vld [vmem:[%s7497_s16] ss:$0 sm:$0xff]  ;;  %s7502_s16 = smov 120  }
 0xa8b   : > { %5818 = vmatprep.subr.bf16.mxu1 %v5817_v8 }
 0xa8e   : > { %5820 = vmatpush3.bf16.msra.mxu1 %v5817_v8 }
 0xa8f   : > { %5830 = vmatprep.subr.bf16.mxu1 %v5829_v19 }
 0xb5c   : > { %v5327_v10 = vpop.f32.mrb[24].mxu1 }
 0xb5d   : > { %2657 = vrot.lane.b32.xlu1 %v5327_v10, %s7452_s3  ;;  %v2628_v16 = vpop.f32.mrb[25].mxu1 }
 0xb5e   : > { %2655 = vrot.lane.b32.xlu0 %v2628_v16, %s7452_s3  ;;  %s7498_s3 = sld [smem:[#allocation15_spill]] }
 0xb64   : > { %v4650_v4 = vld [vmem:[%s7498_s3] ss:$0 sm:$0xff]  ;;  %s7501_s3 = sld [smem:[#allocation19_spill]] }
 0xbcf   : > { %v2658_v60 = vpop.permute.xlu1 %2657 }
 0xbd0   : > { %v2668_v3 = vsel %vm2666_vm7, %v2665_v61, %v2658_v60  ;;  %v2656_v15 = vpop.permute.xlu0 %2655  ;;  %v4654_v61 = vld [vmem:[%s7499_s10] ss:$0 sm:$0xff] }
 0xbd1   : > { %2670 = vst.msk [vmem:[#allocation2 + $0x8] sm:$0xff] %vm1086_vm0, %v2668_v3  ;;  %v2667_v51 = vsel %vm2666_vm7, %v2664_v0, %v2656_v15  ;;  %v4651_v60 = vld [vmem:[%s7500_s5] ss:$0 sm:$0xff]  ;;  %s7503_s5 = sld [smem:[#allocation9_spill]] }
 0xbd2   : > { %2669 = vst.msk [vmem:[#allocation2] sm:$0xff] %vm1086_vm0, %v2667_v51 }
 0xbd7   : > { %s1046_s10 = scalar_lea.vmem %s7503_s5, %s6673_s26 }
 0xbd8   : > { %v2688_v41 = vld [vmem:[#allocation2 + $0x8] sm:$0xff] }
 0xbd9   : > { %v2687_v37 = vld [vmem:[#allocation2] sm:$0xff] }
 0xbda   : > { %5336 = vmatprep.mubr.msk.f32.mxu1 %vm1086_vm0, %v2687_v37 }
 0xbdb   : > { %5337 = vmatmul.mubr.msk.f32.vlgmr.msra.gmra.mrb[26].mxu1 %vm1086_vm0, %v2688_v41 }
 0xbdc   : > { %5832 = vmatpush3.bf16.msra.mxu1 %v5829_v19 }
 0xbdd   : > { %5834 = vmatprep.subr.bf16.mxu1 %v5833_v24 }
 0xbe0   : > { %5836 = vmatpush3.bf16.msra.mxu1 %v5833_v24 }
 0xcae   : > { %v5338_v54 = vpop.f32.mrb[26].mxu1 }
 0xcaf   : > { %v2778_v31 = vadd.f32 %v5338_v54, %v4646_v9  ;;  %v2772_v58 = vpop.f32.mrb[27].mxu1 }
 0xcb0   : > { %v2773_v53 = vadd.f32 %v4646_v9, %v2772_v58 }
 0xcb1   : > { %v2782_v52 = vadd.f32 %v6344_v21, %v2778_v31 }
 0xcb2   : > { %v2781_v59 = vadd.f32 %v6345_v26, %v2773_v53  ;;  %v4657_v53 = vld [vmem:[%s7501_s3] ss:$0 sm:$0xff]  ;;  %s7504_s3 = smov 112  }
 0xcb3   : > { %v2788_v35 = vsel %vm1086_vm0, %v2782_v52, 0.0 }
 0xcb4   : > { %2789 = vadd.xlane.f32.xlu1 %v2788_v35  ;;  %v2785_v38 = vsel %vm1086_vm0, %v2781_v59, 0.0 }
 0xcb5   : > { %2786 = vadd.xlane.f32.xlu0 %v2785_v38 }
 0xd41   : > { %v2790_v56 = vpop.xlane.xlu1 %2789 }
 0xd42   : > { %v2793_v39 = vmul.f32 0.03125, %v2790_v56  ;;  %v2787_v57 = vpop.xlane.xlu0 %2786 }
 0xd43   : > { %v2792_v40 = vmul.f32 0.03125, %v2787_v57 }
 0xd44   : > { %v2795_v62 = vsub.f32 %v2782_v52, %v2793_v39 }
 0xd45   : > { %v2794_v63 = vsub.f32 %v2781_v59, %v2792_v40 }
 0xd46   : > { %v2797_v6 = vmul.f32 %v2795_v62, %v2795_v62 }
 0xd47   : > { %v2796_v1 = vmul.f32 %v2794_v63, %v2794_v63 }
 0xd48   : > { %v2801_v7 = vsel %vm1086_vm0, %v2797_v6, 0.0 }
 0xd49   : > { %v2798_v5 = vsel %vm1086_vm0, %v2796_v1, 0.0  ;;  %v7246_v1 = vld [vmem:[%s1046_s10] ss:$0 sm:$0xff]  ;;  %s7506_s10 = smov 8  }
 0xd4a   : > { %2799 = vadd.xlane.f32.xlu0 %v2798_v5 }
 0xd4e   : > { %2802 = vadd.xlane.f32.xlu0 %v2801_v7 }
 0xdd7   : > { %v2800_v28 = vpop.xlane.xlu0 %2799 }
 0xdd8   : > { %v2804_v2 = vmul.f32 0.03125, %v2800_v28 }
 0xdda   : > { %v2806_v30 = vadd.f32 1e-12, %v2804_v2 }
 0xddb   : > { %v2803_v32 = vpop.xlane.xlu0 %2802 }
 0xddc   : > { %6296 = vrsqrt.f32 %v2806_v30  ;;  %v2805_v34 = vmul.f32 0.03125, %v2803_v32 }
 0xdde   : > { %v2807_v36 = vadd.f32 1e-12, %v2805_v34 }
 0xde0   : > { %6298 = vrsqrt.f32 %v2807_v36 }
 0xde6   : > { %v6297_v43 = vpop.eup %6296 }
 0xde7   : > { %v2810_v45 = vmul.f32 %v6297_v43, %v2794_v63 }
 0xde9   : > { %v2818_v8 = vmul.f32 %v4649_v44, %v2810_v45 }
 0xdea   : > { %v6299_v10 = vpop.eup %6298 }
 0xdeb   : > { %v2811_v16 = vmul.f32 %v6299_v10, %v2795_v62  ;;  %v7195_v47 = vadd.f32 %v4650_v4, %v2818_v8 }
 0xded   : > { %v2819_v55 = vmul.f32 %v4649_v44, %v2811_v16  ;;  %5347 = vmatprep.mubr.msk.f32.mxu0 %vm1086_vm0, %v7195_v47  ;;  %5358 = vmatprep.mubr.msk.f32.mxu1 %vm1086_vm0, %v7195_v47 }
 0xdef   : > { %v7203_v50 = vadd.f32 %v4650_v4, %v2819_v55 }
 0xdf1   : > { %5348 = vmatmul.mubr.msk.f32.vlgmr.msra.gmra.mrb[24].mxu0 %vm1086_vm0, %v7203_v50  ;;  %5359 = vmatmul.mubr.msk.f32.vlgmr.msra.gmra.mrb[28].mxu1 %vm1086_vm0, %v7203_v50 }
 0xdf2   : > { %5840 = vmatpush3.bf16.msra.mxu0 %v5837_v27  ;;  %5369 = vmatprep.mubr.msk.f32.mxu0 %vm1086_vm0, %v7195_v47 }
 0xdf3   : > { %5842 = vmatprep.subr.bf16.mxu0 %v5841_v14 }
 0xdf6   : > { %5844 = vmatpush3.bf16.msra.mxu0 %v5841_v14 }
 0xdf9   : > { %5370 = vmatmul.mubr.msk.f32.vlgmr.msra.gmra.mrb[26].mxu0 %vm1086_vm0, %v7203_v50 }
 0xec4   : > { %v5349_v0 = vpop.f32.mrb[24].mxu0  ;;  %v5360_v3 = vpop.f32.mrb[28].mxu1 }
 0xec5   : > { %v3004_v15 = vadd.f32 %v5360_v3, %v4654_v61  ;;  %v2912_v51 = vpop.f32.mrb[25].mxu0  ;;  %v2998_v37 = vpop.f32.mrb[29].mxu1  ;;  %v7223_v58 = vadd.f32 %v5349_v0, %v4651_v60 }
 0xec6   : > { %v7215_v41 = vadd.f32 %v4651_v60, %v2912_v51  ;;  %v2999_v9 = vadd.f32 %v4654_v61, %v2998_v37 }
 0xec8   : > { %3289 = vrot.lane.b32.xlu1 %v7215_v41, %s7502_s16  ;;  %5376 = vmatprep.mubr.msk.f32.mxu1 %vm1534_vm1, %v7215_v41  ;;  %v7221_v54 = vpack.i.bf16 %v3004_v15, %v2999_v9  ;;  %v5845_v31 = vpack.c.bf16 %v3004_v15, %v2999_v9 }
 0xeca   : > { %6235 = vrot.lane.b32.xlu0 %v7221_v54, %s7502_s16  ;;  %5847 = vmatprep.subr.msk.bf16.mxu1 %vm6755_vm2, %v5845_v31 }
 0xecb   : > { %5850 = vmatpush3.bf16.xpose.msk.msra.mxu1 %vm6755_vm2, %v5845_v31 }
 0xecc   : > { %v5371_v21 = vpop.f32.mrb[26].mxu0  ;;  %3291 = vrot.lane.b32.xlu1 %v7223_v58, %s7502_s16 }
 0xecd   : > { %v3090_v52 = vadd.f32 %v5371_v21, %v4657_v53  ;;  %v3084_v26 = vpop.f32.mrb[27].mxu0 }
 0xece   : > { %v3085_v59 = vadd.f32 %v4657_v53, %v3084_v26 }
 0xed0   : > { %v5851_v35 = vpack.c.bf16 %v3090_v52, %v3085_v59  ;;  %v7234_v38 = vpack.i.bf16 %v3090_v52, %v3085_v59 }
 0xed2   : > { %5852 = vmatprep.subr.bf16.mxu0 %v5851_v35  ;;  %5377 = vmatmul.mubr.msk.f32.vlgmr.msra.gmra.mrb[30].mxu1 %vm1534_vm1, %v7223_v58 }
 0xed3   : > { %5854 = vmatpush3.bf16.msra.mxu0 %v5851_v35 }
 0xf3a   : > { %v3290_v56 = vpop.permute.xlu1 %3289 }
 0xf3b   : > { %5390 = vmatprep.mubr.msk.f32.mxu1 %vm1534_vm1, %v3290_v56 }
 0xf3c   : > { %v6236_v39 = vpop.permute.xlu0 %6235 }
 0xf3d   : > { %v6238_v57 = vunpack.i.h.bf16 %v6236_v39  ;;  %v6237_v40 = vunpack.i.l.bf16 %v6236_v39 }
 0xf3e   : > { %v3292_v63 = vpop.permute.xlu1 %3291 }
 0xf3f   : > { %v5855_v62 = vpack.c.bf16 %v6238_v57, %v6237_v40 }
 0xf41   : > { %5857 = vmatprep.subr.msk.bf16.mxu1 %vm6755_vm2, %v5855_v62 }
 0xf42   : > { %5860 = vmatpush3.bf16.xpose.msk.msra.mxu1 %vm6755_vm2, %v5855_v62 }
 0xf49   : > { %5391 = vmatmul.mubr.msk.f32.vlgmr.msra.gmra.mrb[32].mxu1 %vm1534_vm1, %v3292_v63 }
 0xfa5   : > { %v5378_v5 = vpop.f32.mrb[30].mxu1 }
 0xfa6   : > { %v3183_v6 = vadd.f32 %v5378_v5, %v7246_v1  ;;  %v3177_v7 = vpop.f32.mrb[31].mxu1 }
 0xfa7   : > { %v7250_v11 = vadd.f32 %v7246_v1, %v3177_v7 }
 0xfa8   : > { %v3189_v13 = vsel %vm2663_vm6, %v3183_v6, -inf }
 0xfa9   : > { %3190 = vmax.xlane.f32.xlu0 %v3189_v13  ;;  %v3186_v12 = vsel %vm2663_vm6, %v7250_v11, -inf }
 0xfaa   : > { %3187 = vmax.xlane.f32.xlu1 %v3186_v12 }
 0xfbb   : > { %6240 = vrot.lane.b32.xlu1 %v7234_v38, %s7502_s16  ;;  %s4535_s16 = sshll.u32 %s6673_s26, 2 }
 0xfbc   : > { %s1055_s5 = scalar_lea.vmem %s7505_s6, %s4535_s16  ;;  %s7509_s16 = smov 24  }
0x101c   : > { %v5392_v17 = vpop.f32.mrb[32].mxu1 }
0x101d   : > { %v3371_v18 = vpop.f32.mrb[33].mxu1  ;;  %v3377_v20 = vadd.f32 %v5392_v17, %v7246_v1 }
0x101e   : > { %v7258_v19 = vadd.f32 %v7246_v1, %v3371_v18 }
0x101f   : > { %v3383_v29 = vsel %vm2663_vm6, %v3377_v20, -inf }
0x1020   : > { %v3380_v22 = vsel %vm2663_vm6, %v7258_v19, -inf }
0x1021   : > { %3381 = vmax.xlane.f32.xlu0 %v3380_v22 }
0x1025   : > { %3384 = vmax.xlane.f32.xlu0 %v3383_v29 }
0x1036   : > { %v3191_v23 = vpop.xlane.xlu0 %3190 }
0x1037   : > { %v3193_v42 = vsub.f32 %v3183_v6, %v3191_v23  ;;  %v3188_v24 = vpop.xlane.xlu1 %3187 }
0x1038   : > { %v3192_v33 = vsub.f32 %v7250_v11, %v3188_v24 }
0x1039   : > { %v3196_v25 = vmul.f32 1.442695, %v3193_v42 }
0x103a   : > { %v3194_v27 = vmul.f32 1.442695, %v3192_v33 }
0x103b   : > { %6300 = vpow2.f32 %v3196_v25  ;;  %v6241_v28 = vpop.permute.xlu1 %6240 }
0x103c   : > { %6302 = vpow2.f32 %v3194_v27  ;;  %v6243_v2 = vunpack.i.h.bf16 %v6241_v28  ;;  %v6242_v30 = vunpack.i.l.bf16 %v6241_v28 }
0x103e   : > { %v5861_v32 = vpack.c.bf16 %v6243_v2, %v6242_v30 }
0x1040   : > { %5862 = vmatprep.subr.bf16.mxu0 %v5861_v32 }
0x1045   : > { %v6301_v34 = vpop.eup %6300 }
0x1046   : > { %v6303_v36 = vpop.eup %6302  ;;  %v3201_v43 = vsel %vm2663_vm6, %v6301_v34, 0.0 }
0x1047   : > { %3202 = vadd.xlane.f32.xlu0 %v3201_v43  ;;  %v3198_v44 = vsel %vm2663_vm6, %v6303_v36, 0.0 }
0x1048   : > { %3199 = vadd.xlane.f32.xlu1 %v3198_v44 }
0x1059   : > { %3491 = vrot.lane.b32.xlu1 %v7215_v41, %s7504_s3 }
0x10ae   : > { %v3382_v45 = vpop.xlane.xlu0 %3381 }
0x10af   : > { %v3386_v4 = vsub.f32 %v7258_v19, %v3382_v45 }
0x10b1   : > { %v3388_v8 = vmul.f32 1.442695, %v3386_v4 }
0x10b2   : > { %v3385_v10 = vpop.xlane.xlu0 %3384 }
0x10b3   : > { %6304 = vpow2.f32 %v3388_v8  ;;  %v3387_v16 = vsub.f32 %v3377_v20, %v3385_v10 }
0x10b5   : > { %v3390_v48 = vmul.f32 1.442695, %v3387_v16 }
0x10b7   : > { %6306 = vpow2.f32 %v3390_v48 }
0x10bd   : > { %v6305_v49 = vpop.eup %6304 }
0x10be   : > { %v3392_v55 = vsel %vm2663_vm6, %v6305_v49, 0.0 }
0x10bf   : > { %3393 = vadd.xlane.f32.xlu1 %v3392_v55 }
0x10c1   : > { %v6307_v14 = vpop.eup %6306 }
0x10c2   : > { %v3395_v61 = vsel %vm2663_vm6, %v6307_v14, 0.0 }
0x10c3   : > { %3396 = vadd.xlane.f32.xlu0 %v3395_v61  ;;  %v3924_v61 = vrot.slane %v7258_v19, 7 }
0x10d0   : > { %3493 = vrot.lane.b32.xlu1 %v7223_v58, %s7504_s3 }
0x10d4   : > { %v3203_v60 = vpop.xlane.xlu0 %3202 }
0x10d5   : > { %6308 = vrcp.f32 %v3203_v60  ;;  %v3200_v0 = vpop.xlane.xlu1 %3199 }
0x10d6   : > { %6310 = vrcp.f32 %v3200_v0 }
0x10d9   : > { %6245 = vrot.lane.b32.xlu0 %v7221_v54, %s7504_s3  ;;  %v3492_v9 = vpop.permute.xlu1 %3491 }
0x10df   : > { %v6309_v3 = vpop.eup %6308 }
0x10e0   : > { %v6311_v15 = vpop.eup %6310  ;;  %v3207_v37 = vmul.f32 %v6309_v3, %v6301_v34 }
0x10e1   : > { %v3206_v51 = vmul.f32 %v6311_v15, %v6303_v36 }
0x10e3   : > { %5383 = vmatprep.mubr.msk.f32.mxu0 %vm2663_vm6, %v3206_v51 }
0x10e4   : > { %5384 = vmatmul.mubr.msk.f32.vlgmr.msra.gmra.mrb[28].mxu0 %vm2663_vm6, %v3207_v37  ;;  %v3932_v37 = vsel %vm2680_vm3, %v7250_v11, %v3924_v61 }
0x10e5   : > { %5864 = vmatpush3.bf16.msra.mxu0 %v5861_v32 }
0x114c   : > { %v3394_v31 = vpop.xlane.xlu1 %3393 }
0x114d   : > { %6312 = vrcp.f32 %v3394_v31 }
0x1150   : > { %v3397_v53 = vpop.xlane.xlu0 %3396  ;;  %v3494_v40 = vpop.permute.xlu1 %3493 }
0x1151   : > { %6314 = vrcp.f32 %v3397_v53 }
0x1154   : > { %v6246_v21 = vpop.permute.xlu0 %6245 }
0x1155   : > { %v6248_v52 = vunpack.i.h.bf16 %v6246_v21  ;;  %v6247_v26 = vunpack.i.l.bf16 %v6246_v21 }
0x1157   : > { %v6313_v59 = vpop.eup %6312  ;;  %v5865_v35 = vpack.c.bf16 %v6248_v52, %v6247_v26 }
0x1158   : > { %v3400_v56 = vmul.f32 %v6313_v59, %v6305_v49 }
0x1159   : > { %5867 = vmatprep.subr.msk.bf16.mxu0 %vm6755_vm2, %v5865_v35 }
0x115a   : > { %5397 = vmatprep.mubr.msk.f32.mxu0 %vm2663_vm6, %v3400_v56 }
0x115b   : > { %v6315_v39 = vpop.eup %6314 }
0x115c   : > { %v3401_v57 = vmul.f32 %v6315_v39, %v6307_v14 }
0x115e   : > { %5398 = vmatmul.mubr.msk.f32.vlgmr.msra.gmra.mrb[30].mxu0 %vm2663_vm6, %v3401_v57 }
0x115f   : > { %5870 = vmatpush3.bf16.xpose.msk.msra.mxu0 %vm6755_vm2, %v5865_v35  ;;  %5404 = vmatprep.mubr.msk.f32.mxu0 %vm1534_vm1, %v3492_v9 }
0x1166   : > { %5405 = vmatmul.mubr.msk.f32.vlgmr.msra.gmra.mrb[32].mxu0 %vm1534_vm1, %v3494_v40 }
0x11b7   : > { %v7286_v62 = vpop.f32.mrb[28].mxu0 }
0x11b8   : > { %v7288_v63 = vpop.f32.mrb[29].mxu0 }
0x1231   : > { %v7290_v5 = vpop.f32.mrb[30].mxu0 }
0x1232   : > { %v7292_v6 = vpop.f32.mrb[31].mxu0 }
0x1239   : > { %v5406_v7 = vpop.f32.mrb[32].mxu0 }
0x123a   : > { %v3579_v13 = vadd.f32 %v5406_v7, %v7246_v1  ;;  %v3573_v12 = vpop.f32.mrb[33].mxu0 }
0x123b   : > { %v7296_v17 = vadd.f32 %v7246_v1, %v3573_v12 }
0x123c   : > { %v3585_v18 = vsel %vm2663_vm6, %v3579_v13, -inf }
0x123d   : > { %3586 = vmax.xlane.f32.xlu0 %v3585_v18  ;;  %v3582_v20 = vsel %vm2663_vm6, %v7296_v17, -inf  ;;  %v3927_v0 = vrot.slane %v7296_v17, 6 }
0x123e   : > { %3583 = vmax.xlane.f32.xlu1 %v3582_v20 }
0x123f   : > { %v3933_v19 = vsel %vm2682_vm4, %v3932_v37, %v3927_v0 }
0x124f   : > { %6250 = vrot.lane.b32.xlu1 %v7234_v38, %s7504_s3  ;;  %s7507_s3 = smov 16  }
0x1253   : > { %3691 = vrot.lane.b32.xlu1 %v7215_v41, %s7496_s21 }
0x1257   : > { %3693 = vrot.lane.b32.xlu1 %v7223_v58, %s7496_s21 }
0x12ca   : > { %v3587_v22 = vpop.xlane.xlu0 %3586 }
0x12cb   : > { %v3589_v29 = vsub.f32 %v3579_v13, %v3587_v22  ;;  %v3584_v23 = vpop.xlane.xlu1 %3583 }
0x12cc   : > { %v3588_v42 = vsub.f32 %v7296_v17, %v3584_v23 }
0x12cd   : > { %v3592_v24 = vmul.f32 1.442695, %v3589_v29 }
0x12ce   : > { %v3590_v33 = vmul.f32 1.442695, %v3588_v42 }
0x12cf   : > { %6316 = vpow2.f32 %v3592_v24  ;;  %v6251_v25 = vpop.permute.xlu1 %6250 }
0x12d0   : > { %v6253_v27 = vunpack.i.h.bf16 %v6251_v25  ;;  %v6252_v28 = vunpack.i.l.bf16 %v6251_v25  ;;  %6318 = vpow2.f32 %v3590_v33 }
0x12d2   : > { %v5871_v2 = vpack.c.bf16 %v6253_v27, %v6252_v28 }
0x12d3   : > { %v3692_v49 = vpop.permute.xlu1 %3691 }
0x12d4   : > { %5872 = vmatprep.subr.bf16.mxu1 %v5871_v2 }
0x12d5   : > { %5874 = vmatpush3.bf16.msra.mxu1 %v5871_v2 }
0x12d9   : > { %v6317_v30 = vpop.eup %6316 }
0x12da   : > { %v3597_v41 = vsel %vm2663_vm6, %v6317_v30, 0.0  ;;  %v6319_v32 = vpop.eup %6318 }
0x12db   : > { %3598 = vadd.xlane.f32.xlu0 %v3597_v41  ;;  %v3594_v58 = vsel %vm2663_vm6, %v6319_v32, 0.0 }
0x12df   : > { %3595 = vadd.xlane.f32.xlu0 %v3594_v58 }
0x12f5   : > { %6255 = vrot.lane.b32.xlu0 %v7221_v54, %s7496_s21  ;;  %v3694_v54 = vpop.permute.xlu1 %3693 }
0x1368   : > { %v3599_v34 = vpop.xlane.xlu0 %3598 }
0x1369   : > { %6320 = vrcp.f32 %v3599_v34 }
0x136c   : > { %v3596_v36 = vpop.xlane.xlu0 %3595 }
0x136d   : > { %6322 = vrcp.f32 %v3596_v36 }
0x1370   : > { %v6256_v43 = vpop.permute.xlu0 %6255 }
0x1371   : > { %v6258_v44 = vunpack.i.h.bf16 %v6256_v43  ;;  %v6257_v45 = vunpack.i.l.bf16 %v6256_v43 }
0x1373   : > { %v5875_v4 = vpack.c.bf16 %v6258_v44, %v6257_v45  ;;  %v6321_v8 = vpop.eup %6320 }
0x1374   : > { %v3603_v48 = vmul.f32 %v6321_v8, %v6317_v30 }
0x1375   : > { %5877 = vmatprep.subr.msk.bf16.mxu1 %vm6755_vm2, %v5875_v4 }
0x1377   : > { %v6323_v10 = vpop.eup %6322 }
0x1378   : > { %v3602_v16 = vmul.f32 %v6323_v10, %v6319_v32 }
0x137a   : > { %5411 = vmatprep.mubr.msk.f32.mxu1 %vm2663_vm6, %v3602_v16 }
0x137b   : > { %5412 = vmatmul.mubr.msk.f32.vlgmr.msra.gmra.mrb[34].mxu1 %vm2663_vm6, %v3603_v48 }
0x137c   : > { %5880 = vmatpush3.bf16.xpose.msk.msra.mxu1 %vm6755_vm2, %v5875_v4  ;;  %5418 = vmatprep.mubr.msk.f32.mxu1 %vm1534_vm1, %v3692_v49 }
0x1383   : > { %5419 = vmatmul.mubr.msk.f32.vlgmr.msra.gmra.mrb[36].mxu1 %vm1534_vm1, %v3694_v54 }
0x144e   : > { %v5413_v55 = vpop.f32.mrb[34].mxu1 }
0x144f   : > { %v3682_v14 = vpop.f32.mrb[35].mxu1 }
0x1456   : > { %v5420_v60 = vpop.f32.mrb[36].mxu1 }
0x1457   : > { %v3779_v3 = vadd.f32 %v5420_v60, %v7246_v1  ;;  %v3773_v15 = vpop.f32.mrb[37].mxu1 }
0x1458   : > { %v3774_v46 = vadd.f32 %v7246_v1, %v3773_v15 }
0x1459   : > { %v3785_v51 = vsel %vm2663_vm6, %v3779_v3, -inf }
0x145a   : > { %v3930_v9 = vrot.slane %v3774_v46, 5  ;;  %3786 = vmax.xlane.f32.xlu0 %v3785_v51  ;;  %v3782_v31 = vsel %vm2663_vm6, %v3774_v46, -inf }
0x145b   : > { %3783 = vmax.xlane.f32.xlu1 %v3782_v31 }
0x145c   : > { %v3934_v53 = vsel %vm2684_vm5, %v3933_v19, %v3930_v9 }
0x145d   : > { %3936 = vst.msk [vmem:[%s1055_s5] sm:$0xf] %vm3935_vm8, %v3934_v53  ;;  %s7510_s5 = sld [smem:[#allocation21_spill]] }
0x146c   : > { %6260 = vrot.lane.b32.xlu1 %v7234_v38, %s7496_s21  ;;  %s7508_s21 = sld [smem:[#allocation20_spill]] }
0x1470   : > { %3895 = vrot.lane.b32.xlu1 %v7290_v5, %s7506_s10 }
0x1472   : > { %v3939_v29 = vld [vmem:[%s7508_s21] sm:$0xff]  ;;  %v3940_v23 = vld [vmem:[%s7508_s21 + $0x8] sm:$0xff]  ;;  %v3941_v24 = vld [vmem:[%s7508_s21 + $0x10] sm:$0xff] }
0x1473   : > { %v5885_v42 = vpack.c.bf16 %v3940_v23, %v3939_v29  ;;  %v3942_v33 = vld [vmem:[%s7508_s21 + $0x18] sm:$0xff] }
0x1474   : > { %3901 = vrot.lane.b32.xlu1 %v3682_v14, %s7507_s3  ;;  %v5889_v25 = vpack.c.bf16 %v3942_v33, %v3941_v24 }
0x1478   : > { %3903 = vrot.lane.b32.xlu1 %v5413_v55, %s7507_s3  ;;  %s7512_s3 = sld [smem:[#allocation22_spill]] }
0x14e7   : > { %v3787_v1 = vpop.xlane.xlu0 %3786 }
0x14e8   : > { %v3789_v11 = vsub.f32 %v3779_v3, %v3787_v1  ;;  %v3784_v21 = vpop.xlane.xlu1 %3783 }
0x14e9   : > { %v3788_v52 = vsub.f32 %v3774_v46, %v3784_v21 }
0x14ea   : > { %v3792_v26 = vmul.f32 1.442695, %v3789_v11 }
0x14eb   : > { %v3790_v59 = vmul.f32 1.442695, %v3788_v52 }
0x14ec   : > { %v6261_v35 = vpop.permute.xlu1 %6260 }
0x14ed   : > { %6324 = vpow2.f32 %v3790_v59  ;;  %v6263_v56 = vunpack.i.h.bf16 %v6261_v35  ;;  %v6262_v39 = vunpack.i.l.bf16 %v6261_v35 }
0x14ee   : > { %6326 = vpow2.f32 %v3792_v26 }
0x14ef   : > { %v5881_v57 = vpack.c.bf16 %v6263_v56, %v6262_v39 }
0x14f0   : > { %v3896_v28 = vpop.permute.xlu1 %3895 }
0x14f1   : > { %5882 = vmatprep.subr.bf16.mxu0 %v5881_v57  ;;  %v3916_v58 = vsel %vm1534_vm1, %v7286_v62, %v3896_v28  ;;  %v4685_v62 = vld [vmem:[%s7510_s5] ss:$0 sm:$0xff]  ;;  %s7514_s5 = sld [smem:[#allocation26_spill]] }
0x14f2   : > { %5884 = vmatpush3.bf16.msra.mxu0 %v5881_v57 }
0x14f3   : > { %5886 = vmatprep.subr.bf16.mxu0 %v5885_v42 }
0x14f4   : > { %v3902_v2 = vpop.permute.xlu1 %3901 }
0x14f7   : > { %v6325_v38 = vpop.eup %6324  ;;  %v4181_v29 = vld [vmem:[%s7514_s5 + $0x8] sm:$0xff]  ;;  %v4183_v24 = vld [vmem:[%s7514_s5 + $0x18] sm:$0xff]  ;;  %v4186_v28 = vld [vmem:[%s7514_s5 + $0x30] sm:$0xff] }
0x14f8   : > { %v3794_v40 = vsel %vm2663_vm6, %v6325_v38, 0.0  ;;  %v6327_v5 = vpop.eup %6326  ;;  %v3904_v41 = vpop.permute.xlu1 %3903 }
0x14f9   : > { %3795 = vadd.xlane.f32.xlu0 %v3794_v40  ;;  %v3797_v7 = vsel %vm2663_vm6, %v6327_v5, 0.0  ;;  %v3918_v34 = vsel %vm2663_vm6, %v3916_v58, %v3904_v41 }
0x14fd   : > { %3798 = vadd.xlane.f32.xlu0 %v3797_v7 }
0x1513   : > { %3893 = vrot.lane.b32.xlu0 %v7292_v6, %s7506_s10  ;;  %s7511_s10 = sld [smem:[#allocation24_spill]] }
0x1519   : > { %v4077_v31 = vld [vmem:[%s7511_s10] sm:$0xff]  ;;  %v4078_v19 = vld [vmem:[%s7511_s10 + $0x8] sm:$0xff]  ;;  %v4079_v1 = vld [vmem:[%s7511_s10 + $0x10] sm:$0xff] }
0x151a   : > { %v5893_v53 = vpack.c.bf16 %v4078_v19, %v4077_v31  ;;  %v4080_v11 = vld [vmem:[%s7511_s10 + $0x18] sm:$0xff] }
0x151b   : > { %v5897_v21 = vpack.c.bf16 %v4080_v11, %v4079_v1 }
0x151c   : > { %5894 = vmatprep.subr.bf16.mxu1 %v5893_v53 }
0x151d   : > { %5896 = vmatpush3.bf16.msra.mxu1 %v5893_v53 }
0x151e   : > { %5898 = vmatprep.subr.bf16.mxu1 %v5897_v21 }
0x1521   : > { %5900 = vmatpush3.bf16.msra.mxu1 %v5897_v21 }
0x1586   : > { %v3796_v13 = vpop.xlane.xlu0 %3795 }
0x1587   : > { %6328 = vrcp.f32 %v3796_v13 }
0x158a   : > { %v3799_v12 = vpop.xlane.xlu0 %3798 }
0x158b   : > { %6330 = vrcp.f32 %v3799_v12 }
0x158e   : > { %v3894_v30 = vpop.permute.xlu0 %3893 }
0x158f   : > { %v3915_v32 = vsel %vm1534_vm1, %v7288_v63, %v3894_v30 }
0x1590   : > { %v3917_v44 = vsel %vm2663_vm6, %v3915_v32, %v3902_v2  ;;  %v4187_v2 = vld [vmem:[%s7514_s5 + $0x38] sm:$0xff] }
0x1591   : > { %v6329_v17 = vpop.eup %6328  ;;  %v5913_v30 = vpack.c.bf16 %v4187_v2, %v4186_v28 }
0x1592   : > { %v3802_v18 = vmul.f32 %v6329_v17, %v6325_v38  ;;  %v4688_v38 = vld [vmem:[%s7512_s3] ss:$0 sm:$0xff]  ;;  %s7515_s3 = sld [smem:[#allocation25_spill]] }
0x1594   : > { %5425 = vmatprep.mubr.msk.f32.mxu0 %vm2663_vm6, %v3802_v18 }
0x1595   : > { %v6331_v20 = vpop.eup %6330 }
0x1596   : > { %v3803_v22 = vmul.f32 %v6331_v20, %v6327_v5 }
0x1598   : > { %5426 = vmatmul.mubr.msk.f32.vlgmr.msra.gmra.mrb[34].mxu0 %vm2663_vm6, %v3803_v22  ;;  %v4180_v22 = vld [vmem:[%s7514_s5] sm:$0xff] }
0x1599   : > { %5888 = vmatpush3.bf16.msra.mxu0 %v5885_v42  ;;  %v5901_v23 = vpack.c.bf16 %v4181_v29, %v4180_v22  ;;  %v4182_v42 = vld [vmem:[%s7514_s5 + $0x10] sm:$0xff]  ;;  %v4690_v41 = vld [vmem:[%s7515_s3] ss:$0 sm:$0xff]  ;;  %s4699_s3 = sshll.u32 %s6640_s0, 6 }
0x159a   : > { %5890 = vmatprep.subr.bf16.mxu0 %v5889_v25  ;;  %v5905_v33 = vpack.c.bf16 %v4183_v24, %v4182_v42  ;;  %s7395_s6 = scalar_lea.hbm %s6612_s20, %s4699_s3 }
0x159d   : > { %5892 = vmatpush3.bf16.msra.mxu0 %v5889_v25  ;;  %v4184_v25 = vld [vmem:[%s7514_s5 + $0x20] sm:$0xff] }
0x159e   : > { %5902 = vmatprep.subr.bf16.mxu0 %v5901_v23 }
0x166b   : > { %v5427_v6 = vpop.f32.mrb[34].mxu0 }
0x166c   : > { %3911 = vrot.lane.b32.xlu1 %v5427_v6, %s7509_s16  ;;  %v3882_v27 = vpop.f32.mrb[35].mxu0  ;;  %v4185_v6 = vld [vmem:[%s7514_s5 + $0x28] sm:$0xff] }
0x166d   : > { %3909 = vrot.lane.b32.xlu0 %v3882_v27, %s7509_s16  ;;  %s7513_s16 = sld [smem:[#allocation23_spill]]  ;;  %v5909_v27 = vpack.c.bf16 %v4185_v6, %v4184_v25 }
0x1673   : > { %v4689_v5 = vld [vmem:[%s7513_s16] ss:$0 sm:$0xff]  ;;  %s7516_s16 = sld [smem:[#allocation27_spill]] }
0x16de   : > { %v3912_v36 = vpop.permute.xlu1 %3911 }
0x16df   : > { %v3920_v43 = vsel %vm2666_vm7, %v3918_v34, %v3912_v36  ;;  %v3910_v45 = vpop.permute.xlu0 %3909 }
0x16e0   : > { %3922 = vst.msk [vmem:[#allocation2 + $0x8] sm:$0xff] %vm1086_vm0, %v3920_v43  ;;  %v3919_v4 = vsel %vm2666_vm7, %v3917_v44, %v3910_v45 }
0x16e1   : > { %3921 = vst.msk [vmem:[#allocation2] sm:$0xff] %vm1086_vm0, %v3919_v4 }
0x16e7   : > { %v3938_v63 = vld [vmem:[#allocation2 + $0x8] sm:$0xff] }
0x16e8   : > { %v3937_v8 = vld [vmem:[#allocation2] sm:$0xff] }
0x16e9   : > { %5436 = vmatprep.mubr.msk.f32.mxu0 %vm1086_vm0, %v3937_v8 }
0x16ea   : > { %5437 = vmatmul.mubr.msk.f32.vlgmr.msra.gmra.mrb[36].mxu0 %vm1086_vm0, %v3938_v63 }
0x16eb   : > { %5904 = vmatpush3.bf16.msra.mxu0 %v5901_v23 }
0x16ec   : > { %5906 = vmatprep.subr.bf16.mxu0 %v5905_v33 }
0x16ef   : > { %5908 = vmatpush3.bf16.msra.mxu0 %v5905_v33 }
0x16f0   : > { %5910 = vmatprep.subr.bf16.mxu0 %v5909_v27 }
0x16f3   : > { %5912 = vmatpush3.bf16.msra.mxu0 %v5909_v27 }
0x16f4   : > { %5914 = vmatprep.subr.bf16.mxu0 %v5913_v30 }
0x16f7   : > { %5916 = vmatpush3.bf16.msra.mxu0 %v5913_v30 }
0x17bd   : > { %v5438_v10 = vpop.f32.mrb[36].mxu0 }
0x17be   : > { %v4028_v16 = vadd.f32 %v5438_v10, %v4685_v62  ;;  %v4022_v48 = vpop.f32.mrb[37].mxu0 }
0x17bf   : > { %v4023_v49 = vadd.f32 %v4685_v62, %v4022_v48 }
0x17c0   : > { %v4032_v54 = vadd.f32 %v4028_v16, %v7203_v50 }
0x17c1   : > { %v4031_v55 = vadd.f32 %v4023_v49, %v7195_v47  ;;  %v4693_v49 = vld [vmem:[%s7516_s16] ss:$0 sm:$0xff]  ;;  %s7517_s16 = scalar_lea.vmem [#allocation3], %s7124_s15 }
0x17c2   : > { %v4038_v14 = vsel %vm1086_vm0, %v4032_v54, 0.0  ;;  %s4351_s5 = sshll.u32 %s7517_s16, 4  ;;  %s4352_s5 = int_to_ptr.vmem [resolvable:$true] %s4351_s5 }
0x17c3   : > { %4039 = vadd.xlane.f32.xlu1 %v4038_v14  ;;  %v4035_v61 = vsel %vm1086_vm0, %v4031_v55, 0.0  ;;  %s6346_s10 = scalar_lea.vmem %s4352_s5, 64  ;;  %p6353_p0 = scmp.lt.s32.totalorder %s4352_s5, %s6351_s13 }
0x17c4   : > { %4036 = vadd.xlane.f32.xlu0 %v4035_v61  ;;  %p6347_p11 = scmp.ne.s32.totalorder %s4352_s5, %s6346_s10  ;;  %p6354_p1 = scmp.lt.s32.totalorder %s6352_s14, %s6346_s10 }
0x17c6   : > { %p6348_p12 = pnand %p6347_p11, %p6657_p5  ;;  %p6355_p2 = por %p6354_p1, %p6353_p0 }
0x17c8   : > { %p6349_p13 = pneg %p6348_p12 }
0x17ca   : > { %p6356_p3 = pnand %p6355_p2, %p6349_p13 }
0x1850   : > { %v4040_v60 = vpop.xlane.xlu1 %4039 }
0x1851   : > { %v4042_v0 = vmul.f32 0.03125, %v4040_v60  ;;  %v4037_v3 = vpop.xlane.xlu0 %4036 }
0x1852   : > { %v4041_v15 = vmul.f32 0.03125, %v4037_v3 }
0x1853   : > { %v4044_v46 = vsub.f32 %v4032_v54, %v4042_v0 }
0x1854   : > { %v4043_v51 = vsub.f32 %v4031_v55, %v4041_v15 }
0x1855   : > { %v4046_v47 = vmul.f32 %v4044_v46, %v4044_v46 }
0x1856   : > { %v4045_v37 = vmul.f32 %v4043_v51, %v4043_v51 }
0x1857   : > { %v4050_v9 = vsel %vm1086_vm0, %v4046_v47, 0.0 }
0x1858   : > { %v4047_v50 = vsel %vm1086_vm0, %v4045_v37, 0.0 }
0x1859   : > { %4048 = vadd.xlane.f32.xlu0 %v4047_v50 }
0x185d   : > { %4051 = vadd.xlane.f32.xlu0 %v4050_v9 }
0x18e6   : > { %v4049_v52 = vpop.xlane.xlu0 %4048 }
0x18e7   : > { %v4053_v26 = vmul.f32 0.03125, %v4049_v52 }
0x18e9   : > { %v4055_v59 = vadd.f32 1e-12, %v4053_v26 }
0x18ea   : > { %v4052_v35 = vpop.xlane.xlu0 %4051 }
0x18eb   : > { %6332 = vrsqrt.f32 %v4055_v59  ;;  %v4054_v56 = vmul.f32 0.03125, %v4052_v35 }
0x18ed   : > { %v4056_v39 = vadd.f32 1e-12, %v4054_v56 }
0x18ef   : > { %6334 = vrsqrt.f32 %v4056_v39 }
0x18f5   : > { %v6333_v57 = vpop.eup %6332 }
0x18f6   : > { %v4059_v40 = vmul.f32 %v6333_v57, %v4043_v51 }
0x18f8   : > { %v4067_v7 = vmul.f32 %v4688_v38, %v4059_v40 }
0x18f9   : > { %v6335_v13 = vpop.eup %6334 }
0x18fa   : > { %v4060_v12 = vmul.f32 %v6335_v13, %v4044_v46  ;;  %v4075_v17 = vadd.f32 %v4689_v5, %v4067_v7 }
0x18fc   : > { %v4068_v18 = vmul.f32 %v4688_v38, %v4060_v12  ;;  %5447 = vmatprep.mubr.msk.f32.mxu1 %vm1086_vm0, %v4075_v17 }
0x18fe   : > { %v4076_v20 = vadd.f32 %v4689_v5, %v4068_v18 }
0x1900   : > { %5448 = vmatmul.mubr.msk.f32.vlgmr.msra.gmra.mrb[38].mxu1 %vm1086_vm0, %v4076_v20 }
0x19d3   : > { %v5449_v32 = vpop.f32.mrb[38].mxu1 }
0x19d4   : > { %v4166_v58 = vadd.f32 %v5449_v32, %v4690_v41  ;;  %v4160_v34 = vpop.f32.mrb[39].mxu1 }
0x19d5   : > { %v4161_v36 = vadd.f32 %v4690_v41, %v4160_v34 }
0x19d6   : > { %v4173_v43 = vmul.f32 0.70710677, %v4166_v58  ;;  %v4170_v10 = vmul.f32 0.5, %v4166_v58 }
0x19d7   : > { %v4172_v44 = vmul.f32 0.70710677, %v4161_v36  ;;  %v4169_v63 = vmul.f32 0.5, %v4161_v36 }
0x19d8   : > { %6336 = verf.f32 %v4173_v43 }
0x19d9   : > { %6338 = verf.f32 %v4172_v44 }
0x19e2   : > { %v6337_v45 = vpop.eup %6336 }
0x19e3   : > { %v6339_v4 = vpop.eup %6338  ;;  %v4177_v8 = vadd.f32 1.0, %v6337_v45 }
0x19e4   : > { %v4176_v62 = vadd.f32 1.0, %v6339_v4 }
0x19e5   : > { %v4179_v48 = vmul.f32 %v4177_v8, %v4170_v10 }
0x19e6   : > { %v4178_v16 = vmul.f32 %v4176_v62, %v4169_v63 }
0x19e8   : > { %5466 = vmatprep.mubr.msk.f32.mxu0 %vm4195_vm9, %v4178_v16 }
0x19e9   : > { %5467 = vmatmul.mubr.msk.f32.vlgmr.msra.gmra.mrb[38].mxu0 %vm4195_vm9, %v4179_v48 }
0x1abc   : > { %v5468_v54 = vpop.f32.mrb[38].mxu0 }
0x1abd   : > { %v4274_v55 = vadd.f32 %v5468_v54, %v4693_v49  ;;  %v4268_v14 = vpop.f32.mrb[39].mxu0 }
0x1abe   : > { %v4269_v61 = vadd.f32 %v4693_v49, %v4268_v14 }
0x1abf   : > { %v4278_v60 = vadd.f32 %v4274_v55, %v4076_v20 }
0x1ac0   : > { %v4277_v0 = vadd.f32 %v4269_v61, %v4075_v17 }
0x1ac1   : > { %v4284_v3 = vsel %vm1086_vm0, %v4278_v60, 0.0 }
0x1ac2   : > { %4285 = vadd.xlane.f32.xlu1 %v4284_v3  ;;  %v4281_v15 = vsel %vm1086_vm0, %v4277_v0, 0.0 }
0x1ac3   : > { %4282 = vadd.xlane.f32.xlu0 %v4281_v15 }
0x1b4f   : > { %v4286_v46 = vpop.xlane.xlu1 %4285 }
0x1b50   : > { %v4288_v51 = vmul.f32 0.03125, %v4286_v46  ;;  %v4283_v37 = vpop.xlane.xlu0 %4282 }
0x1b51   : > { %v4287_v50 = vmul.f32 0.03125, %v4283_v37 }
0x1b52   : > { %v4290_v47 = vsub.f32 %v4278_v60, %v4288_v51 }
0x1b53   : > { %v4289_v9 = vsub.f32 %v4277_v0, %v4287_v50 }
0x1b54   : > { %v4292_v31 = vmul.f32 %v4290_v47, %v4290_v47 }
0x1b55   : > { %v4291_v19 = vmul.f32 %v4289_v9, %v4289_v9 }
0x1b56   : > { %v4296_v53 = vsel %vm1086_vm0, %v4292_v31, 0.0 }
0x1b57   : > { %4297 = vadd.xlane.f32.xlu1 %v4296_v53  ;;  %v4293_v1 = vsel %vm1086_vm0, %v4291_v19, 0.0 }
0x1b58   : > { %4294 = vadd.xlane.f32.xlu0 %v4293_v1 }
0x1b59   : > { %6359 = shalt.err (!%p6356_p3)
}
0x1b5a   : > { %s6360_s8 = scalar_lea.hbm %s7395_s6, 64  ;;  %s6364_s12 = scalar_lea.hbm %s6612_s20, 128 }
0x1b5b   : > { %p6361_p4 = scmp.ne.s32.totalorder %s7395_s6, %s6360_s8  ;;  %p6365_p9 = scmp.lt.u32.totalorder %s7395_s6, %s6612_s20 }
0x1b5c   : > { %p6366_p10 = scmp.lt.u32.totalorder %s6364_s12, %s6360_s8  ;;  %p6368_p12 = scmp.lt.u32.totalorder %s6360_s8, %s7395_s6 }
0x1b5d   : > { %p6362_p7 = pnand %p6361_p4, %p6657_p5 }
0x1b5e   : > { %p6367_p11 = por %p6366_p10, %p6365_p9 }
0x1b5f   : > { %p6363_p8 = pneg %p6362_p7 }
0x1b60   : > { %p6369_p0 = por %p6368_p12, %p6367_p11 }
0x1b62   : > { %p6370_p13 = pnand %p6369_p0, %p6363_p8 }
0x1b64   : > { %6373 = shalt.err (!%p6370_p13)
}
0x1b65   : > { %s7519_s13 = sld [smem:[#allocation28_spill]]  ;;  %v4697_v40 = vld [vmem:[%s6602_s4] ss:$0 sm:$0xff]  ;;  %s7520_s14 = sshll.u32 %s6673_s26, 4 }
0x1b66   : > { %5917 = dma.vmem_to_hbm [thread:$0]  (%p6657_p5), %s4352_s5, 64, %s7395_s6, %s4331_s9  }
0x1b67   : > { %s1051_s0 = scalar_lea.vmem %s6607_s30, %s7520_s14 }
0x1b6b   : > { %v4696_v39 = vld [vmem:[%s7519_s13] ss:$0 sm:$0xff] }
0x1be4   : > { %v4298_v11 = vpop.xlane.xlu1 %4297 }
0x1be5   : > { %v4300_v21 = vmul.f32 0.03125, %v4298_v11  ;;  %v4295_v52 = vpop.xlane.xlu0 %4294 }
0x1be6   : > { %v4299_v26 = vmul.f32 0.03125, %v4295_v52 }
0x1be7   : > { %v4302_v59 = vadd.f32 1e-12, %v4300_v21 }
0x1be8   : > { %v4301_v35 = vadd.f32 1e-12, %v4299_v26 }
0x1be9   : > { %6340 = vrsqrt.f32 %v4302_v59 }
0x1bea   : > { %6342 = vrsqrt.f32 %v4301_v35 }
0x1bf3   : > { %v6341_v56 = vpop.eup %6340 }
0x1bf4   : > { %v6343_v57 = vpop.eup %6342  ;;  %v4306_v38 = vmul.f32 %v6341_v56, %v4290_v47 }
0x1bf5   : > { %v4305_v5 = vmul.f32 %v6343_v57, %v4289_v9 }
0x1bf6   : > { %v4314_v7 = vmul.f32 %v4696_v39, %v4306_v38 }
0x1bf7   : > { %v4313_v13 = vmul.f32 %v4696_v39, %v4305_v5 }
0x1bf8   : > { %v4322_v12 = vadd.f32 %v4697_v40, %v4314_v7 }
0x1bf9   : > { %v4321_v17 = vadd.f32 %v4697_v40, %v4313_v13 }
0x1bfa   : > { %4324 = vst.msk [vmem:[%s1051_s0 + $0x8] sm:$0xff] %vm1086_vm0, %v4322_v12 }
0x1bfb   : > { %4323 = vst.msk [vmem:[%s1051_s0] sm:$0xff] %vm1086_vm0, %v4321_v17 }
0x1bfc PF: > { %p5923_p5 = scmp.ge.s32.totalorder %s6408_s7, 2  ;;  %s4374_s9 = sand.u32 1, %s6396_s28  }
0x1bfd   : > { %s4375_s6 = scalar_lea.sflag [#allocation4], %s4374_s9 }
0x1bfe   : > { %p5920_p1 = pnand %p5923_p5, %p6661_p6 }
0x1c00   : > { %6391 = dma.done.wait (!%p5920_p1), %s4375_s6, 64  }
0x1c01   : > { %6393 = vsyncadd (!%p5920_p1), %s4375_s6, 4294967232  ;;  %p76_p2 = scmp.ge.s32.totalorder %s6644_s11, 4   ;;  %s7521_s28 = smov %s6400_s1 }
0x1c02   : > { %s7522_s1 = smov %s6404_s2  ;;  %s7523_s2 = smov %s6655_s18 }
0x1c03   : > { %s7524_s7 = smov %s6644_s11  ;;  %78 = sbr.rel (!%p76_p2) target bundleno = 68 (0x44), region = 240 }
0x1c0a   :  { %4387 = vsyncpa [#allocation4], 1 }
0x1c0b   :  { %4389 = vsyncpa [#allocation4 + $0x1], 1 }

</bundles_post_ra>
